<compile_context>
chip_gen: v7x
topology: tpu7x:2x2x1
jax: 0.10.0
libtpu: 0.0.40
codegen_flags: <defaults>
</compile_context>

<pallas_src>
import jax
import jax.numpy as jnp
from jax.experimental import pallas as pl
from jax.experimental.pallas import tpu as pltpu


def _round_up(x, m):
    return ((x + m - 1) // m) * m


def _pad2(a, rows, cols):
    return jnp.pad(a, ((0, rows - a.shape[0]), (0, cols - a.shape[1])))


def _fold_linear_bn(w, b, scale, shift):
    # y = (x @ w + b) * scale + shift == x @ (w * scale) + (b * scale + shift)
    return w * scale, b * scale + shift


def _pick_vmem_limit_bytes():
    # Generation-aware VMEM budget: ~3/4 of physical capacity, capped at 100MiB
    # (v5e/v6e: 96 MiB of 128 MiB, v7x: 48 MiB of 64 MiB).
    try:
        cap = int(pltpu.get_tpu_info().vmem_capacity_bytes)
    except Exception:
        cap = 128 * 1024 * 1024
    return int(min(cap * 3 // 4, 100 * 1024 * 1024))


# ----------------------------------------------------------------------------
# Fused Pallas kernel: all GIN + virtual-node layers in one call.
#   grid = (num_layers, num_edge_tiles)   -- both "arbitrary" (carried state)
# ----------------------------------------------------------------------------
def _gin_vnode_fused_kernel(eps_ref,                  # SMEM f32[L]
                            h0_ref, vn0_ref,          # [Np,Dp] f32, [Gp,Dp] f32
                            bmat_ref, pmat_ref,       # [Np,Gp] bf16, [Gp,Np] bf16
                            gmat_ref, smat_ref,       # [Et,Np] bf16, [Np,Et] bf16
                            ee_ref,                   # [Et,Dp] bf16 (layer, edge tile)
                            w1_ref, b1_ref, w2_ref, b2_ref,       # GIN MLP (BN folded)
                            wv1_ref, bv1_ref, wv2_ref, bv2_ref,   # vn MLP (BN folded)
                            h_ref,                    # out [Np,Dp] f32 (VMEM-resident)
                            vn_scr, hin_scr, agg_scr):  # scratches
    f32 = jnp.float32
    bf16 = jnp.bfloat16
    l = pl.program_id(0)
    e = pl.program_id(1)
    num_layers = pl.num_programs(0)
    num_etiles = pl.num_programs(1)

    @pl.when((l == 0) & (e == 0))
    def _init():
        h_ref[...] = h0_ref[...]
        vn_scr[...] = vn0_ref[...]

    @pl.when(e == 0)
    def _layer_start():
        # hin = h + virtualnode_embedding[batch]
        hin_scr[...] = h_ref[...] + jnp.dot(
            bmat_ref[...], vn_scr[...].astype(bf16), preferred_element_type=f32)
        agg_scr[...] = jnp.zeros_like(agg_scr)

    hin = hin_scr[...]
    hin_bf = hin.astype(bf16)

    # One tile of edges:
    #   msg[e] = relu(hin[src[e]] + edge_emb[e]);  agg[i] += sum_{dst[e]==i} msg[e]
    msg = jnp.maximum(
        jnp.dot(gmat_ref[...], hin_bf, preferred_element_type=f32)
        + ee_ref[...].astype(f32),
        0.0)
    agg_scr[...] += jnp.dot(smat_ref[...], msg.astype(bf16),
                            preferred_element_type=f32)

    @pl.when(e == num_etiles - 1)
    def _layer_end():
        eps = eps_ref[l]
        pre = (1.0 + eps) * hin + agg_scr[...]

        # GIN MLP: Linear(D,2D) -> [BN folded] -> ReLU -> Linear(2D,D) -> [outer BN folded]
        z = jnp.maximum(
            jnp.dot(pre.astype(bf16), w1_ref[...], preferred_element_type=f32)
            + b1_ref[...], 0.0)
        hn = (jnp.dot(z.astype(bf16), w2_ref[...], preferred_element_type=f32)
              + b2_ref[...])

        @pl.when(l == num_layers - 1)
        def _last_layer():
            # last layer: no ReLU, dropout = identity (eval)
            h_ref[...] = hn

        @pl.when(l < num_layers - 1)
        def _not_last():
            h_ref[...] = jnp.maximum(hn, 0.0)
            # virtual node update: global_add_pool(hin, batch) + vn -> MLP (BN folded)
            pooled = (jnp.dot(pmat_ref[...], hin_bf, preferred_element_type=f32)
                      + vn_scr[...])
            v = jnp.maximum(
                jnp.dot(pooled.astype(bf16), wv1_ref[...],
                        preferred_element_type=f32) + bv1_ref[...], 0.0)
            v = jnp.maximum(
                jnp.dot(v.astype(bf16), wv2_ref[...],
                        preferred_element_type=f32) + bv2_ref[...], 0.0)
            vn_scr[...] = v


# ----------------------------------------------------------------------------
# Parameter init (deterministic, synthetic, "PyTorch-like" layout)
# ----------------------------------------------------------------------------
def init_params(key, num_layers, emb_dim, num_atom_feats, atom_vocab,
                num_bond_feats, bond_vocab):
    keys = iter(jax.random.split(key, 256))

    def nrm(shape, scale=0.1):
        return (scale * jax.random.normal(next(keys), shape)).astype(jnp.float32)

    bn_eps = 1e-5

    def bn_affine(dim):
        gamma = jnp.ones((1, dim), jnp.float32)
        beta = jnp.zeros((1, dim), jnp.float32)
        mean = jnp.zeros((1, dim), jnp.float32)
        var = jnp.ones((1, dim), jnp.float32)
        scale = gamma / jnp.sqrt(var + bn_eps)
        shift = beta - mean * scale
        return scale, shift

    params = {
        "atom_emb": [nrm((atom_vocab, emb_dim)) for _ in range(num_atom_feats)],
        "vn_emb": jnp.zeros((1, emb_dim), jnp.float32),   # constant_(0) init
        "layers": [],
    }
    for layer in range(num_layers):
        s1, t1 = bn_affine(2 * emb_dim)
        so, to = bn_affine(emb_dim)
        lp = {
            "bond_emb": [nrm((bond_vocab, emb_dim)) for _ in range(num_bond_feats)],
            "eps": 0.0,
            "w1": nrm((emb_dim, 2 * emb_dim)), "b1": nrm((1, 2 * emb_dim)),
            "s1": s1, "t1": t1,
            "w2": nrm((2 * emb_dim, emb_dim)), "b2": nrm((1, emb_dim)),
            "so": so, "to": to,
        }
        if layer < num_layers - 1:
            sv1, tv1 = bn_affine(2 * emb_dim)
            sv2, tv2 = bn_affine(emb_dim)
            lp.update({
                "wv1": nrm((emb_dim, 2 * emb_dim)), "bv1": nrm((1, 2 * emb_dim)),
                "sv1": sv1, "tv1": tv1,
                "wv2": nrm((2 * emb_dim, emb_dim)), "bv2": nrm((1, emb_dim)),
                "sv2": sv2, "tv2": tv2,
            })
        params["layers"].append(lp)
    return params


# ----------------------------------------------------------------------------
# Forward: trace-time glue (embedding gathers, one-hot build, BN folding,
# bf16 casts, padding) + ONE fused Pallas call over all layers & edge tiles.
# ----------------------------------------------------------------------------
def gin_virtual_node_forward(params, x, edge_index, edge_attr, batch, *,
                             num_graphs, edge_tile=512):
    """GINVirtual_node forward (eval mode).

    `num_graphs` and `edge_tile` are static Python ints (num_graphs replaces
    the original data-dependent `int(batch[-1]) + 1`), so the whole forward is
    jit-able with no device->host sync.
    """
    f32 = jnp.float32
    bf16 = jnp.bfloat16
    emb_dim = params["atom_emb"][0].shape[1]
    num_layers = len(params["layers"])
    N = x.shape[0]
    E = edge_index.shape[1]
    G = int(num_graphs)

    # lane-dense padded sizes (all multiples of 128)
    Dp = _round_up(emb_dim, 128)
    Hp = _round_up(2 * emb_dim, 128)
    Np = _round_up(N, 128)
    Gp = _round_up(G, 128)
    Et = min(_round_up(E, 128), _round_up(int(edge_tile), 128))   # edge tile size
    Ep = _round_up(E, Et)
    num_etiles = Ep // Et

    # --- data-dependent embedding gathers stay in XLA glue -------------------
    h0 = sum(tbl[x[:, i]] for i, tbl in enumerate(params["atom_emb"])).astype(f32)
    h0 = _pad2(h0, Np, Dp)

    vn0 = jnp.tile(params["vn_emb"].astype(f32), (G, 1))       # embedding row 0
    vn0 = _pad2(vn0, Gp, Dp)

    # --- 0/1 structure operators (exact in bf16), built directly in the
    #     orientation each dot needs; padded rows/edges/graphs -> all-zero ----
    batch_p = jnp.pad(batch.astype(jnp.int32), (0, Np - N), constant_values=-1)
    src = jnp.pad(edge_index[0].astype(jnp.int32), (0, Ep - E), constant_values=-1)
    dst = jnp.pad(edge_index[1].astype(jnp.int32), (0, Ep - E), constant_values=-1)
    g_ids = jnp.arange(Gp, dtype=jnp.int32)
    n_ids = jnp.arange(Np, dtype=jnp.int32)

    bmat = (batch_p[:, None] == g_ids[None, :]).astype(bf16)   # [Np,Gp] vn -> node
    pmat = (g_ids[:, None] == batch_p[None, :]).astype(bf16)   # [Gp,Np] add-pool
    gmat = (src[:, None] == n_ids[None, :]).astype(bf16)       # [Ep,Np] gather x_j
    smat = (n_ids[:, None] == dst[None, :]).astype(bf16)       # [Np,Ep] scatter-add

    # --- fold BN into Linears, zero-pad lane-dense, cast weights to bf16,
    #     stack over layers (vn MLP stacked over num_layers-1 only) -----------
    eps_l, ee_l = [], []
    w1_l, b1_l, w2_l, b2_l = [], [], [], []
    wv1_l, bv1_l, wv2_l, bv2_l = [], [], [], []
    for li, lp in enumerate(params["layers"]):
        eps_l.append(jnp.asarray(lp["eps"], f32).reshape(()))   # traced-safe

        ee = sum(tbl[edge_attr[:, i]]
                 for i, tbl in enumerate(lp["bond_emb"])).astype(f32)
        ee_l.append(_pad2(ee, Ep, Dp).astype(bf16))

        w1f, b1f = _fold_linear_bn(lp["w1"], lp["b1"], lp["s1"], lp["t1"])
        w2f, b2f = _fold_linear_bn(lp["w2"], lp["b2"], lp["so"], lp["to"])
        w1_l.append(_pad2(w1f, Dp, Hp).astype(bf16)); b1_l.append(_pad2(b1f, 1, Hp))
        w2_l.append(_pad2(w2f, Hp, Dp).astype(bf16)); b2_l.append(_pad2(b2f, 1, Dp))

        if li < num_layers - 1:
            wv1f, bv1f = _fold_linear_bn(lp["wv1"], lp["bv1"], lp["sv1"], lp["tv1"])
            wv2f, bv2f = _fold_linear_bn(lp["wv2"], lp["bv2"], lp["sv2"], lp["tv2"])
            wv1_l.append(_pad2(wv1f, Dp, Hp).astype(bf16))
            bv1_l.append(_pad2(bv1f, 1, Hp))
            wv2_l.append(_pad2(wv2f, Hp, Dp).astype(bf16))
            bv2_l.append(_pad2(bv2f, 1, Dp))

    eps_arr = jnp.stack(eps_l)                                  # f32[L] -> SMEM
    ee_arr = jnp.stack(ee_l)                                    # [L,Ep,Dp] bf16
    w1_arr = jnp.stack(w1_l); b1_arr = jnp.stack(b1_l)
    w2_arr = jnp.stack(w2_l); b2_arr = jnp.stack(b2_l)
    wv1_arr = jnp.stack(wv1_l); bv1_arr = jnp.stack(bv1_l)      # [L-1,...]
    wv2_arr = jnp.stack(wv2_l); bv2_arr = jnp.stack(bv2_l)

    last_vn_idx = num_layers - 2   # clamp: last layer reuses (never executes) L-2

    # --- BlockSpecs -----------------------------------------------------------
    def const_spec(shape):          # resident across all grid steps (fetched once)
        nd = len(shape)
        return pl.BlockSpec(shape, lambda l, e: (0,) * nd)

    def layer_spec(shape, clamp=None):   # one layer slice, constant across edge axis
        nd = len(shape)
        if clamp is None:
            idx = lambda l, e: (l,) + (0,) * (nd - 1)
        else:
            idx = lambda l, e: (jnp.minimum(l, clamp),) + (0,) * (nd - 1)
        return pl.BlockSpec((None,) + tuple(shape[1:]), idx)

    in_specs = [
        pl.BlockSpec(memory_space=pltpu.MemorySpace.SMEM),         # eps f32[L]
        const_spec(h0.shape), const_spec(vn0.shape),
        const_spec(bmat.shape), const_spec(pmat.shape),
        pl.BlockSpec((Et, Np), lambda l, e: (e, 0)),               # gmat edge tile
        pl.BlockSpec((Np, Et), lambda l, e: (0, e)),               # smat edge tile
        pl.BlockSpec((None, Et, Dp), lambda l, e: (l, e, 0)),      # ee (layer, edge tile)
        layer_spec(w1_arr.shape), layer_spec(b1_arr.shape),
        layer_spec(w2_arr.shape), layer_spec(b2_arr.shape),
        layer_spec(wv1_arr.shape, clamp=last_vn_idx),
        layer_spec(bv1_arr.shape, clamp=last_vn_idx),
        layer_spec(wv2_arr.shape, clamp=last_vn_idx),
        layer_spec(bv2_arr.shape, clamp=last_vn_idx),
    ]
    out_specs = pl.BlockSpec((Np, Dp), lambda l, e: (0, 0))        # VMEM-resident carry
    out_shape = jax.ShapeDtypeStruct((Np, Dp), f32)

    # --- advisory cost estimate ----------------------------------------------
    flops_conv = 2 * (Np * Gp * Dp + Ep * Np * Dp + Np * Ep * Dp
                      + Np * Dp * Hp + Np * Hp * Dp)
    flops_vn = 2 * (Gp * Np * Dp + Gp * Dp * Hp + Gp * Hp * Dp)
    total_flops = num_layers * flops_conv + (num_layers - 1) * flops_vn

    def _nbytes(a):
        return a.size * a.dtype.itemsize

    bytes_accessed = sum(_nbytes(a) for a in
                         (h0, vn0, bmat, pmat, gmat, smat, ee_arr,
                          w1_arr, b1_arr, w2_arr, b2_arr,
                          wv1_arr, bv1_arr, wv2_arr, bv2_arr)) + Np * Dp * 4

    h_pad = pl.pallas_call(
        _gin_vnode_fused_kernel,
        grid=(num_layers, num_etiles),
        in_specs=in_specs,
        out_specs=out_specs,
        out_shape=out_shape,
        scratch_shapes=[pltpu.VMEM((Gp, Dp), f32),    # virtual-node carry
                        pltpu.VMEM((Np, Dp), f32),    # hin for current layer
                        pltpu.VMEM((Np, Dp), f32)],   # edge-tile scatter accumulator
        input_output_aliases={1: 0},                  # h0 buffer -> output carry
        compiler_params=pltpu.CompilerParams(
            dimension_semantics=("arbitrary", "arbitrary"),   # carried state
            vmem_limit_bytes=_pick_vmem_limit_bytes()),
        cost_estimate=pl.CostEstimate(
            flops=int(total_flops), transcendentals=0,
            bytes_accessed=int(bytes_accessed)),
    )(eps_arr, h0, vn0, bmat, pmat, gmat, smat, ee_arr,
      w1_arr, b1_arr, w2_arr, b2_arr, wv1_arr, bv1_arr, wv2_arr, bv2_arr)

    # strip node / feature padding -> node_embedding (num_nodes, emb_dim)
    return h_pad[:N, :emb_dim]


# ----------------------------------------------------------------------------
# Pure-JAX f32 reference (mirrors the PyTorch module in eval mode)
# ----------------------------------------------------------------------------
def gin_virtual_node_reference(params, x, edge_index, edge_attr, batch, *,
                               num_graphs):
    f32 = jnp.float32
    num_layers = len(params["layers"])
    h = sum(tbl[x[:, i]] for i, tbl in enumerate(params["atom_emb"])).astype(f32)
    vn = jnp.tile(params["vn_emb"].astype(f32), (num_graphs, 1))
    src, dst = edge_index[0], edge_index[1]
    for li, lp in enumerate(params["layers"]):
        hin = h + vn[batch]
        ee = sum(tbl[edge_attr[:, i]]
                 for i, tbl in enumerate(lp["bond_emb"])).astype(f32)
        msg = jax.nn.relu(hin[src] + ee)
        agg = jnp.zeros_like(hin).at[dst].add(msg)
        pre = (1.0 + jnp.asarray(lp["eps"], f32)) * hin + agg
        z = jax.nn.relu((pre @ lp["w1"] + lp["b1"]) * lp["s1"] + lp["t1"])
        hc = (z @ lp["w2"] + lp["b2"]) * lp["so"] + lp["to"]
        if li == num_layers - 1:
            h = hc                               # no ReLU, dropout = identity
        else:
            h = jax.nn.relu(hc)
            pooled = jax.ops.segment_sum(hin, batch, num_segments=num_graphs) + vn
            v = jax.nn.relu((pooled @ lp["wv1"] + lp["bv1"]) * lp["sv1"] + lp["tv1"])
            v = jax.nn.relu((v @ lp["wv2"] + lp["bv2"]) * lp["sv2"] + lp["tv2"])
            vn = v
    return h


if __name__ == "__main__":
    num_layers, emb_dim = 3, 32
    N, E, G = 12, 160, 2           # E > 128 so the edge-tiled path runs 2 tiles
    num_atom_feats, atom_vocab = 2, 16
    num_bond_feats, bond_vocab = 2, 8

    k1, k2, k3, k4 = jax.random.split(jax.random.PRNGKey(0), 4)
    x = jax.random.randint(k1, (N, num_atom_feats), 0, atom_vocab, dtype=jnp.int32)
    edge_attr = jax.random.randint(k2, (E, num_bond_feats), 0, bond_vocab,
                                   dtype=jnp.int32)
    src = jax.random.randint(k3, (E,), 0, N, dtype=jnp.int32)
    dst = jax.random.randint(k4, (E,), 0, N, dtype=jnp.int32)
    edge_index = jnp.stack([src, dst])                           # [2, E]
    batch = jnp.concatenate([jnp.zeros(N // 2, jnp.int32),
                             jnp.ones(N - N // 2, jnp.int32)])   # [N], sorted

    params = init_params(jax.random.PRNGKey(42), num_layers, emb_dim,
                         num_atom_feats, atom_vocab, num_bond_feats, bond_vocab)

    fwd = jax.jit(gin_virtual_node_forward,
                  static_argnames=("num_graphs", "edge_tile"))
    out = fwd(params, x, edge_index, edge_attr, batch, num_graphs=G, edge_tile=128)
    out = jax.block_until_ready(out)
    assert out.shape == (N, emb_dim) and out.dtype == jnp.float32

    ref = gin_virtual_node_reference(params, x, edge_index, edge_attr, batch,
                                     num_graphs=G)
    rel_err = float(jnp.max(jnp.abs(out - ref)) / (jnp.max(jnp.abs(ref)) + 1e-6))
    assert rel_err < 5e-2, f"kernel/reference mismatch: rel_err={rel_err}"
    print("KERNEL_OK")
</pallas_src>

<mosaic_0001>
module attributes {stable_mosaic.version = 11 : i64} {
  func.func @_gin_vnode_fused_kernel(%arg0: i32, %arg1: i32, %arg2: memref<3xf32, #tpu.memory_space<smem>>, %arg3: memref<128x128xf32, #tpu.memory_space<vmem>>, %arg4: memref<128x128xf32, #tpu.memory_space<vmem>>, %arg5: memref<128x128xbf16, #tpu.memory_space<vmem>>, %arg6: memref<128x128xbf16, #tpu.memory_space<vmem>>, %arg7: memref<128x128xbf16, #tpu.memory_space<vmem>>, %arg8: memref<128x128xbf16, #tpu.memory_space<vmem>>, %arg9: memref<1x128x128xbf16, #tpu.memory_space<vmem>>, %arg10: memref<1x128x128xbf16, #tpu.memory_space<vmem>>, %arg11: memref<1x1x128xf32, #tpu.memory_space<vmem>>, %arg12: memref<1x128x128xbf16, #tpu.memory_space<vmem>>, %arg13: memref<1x1x128xf32, #tpu.memory_space<vmem>>, %arg14: memref<1x128x128xbf16, #tpu.memory_space<vmem>>, %arg15: memref<1x1x128xf32, #tpu.memory_space<vmem>>, %arg16: memref<1x128x128xbf16, #tpu.memory_space<vmem>>, %arg17: memref<1x1x128xf32, #tpu.memory_space<vmem>>, %arg18: memref<128x128xf32, #tpu.memory_space<vmem>>, %arg19: memref<128x128xf32, #tpu.memory_space<vmem>>, %arg20: memref<128x128xf32, #tpu.memory_space<vmem>>, %arg21: memref<128x128xf32, #tpu.memory_space<vmem>>) attributes {dimension_semantics = [#tpu.dimension_semantics<arbitrary>, #tpu.dimension_semantics<arbitrary>], iteration_bounds = array<i64: 3, 2>, scalar_prefetch = 0 : i64, scratch_operands = 3 : i64, tpu.core_type = #tpu.core_type<tc>, window_params = [{transform_indices = @transform_0, window_bounds = array<i64: 3>}, {pipeline_mode = #tpu.pipeline_mode<synchronous>, transform_indices = @transform_1, window_bounds = array<i64: 128, 128>}, {pipeline_mode = #tpu.pipeline_mode<synchronous>, transform_indices = @transform_2, window_bounds = array<i64: 128, 128>}, {pipeline_mode = #tpu.pipeline_mode<synchronous>, transform_indices = @transform_3, window_bounds = array<i64: 128, 128>}, {pipeline_mode = #tpu.pipeline_mode<synchronous>, transform_indices = @transform_4, window_bounds = array<i64: 128, 128>}, {transform_indices = @transform_5, window_bounds = array<i64: 128, 128>}, {transform_indices = @transform_6, window_bounds = array<i64: 128, 128>}, {transform_indices = @transform_7, window_bounds = array<i64: 1, 128, 128>}, {transform_indices = @transform_8, window_bounds = array<i64: 1, 128, 128>}, {transform_indices = @transform_9, window_bounds = array<i64: 1, 1, 128>}, {transform_indices = @transform_10, window_bounds = array<i64: 1, 128, 128>}, {transform_indices = @transform_11, window_bounds = array<i64: 1, 1, 128>}, {transform_indices = @transform_12, window_bounds = array<i64: 1, 128, 128>}, {transform_indices = @transform_13, window_bounds = array<i64: 1, 1, 128>}, {transform_indices = @transform_14, window_bounds = array<i64: 1, 128, 128>}, {transform_indices = @transform_15, window_bounds = array<i64: 1, 1, 128>}, {pipeline_mode = #tpu.pipeline_mode<synchronous>, transform_indices = @transform_16, window_bounds = array<i64: 128, 128>}]} {
    %c0_i32 = arith.constant 0 : i32
    %0 = arith.cmpi eq, %arg0, %c0_i32 : i32
    %c0_i32_0 = arith.constant 0 : i32
    %1 = arith.cmpi eq, %arg1, %c0_i32_0 : i32
    %2 = arith.andi %0, %1 : i1
    %3 = arith.extui %2 : i1 to i32
    %c0_i32_1 = arith.constant 0 : i32
    %4 = arith.cmpi ne, %3, %c0_i32_1 : i32
    scf.if %4 {
      %c0_19 = arith.constant 0 : index
      %c0_20 = arith.constant 0 : index
      %27 = vector.load %arg3[%c0_19, %c0_20] : memref<128x128xf32, #tpu.memory_space<vmem>>, vector<128x128xf32>
      %c0_21 = arith.constant 0 : index
      %c0_22 = arith.constant 0 : index
      %28 = vector.load %arg18[%c0_21, %c0_22] : memref<128x128xf32, #tpu.memory_space<vmem>>, vector<128x128xf32>
      tpu.vector_store %arg18[%c0_21, %c0_22], %27 {strides = array<i32>} : memref<128x128xf32, #tpu.memory_space<vmem>>, vector<128x128xf32>,
      %c0_23 = arith.constant 0 : index
      %c0_24 = arith.constant 0 : index
      %29 = vector.load %arg4[%c0_23, %c0_24] : memref<128x128xf32, #tpu.memory_space<vmem>>, vector<128x128xf32>
      %c0_25 = arith.constant 0 : index
      %c0_26 = arith.constant 0 : index
      %30 = vector.load %arg19[%c0_25, %c0_26] : memref<128x128xf32, #tpu.memory_space<vmem>>, vector<128x128xf32>
      tpu.vector_store %arg19[%c0_25, %c0_26], %29 {strides = array<i32>} : memref<128x128xf32, #tpu.memory_space<vmem>>, vector<128x128xf32>,
    } else {
    }
    %c0_i32_2 = arith.constant 0 : i32
    %5 = arith.cmpi eq, %arg1, %c0_i32_2 : i32
    %6 = arith.extui %5 : i1 to i32
    %c0_i32_3 = arith.constant 0 : i32
    %7 = arith.cmpi ne, %6, %c0_i32_3 : i32
    scf.if %7 {
      %c0_19 = arith.constant 0 : index
      %c0_20 = arith.constant 0 : index
      %27 = vector.load %arg18[%c0_19, %c0_20] : memref<128x128xf32, #tpu.memory_space<vmem>>, vector<128x128xf32>
      %c0_21 = arith.constant 0 : index
      %c0_22 = arith.constant 0 : index
      %28 = vector.load %arg5[%c0_21, %c0_22] : memref<128x128xbf16, #tpu.memory_space<vmem>>, vector<128x128xbf16>
      %c0_23 = arith.constant 0 : index
      %c0_24 = arith.constant 0 : index
      %29 = vector.load %arg19[%c0_23, %c0_24] : memref<128x128xf32, #tpu.memory_space<vmem>>, vector<128x128xf32>
      %30 = arith.truncf %29 : vector<128x128xf32> to vector<128x128xbf16>
      %cst_25 = arith.constant dense<0.000000e+00> : vector<128x128xf32>
      %31 = tpu.matmul %28, %30, %cst_25 {dimension_numbers = #tpu.dot_dimension_numbers<[1], [0], [0], [1], [0, 0, 1, 1], [], []>} : vector<128x128xbf16>, vector<128x128xbf16>, vector<128x128xf32> -> vector<128x128xf32>
      %32 = arith.addf %27, %31 : vector<128x128xf32>
      %c0_26 = arith.constant 0 : index
      %c0_27 = arith.constant 0 : index
      %33 = vector.load %arg20[%c0_26, %c0_27] : memref<128x128xf32, #tpu.memory_space<vmem>>, vector<128x128xf32>
      tpu.vector_store %arg20[%c0_26, %c0_27], %32 {strides = array<i32>} : memref<128x128xf32, #tpu.memory_space<vmem>>, vector<128x128xf32>,
      %cst_28 = arith.constant 0.000000e+00 : f32
      %34 = vector.broadcast %cst_28 : f32 to vector<128x128xf32>
      %c0_29 = arith.constant 0 : index
      %c0_30 = arith.constant 0 : index
      %35 = vector.load %arg21[%c0_29, %c0_30] : memref<128x128xf32, #tpu.memory_space<vmem>>, vector<128x128xf32>
      tpu.vector_store %arg21[%c0_29, %c0_30], %34 {strides = array<i32>} : memref<128x128xf32, #tpu.memory_space<vmem>>, vector<128x128xf32>,
    } else {
    }
    %c0 = arith.constant 0 : index
    %c0_4 = arith.constant 0 : index
    %8 = vector.load %arg20[%c0, %c0_4] : memref<128x128xf32, #tpu.memory_space<vmem>>, vector<128x128xf32>
    %9 = arith.truncf %8 : vector<128x128xf32> to vector<128x128xbf16>
    %c0_5 = arith.constant 0 : index
    %c0_6 = arith.constant 0 : index
    %10 = vector.load %arg7[%c0_5, %c0_6] : memref<128x128xbf16, #tpu.memory_space<vmem>>, vector<128x128xbf16>
    %cst = arith.constant dense<0.000000e+00> : vector<128x128xf32>
    %11 = tpu.matmul %10, %9, %cst {dimension_numbers = #tpu.dot_dimension_numbers<[1], [0], [0], [1], [0, 0, 1, 1], [], []>} : vector<128x128xbf16>, vector<128x128xbf16>, vector<128x128xf32> -> vector<128x128xf32>
    %c0_7 = arith.constant 0 : index
    %c0_8 = arith.constant 0 : index
    %c0_9 = arith.constant 0 : index
    %12 = vector.load %arg9[%c0_7, %c0_8, %c0_9] : memref<1x128x128xbf16, #tpu.memory_space<vmem>>, vector<1x128x128xbf16>
    %13 = vector.shape_cast %12 : vector<1x128x128xbf16> to vector<128x128xbf16>
    %14 = arith.extf %13 : vector<128x128xbf16> to vector<128x128xf32>
    %15 = arith.addf %11, %14 : vector<128x128xf32>
    %cst_10 = arith.constant 0.000000e+00 : f32
    %16 = vector.broadcast %cst_10 : f32 to vector<128x128xf32>
    %17 = arith.maximumf %15, %16 : vector<128x128xf32>
    %c0_11 = arith.constant 0 : index
    %c0_12 = arith.constant 0 : index
    %18 = vector.load %arg21[%c0_11, %c0_12] : memref<128x128xf32, #tpu.memory_space<vmem>>, vector<128x128xf32>
    %c0_13 = arith.constant 0 : index
    %c0_14 = arith.constant 0 : index
    %19 = vector.load %arg8[%c0_13, %c0_14] : memref<128x128xbf16, #tpu.memory_space<vmem>>, vector<128x128xbf16>
    %20 = arith.truncf %17 : vector<128x128xf32> to vector<128x128xbf16>
    %cst_15 = arith.constant dense<0.000000e+00> : vector<128x128xf32>
    %21 = tpu.matmul %19, %20, %cst_15 {dimension_numbers = #tpu.dot_dimension_numbers<[1], [0], [0], [1], [0, 0, 1, 1], [], []>} : vector<128x128xbf16>, vector<128x128xbf16>, vector<128x128xf32> -> vector<128x128xf32>
    %22 = arith.addf %18, %21 : vector<128x128xf32>
    %c0_16 = arith.constant 0 : index
    %c0_17 = arith.constant 0 : index
    %23 = vector.load %arg21[%c0_16, %c0_17] : memref<128x128xf32, #tpu.memory_space<vmem>>, vector<128x128xf32>
    tpu.vector_store %arg21[%c0_16, %c0_17], %22 {strides = array<i32>} : memref<128x128xf32, #tpu.memory_space<vmem>>, vector<128x128xf32>,
    %c1_i32 = arith.constant 1 : i32
    %24 = arith.cmpi eq, %arg1, %c1_i32 : i32
    %25 = arith.extui %24 : i1 to i32
    %c0_i32_18 = arith.constant 0 : i32
    %26 = arith.cmpi ne, %25, %c0_i32_18 : i32
    scf.if %26 {
      %27 = arith.index_cast %arg0 : i32 to index
      %28 = memref.load %arg2[%27] : memref<3xf32, #tpu.memory_space<smem>>
      %cst_19 = arith.constant 1.000000e+00 : f32
      %29 = arith.addf %cst_19, %28 : f32
      %30 = vector.broadcast %29 : f32 to vector<128x128xf32>
      %31 = arith.mulf %30, %8 : vector<128x128xf32>
      %c0_20 = arith.constant 0 : index
      %c0_21 = arith.constant 0 : index
      %32 = vector.load %arg21[%c0_20, %c0_21] : memref<128x128xf32, #tpu.memory_space<vmem>>, vector<128x128xf32>
      %33 = arith.addf %31, %32 : vector<128x128xf32>
      %34 = arith.truncf %33 : vector<128x128xf32> to vector<128x128xbf16>
      %c0_22 = arith.constant 0 : index
      %c0_23 = arith.constant 0 : index
      %c0_24 = arith.constant 0 : index
      %35 = vector.load %arg10[%c0_22, %c0_23, %c0_24] : memref<1x128x128xbf16, #tpu.memory_space<vmem>>, vector<1x128x128xbf16>
      %36 = vector.shape_cast %35 : vector<1x128x128xbf16> to vector<128x128xbf16>
      %cst_25 = arith.constant dense<0.000000e+00> : vector<128x128xf32>
      %37 = tpu.matmul %34, %36, %cst_25 {dimension_numbers = #tpu.dot_dimension_numbers<[1], [0], [0], [1], [0, 0, 1, 1], [], []>} : vector<128x128xbf16>, vector<128x128xbf16>, vector<128x128xf32> -> vector<128x128xf32>
      %c0_26 = arith.constant 0 : index
      %c0_27 = arith.constant 0 : index
      %c0_28 = arith.constant 0 : index
      %38 = vector.load %arg11[%c0_26, %c0_27, %c0_28] : memref<1x1x128xf32, #tpu.memory_space<vmem>>, vector<1x1x128xf32>
      %39 = vector.shape_cast %38 : vector<1x1x128xf32> to vector<1x128xf32>
      %40 = vector.broadcast %39 : vector<1x128xf32> to vector<128x128xf32>
      %41 = arith.addf %37, %40 : vector<128x128xf32>
      %cst_29 = arith.constant 0.000000e+00 : f32
      %42 = vector.broadcast %cst_29 : f32 to vector<128x128xf32>
      %43 = arith.maximumf %41, %42 : vector<128x128xf32>
      %44 = arith.truncf %43 : vector<128x128xf32> to vector<128x128xbf16>
      %c0_30 = arith.constant 0 : index
      %c0_31 = arith.constant 0 : index
      %c0_32 = arith.constant 0 : index
      %45 = vector.load %arg12[%c0_30, %c0_31, %c0_32] : memref<1x128x128xbf16, #tpu.memory_space<vmem>>, vector<1x128x128xbf16>
      %46 = vector.shape_cast %45 : vector<1x128x128xbf16> to vector<128x128xbf16>
      %cst_33 = arith.constant dense<0.000000e+00> : vector<128x128xf32>
      %47 = tpu.matmul %44, %46, %cst_33 {dimension_numbers = #tpu.dot_dimension_numbers<[1], [0], [0], [1], [0, 0, 1, 1], [], []>} : vector<128x128xbf16>, vector<128x128xbf16>, vector<128x128xf32> -> vector<128x128xf32>
      %c0_34 = arith.constant 0 : index
      %c0_35 = arith.constant 0 : index
      %c0_36 = arith.constant 0 : index
      %48 = vector.load %arg13[%c0_34, %c0_35, %c0_36] : memref<1x1x128xf32, #tpu.memory_space<vmem>>, vector<1x1x128xf32>
      %49 = vector.shape_cast %48 : vector<1x1x128xf32> to vector<1x128xf32>
      %50 = vector.broadcast %49 : vector<1x128xf32> to vector<128x128xf32>
      %51 = arith.addf %47, %50 : vector<128x128xf32>
      %c2_i32 = arith.constant 2 : i32
      %52 = arith.cmpi eq, %arg0, %c2_i32 : i32
      %53 = arith.extui %52 : i1 to i32
      %c0_i32_37 = arith.constant 0 : i32
      %54 = arith.cmpi ne, %53, %c0_i32_37 : i32
      scf.if %54 {
        %c0_40 = arith.constant 0 : index
        %c0_41 = arith.constant 0 : index
        %58 = vector.load %arg18[%c0_40, %c0_41] : memref<128x128xf32, #tpu.memory_space<vmem>>, vector<128x128xf32>
        tpu.vector_store %arg18[%c0_40, %c0_41], %51 {strides = array<i32>} : memref<128x128xf32, #tpu.memory_space<vmem>>, vector<128x128xf32>,
      } else {
      }
      %c2_i32_38 = arith.constant 2 : i32
      %55 = arith.cmpi slt, %arg0, %c2_i32_38 : i32
      %56 = arith.extui %55 : i1 to i32
      %c0_i32_39 = arith.constant 0 : i32
      %57 = arith.cmpi ne, %56, %c0_i32_39 : i32
      scf.if %57 {
        %cst_40 = arith.constant 0.000000e+00 : f32
        %58 = vector.broadcast %cst_40 : f32 to vector<128x128xf32>
        %59 = arith.maximumf %51, %58 : vector<128x128xf32>
        %c0_41 = arith.constant 0 : index
        %c0_42 = arith.constant 0 : index
        %60 = vector.load %arg18[%c0_41, %c0_42] : memref<128x128xf32, #tpu.memory_space<vmem>>, vector<128x128xf32>
        tpu.vector_store %arg18[%c0_41, %c0_42], %59 {strides = array<i32>} : memref<128x128xf32, #tpu.memory_space<vmem>>, vector<128x128xf32>,
        %c0_43 = arith.constant 0 : index
        %c0_44 = arith.constant 0 : index
        %61 = vector.load %arg6[%c0_43, %c0_44] : memref<128x128xbf16, #tpu.memory_space<vmem>>, vector<128x128xbf16>
        %cst_45 = arith.constant dense<0.000000e+00> : vector<128x128xf32>
        %62 = tpu.matmul %61, %9, %cst_45 {dimension_numbers = #tpu.dot_dimension_numbers<[1], [0], [0], [1], [0, 0, 1, 1], [], []>} : vector<128x128xbf16>, vector<128x128xbf16>, vector<128x128xf32> -> vector<128x128xf32>
        %c0_46 = arith.constant 0 : index
        %c0_47 = arith.constant 0 : index
        %63 = vector.load %arg19[%c0_46, %c0_47] : memref<128x128xf32, #tpu.memory_space<vmem>>, vector<128x128xf32>
        %64 = arith.addf %62, %63 : vector<128x128xf32>
        %65 = arith.truncf %64 : vector<128x128xf32> to vector<128x128xbf16>
        %c0_48 = arith.constant 0 : index
        %c0_49 = arith.constant 0 : index
        %c0_50 = arith.constant 0 : index
        %66 = vector.load %arg14[%c0_48, %c0_49, %c0_50] : memref<1x128x128xbf16, #tpu.memory_space<vmem>>, vector<1x128x128xbf16>
        %67 = vector.shape_cast %66 : vector<1x128x128xbf16> to vector<128x128xbf16>
        %cst_51 = arith.constant dense<0.000000e+00> : vector<128x128xf32>
        %68 = tpu.matmul %65, %67, %cst_51 {dimension_numbers = #tpu.dot_dimension_numbers<[1], [0], [0], [1], [0, 0, 1, 1], [], []>} : vector<128x128xbf16>, vector<128x128xbf16>, vector<128x128xf32> -> vector<128x128xf32>
        %c0_52 = arith.constant 0 : index
        %c0_53 = arith.constant 0 : index
        %c0_54 = arith.constant 0 : index
        %69 = vector.load %arg15[%c0_52, %c0_53, %c0_54] : memref<1x1x128xf32, #tpu.memory_space<vmem>>, vector<1x1x128xf32>
        %70 = vector.shape_cast %69 : vector<1x1x128xf32> to vector<1x128xf32>
        %71 = vector.broadcast %70 : vector<1x128xf32> to vector<128x128xf32>
        %72 = arith.addf %68, %71 : vector<128x128xf32>
        %cst_55 = arith.constant 0.000000e+00 : f32
        %73 = vector.broadcast %cst_55 : f32 to vector<128x128xf32>
        %74 = arith.maximumf %72, %73 : vector<128x128xf32>
        %75 = arith.truncf %74 : vector<128x128xf32> to vector<128x128xbf16>
        %c0_56 = arith.constant 0 : index
        %c0_57 = arith.constant 0 : index
        %c0_58 = arith.constant 0 : index
        %76 = vector.load %arg16[%c0_56, %c0_57, %c0_58] : memref<1x128x128xbf16, #tpu.memory_space<vmem>>, vector<1x128x128xbf16>
        %77 = vector.shape_cast %76 : vector<1x128x128xbf16> to vector<128x128xbf16>
        %cst_59 = arith.constant dense<0.000000e+00> : vector<128x128xf32>
        %78 = tpu.matmul %75, %77, %cst_59 {dimension_numbers = #tpu.dot_dimension_numbers<[1], [0], [0], [1], [0, 0, 1, 1], [], []>} : vector<128x128xbf16>, vector<128x128xbf16>, vector<128x128xf32> -> vector<128x128xf32>
        %c0_60 = arith.constant 0 : index
        %c0_61 = arith.constant 0 : index
        %c0_62 = arith.constant 0 : index
        %79 = vector.load %arg17[%c0_60, %c0_61, %c0_62] : memref<1x1x128xf32, #tpu.memory_space<vmem>>, vector<1x1x128xf32>
        %80 = vector.shape_cast %79 : vector<1x1x128xf32> to vector<1x128xf32>
        %81 = vector.broadcast %80 : vector<1x128xf32> to vector<128x128xf32>
        %82 = arith.addf %78, %81 : vector<128x128xf32>
        %cst_63 = arith.constant 0.000000e+00 : f32
        %83 = vector.broadcast %cst_63 : f32 to vector<128x128xf32>
        %84 = arith.maximumf %82, %83 : vector<128x128xf32>
        %c0_64 = arith.constant 0 : index
        %c0_65 = arith.constant 0 : index
        %85 = vector.load %arg19[%c0_64, %c0_65] : memref<128x128xf32, #tpu.memory_space<vmem>>, vector<128x128xf32>
        tpu.vector_store %arg19[%c0_64, %c0_65], %84 {strides = array<i32>} : memref<128x128xf32, #tpu.memory_space<vmem>>, vector<128x128xf32>,
      } else {
      }
    } else {
    }
    return
  }
  func.func @transform_0(%arg0: i32, %arg1: i32) -> i32 {
    %c0_i32 = arith.constant 0 : i32
    %c0_i32_0 = arith.constant 0 : i32
    return %c0_i32 : i32
  }
  func.func @transform_1(%arg0: i32, %arg1: i32) -> (i32, i32) {
    %c0_i32 = arith.constant 0 : i32
    %c0_i32_0 = arith.constant 0 : i32
    %c0_i32_1 = arith.constant 0 : i32
    return %c0_i32, %c0_i32_0 : i32, i32
  }
  func.func @transform_2(%arg0: i32, %arg1: i32) -> (i32, i32) {
    %c0_i32 = arith.constant 0 : i32
    %c0_i32_0 = arith.constant 0 : i32
    %c0_i32_1 = arith.constant 0 : i32
    return %c0_i32, %c0_i32_0 : i32, i32
  }
  func.func @transform_3(%arg0: i32, %arg1: i32) -> (i32, i32) {
    %c0_i32 = arith.constant 0 : i32
    %c0_i32_0 = arith.constant 0 : i32
    %c0_i32_1 = arith.constant 0 : i32
    return %c0_i32, %c0_i32_0 : i32, i32
  }
  func.func @transform_4(%arg0: i32, %arg1: i32) -> (i32, i32) {
    %c0_i32 = arith.constant 0 : i32
    %c0_i32_0 = arith.constant 0 : i32
    %c0_i32_1 = arith.constant 0 : i32
    return %c0_i32, %c0_i32_0 : i32, i32
  }
  func.func @transform_5(%arg0: i32, %arg1: i32) -> (i32, i32) {
    %c0_i32 = arith.constant 0 : i32
    %c0_i32_0 = arith.constant 0 : i32
    return %arg1, %c0_i32 : i32, i32
  }
  func.func @transform_6(%arg0: i32, %arg1: i32) -> (i32, i32) {
    %c0_i32 = arith.constant 0 : i32
    %c0_i32_0 = arith.constant 0 : i32
    return %c0_i32, %arg1 : i32, i32
  }
  func.func @transform_7(%arg0: i32, %arg1: i32) -> (i32, i32, i32) {
    %c0_i32 = arith.constant 0 : i32
    %c0_i32_0 = arith.constant 0 : i32
    return %arg0, %arg1, %c0_i32 : i32, i32, i32
  }
  func.func @transform_8(%arg0: i32, %arg1: i32) -> (i32, i32, i32) {
    %c0_i32 = arith.constant 0 : i32
    %c0_i32_0 = arith.constant 0 : i32
    %c0_i32_1 = arith.constant 0 : i32
    return %arg0, %c0_i32, %c0_i32_0 : i32, i32, i32
  }
  func.func @transform_9(%arg0: i32, %arg1: i32) -> (i32, i32, i32) {
    %c0_i32 = arith.constant 0 : i32
    %c0_i32_0 = arith.constant 0 : i32
    %c0_i32_1 = arith.constant 0 : i32
    return %arg0, %c0_i32, %c0_i32_0 : i32, i32, i32
  }
  func.func @transform_10(%arg0: i32, %arg1: i32) -> (i32, i32, i32) {
    %c0_i32 = arith.constant 0 : i32
    %c0_i32_0 = arith.constant 0 : i32
    %c0_i32_1 = arith.constant 0 : i32
    return %arg0, %c0_i32, %c0_i32_0 : i32, i32, i32
  }
  func.func @transform_11(%arg0: i32, %arg1: i32) -> (i32, i32, i32) {
    %c0_i32 = arith.constant 0 : i32
    %c0_i32_0 = arith.constant 0 : i32
    %c0_i32_1 = arith.constant 0 : i32
    return %arg0, %c0_i32, %c0_i32_0 : i32, i32, i32
  }
  func.func @transform_12(%arg0: i32, %arg1: i32) -> (i32, i32, i32) {
    %c1_i32 = arith.constant 1 : i32
    %0 = arith.minsi %arg0, %c1_i32 : i32
    %c0_i32 = arith.constant 0 : i32
    %c0_i32_0 = arith.constant 0 : i32
    %c0_i32_1 = arith.constant 0 : i32
    return %0, %c0_i32, %c0_i32_0 : i32, i32, i32
  }
  func.func @transform_13(%arg0: i32, %arg1: i32) -> (i32, i32, i32) {
    %c1_i32 = arith.constant 1 : i32
    %0 = arith.minsi %arg0, %c1_i32 : i32
    %c0_i32 = arith.constant 0 : i32
    %c0_i32_0 = arith.constant 0 : i32
    %c0_i32_1 = arith.constant 0 : i32
    return %0, %c0_i32, %c0_i32_0 : i32, i32, i32
  }
  func.func @transform_14(%arg0: i32, %arg1: i32) -> (i32, i32, i32) {
    %c1_i32 = arith.constant 1 : i32
    %0 = arith.minsi %arg0, %c1_i32 : i32
    %c0_i32 = arith.constant 0 : i32
    %c0_i32_0 = arith.constant 0 : i32
    %c0_i32_1 = arith.constant 0 : i32
    return %0, %c0_i32, %c0_i32_0 : i32, i32, i32
  }
  func.func @transform_15(%arg0: i32, %arg1: i32) -> (i32, i32, i32) {
    %c1_i32 = arith.constant 1 : i32
    %0 = arith.minsi %arg0, %c1_i32 : i32
    %c0_i32 = arith.constant 0 : i32
    %c0_i32_0 = arith.constant 0 : i32
    %c0_i32_1 = arith.constant 0 : i32
    return %0, %c0_i32, %c0_i32_0 : i32, i32, i32
  }
  func.func @transform_16(%arg0: i32, %arg1: i32) -> (i32, i32) {
    %c0_i32 = arith.constant 0 : i32
    %c0_i32_0 = arith.constant 0 : i32
    %c0_i32_1 = arith.constant 0 : i32
    return %c0_i32, %c0_i32_0 : i32, i32
  }
}

</mosaic_0001>

<bundles_post_ra>
// kernel: gin_virtual_node_forward.1
= control target key start
LH: loop header
LB: loop body
LE: loop exit
PB: predicated region body
PF: predicated region fallthrough
CT: control target
= control target key end

     0   :  { %s5926_s0 = inlined_call_operand.hbm [shape: f32[3], index: 0, kind: input, shape index: {}]   ;;  %s5927_s1 = inlined_call_operand.hbm [shape: f32[128,128], index: 1, kind: input, shape index: {}, may-alias: {1,16}]   ;;  %s5928_s2 = inlined_call_operand.hbm [shape: f32[128,128], index: 2, kind: input, shape index: {}]   ;;  %s5929_s3 = inlined_call_operand.hbm [shape: bf16[128,128], index: 3, kind: input, shape index: {}]   ;;  %s5930_s4 = inlined_call_operand.hbm [shape: bf16[128,128], index: 4, kind: input, shape index: {}]   ;;  %s5931_s5 = inlined_call_operand.hbm [shape: bf16[256,128], index: 5, kind: input, shape index: {}]   ;;  %s5932_s6 = inlined_call_operand.hbm [shape: bf16[128,256], index: 6, kind: input, shape index: {}]   ;;  %s5933_s7 = inlined_call_operand.hbm [shape: bf16[3,256,128], index: 7, kind: input, shape index: {}]   ;;  %s5934_s8 = inlined_call_operand.hbm [shape: bf16[3,128,128], index: 8, kind: input, shape index: {}]   ;;  %s5935_s9 = inlined_call_operand.hbm [shape: f32[3,1,128], index: 9, kind: input, shape index: {}]   ;;  %s5936_s10 = inlined_call_operand.hbm [shape: bf16[3,128,128], index: 10, kind: input, shape index: {}]   ;;  %s5937_s11 = inlined_call_operand.hbm [shape: f32[3,1,128], index: 11, kind: input, shape index: {}]   ;;  %s5938_s12 = inlined_call_operand.hbm [shape: bf16[2,128,128], index: 12, kind: input, shape index: {}]   ;;  %s5939_s13 = inlined_call_operand.hbm [shape: f32[2,1,128], index: 13, kind: input, shape index: {}]   ;;  %s5940_s14 = inlined_call_operand.hbm [shape: bf16[2,128,128], index: 14, kind: input, shape index: {}]   ;;  %s5941_s15 = inlined_call_operand.hbm [shape: f32[2,1,128], index: 15, kind: input, shape index: {}]   ;;  %s5942_s16 = inlined_call_operand.hbm [shape: f32[128,128], index: 16, kind: output, shape index: {}, may-alias: {1,16}]  }
   0x1   :  { %6011 = sst [smem:[#allocation58_spill]] %s5926_s0 }
   0x2   :  { %6012 = sst [smem:[#allocation59_spill]] %s5927_s1 }
   0x3   :  { %6013 = sst [smem:[#allocation60_spill]] %s5928_s2 }
   0x4   :  { %6014 = sst [smem:[#allocation61_spill]] %s5929_s3 }
   0x5   :  { %6015 = sst [smem:[#allocation62_spill]] %s5930_s4 }
   0x6   :  { %6016 = sst [smem:[#allocation63_spill]] %s5931_s5 }
   0x7   :  { %6017 = sst [smem:[#allocation64_spill]] %s5932_s6 }
   0x8   :  { %6018 = sst [smem:[#allocation65_spill]] %s5933_s7 }
   0x9   :  { %6019 = sst [smem:[#allocation66_spill]] %s5934_s8 }
   0xa   :  { %6020 = sst [smem:[#allocation67_spill]] %s5935_s9 }
   0xb   :  { %6021 = sst [smem:[#allocation68_spill]] %s5936_s10 }
   0xc   :  { %6022 = sst [smem:[#allocation69_spill]] %s5937_s11 }
   0xd   :  { %6023 = sst [smem:[#allocation70_spill]] %s5938_s12 }
   0xe   :  { %6024 = sst [smem:[#allocation71_spill]] %s5939_s13 }
   0xf   :  { %6025 = sst [smem:[#allocation72_spill]] %s5940_s14 }
  0x10   :  { %6026 = sst [smem:[#allocation73_spill]] %s5941_s15 }
  0x11   :  { %6027 = sst [smem:[#allocation74_spill]] %s5942_s16 }
  0x12   :  { %21 = vsyncpa [#allocation8], 0 }
  0x13   :  { %22 = vsyncpa [#allocation6], 0 }
  0x14   :  { %23 = vsyncpa [#allocation11], 0 }
  0x15   :  { %24 = vsyncpa [#allocation14], 0 }
  0x16   :  { %25 = vsyncpa [#allocation7], 0  ;;  %s4798_s21 = smov 0   ;;  %s4800_s22 = smov 0  }
  0x17   :  { %s4802_s23 = smov 0   ;;  %s4804_s24 = smov 0  }
  0x18   :  { %s4806_s25 = smov 0   ;;  %s4808_s26 = smov 0  }
  0x19   :  { %s4810_s27 = smov 0   ;;  %s4812_s28 = smov 0  }
  0x1a   :  { %s4814_s29 = smov 0   ;;  %s4816_s30 = smov 0  }
  0x1b   :  { %s4818_s0 = smov 0   ;;  %s4820_s17 = smov 0  }
  0x1c   :  { %s4822_s18 = smov 0   ;;  %s4824_s19 = smov 0  }
  0x1d   :  { %s4826_s20 = smov 0   ;;  %s4828_s16 = smov 0  }
  0x1e   :  { %s4830_s15 = smov 0  }
  0x1f LB: > { %6028 = sst [smem:[#allocation36_spill]] %s4623_s21  ;;  %s4689_s4 = smov [#allocation9]   ;;  %s4687_s15 = sphi %s4830_s15, %s31_s15   ;;  %s4683_s16 = sphi %s4828_s16, %s6163_s16   ;;  %s4679_s20 = sphi %s4826_s20, %s6162_s20   ;;  %s4675_s19 = sphi %s4824_s19, %s6169_s19   ;;  %s4671_s18 = sphi %s4822_s18, %s6160_s18   ;;  %s4667_s17 = sphi %s4820_s17, %s6159_s17   ;;  %s4663_s0 = sphi %s4818_s0, %s6158_s0   ;;  %s4659_s30 = sphi %s4816_s30, %s6168_s30   ;;  %s4655_s29 = sphi %s4814_s29, %s6156_s29   ;;  %s4651_s28 = sphi %s4812_s28, %s6167_s28   ;;  %s4647_s27 = sphi %s4810_s27, %s6166_s27   ;;  %s4643_s26 = sphi %s4808_s26, %s6154_s26   ;;  %s4639_s25 = sphi %s4806_s25, %s6165_s25   ;;  %s4635_s24 = sphi %s4804_s24, %s6164_s24   ;;  %s4631_s23 = sphi %s4802_s23, %s6152_s23   ;;  %s4627_s22 = sphi %s4800_s22, %s6151_s22   ;;  %s4623_s21 = sphi %s4798_s21, %s6150_s21  }
  0x20   : > { %6029 = sst [smem:[#allocation37_spill]] %s4627_s22  ;;  %s499_s3 = sshll.u32 %s4689_s4, 4  ;;  %s500_s3 = int_to_ptr.vmem [resolvable:$true] %s499_s3 }
  0x21   : > { %6030 = sst [smem:[#allocation38_spill]] %s4631_s23  ;;  %s4884_s2 = sadd.s32 4294967295, %s4687_s15  }
  0x22   : > { %6031 = sst [smem:[#allocation39_spill]] %s4643_s26  ;;  %p3133_p0 = scmp.ge.s32.totalorder %s4687_s15, 1 }
  0x23   : > { %6032 = sst [smem:[#allocation40_spill]] %s4655_s29  ;;  %p5956_p1 = scmp.eq.s32.totalorder %s4884_s2, 0 }
  0x24   : > { %6033 = sst [smem:[#allocation41_spill]] %s4663_s0  ;;  %p478_p2 = scmp.lt.s32.totalorder %s4687_s15, 7 }
  0x25   : > { %6034 = sst [smem:[#allocation42_spill]] %s4667_s17  ;;  %s6044_s1 = sld [smem:[#allocation59_spill]] }
  0x26   : > { %6035 = sst [smem:[#allocation43_spill]] %s4671_s18  ;;  %p4889_p3 = pnand %p3133_p0, %p478_p2 }
  0x27   : > { %6036 = sst [smem:[#allocation44_spill]] %s4675_s19 }
  0x28   : > { %6037 = sst [smem:[#allocation45_spill]] %s4679_s20  ;;  %p3760_p4 = pneg %p4889_p3 }
  0x29   : > { %6038 = sst [smem:[#allocation46_spill]] %s4683_s16 }
  0x2a   : > { %6039 = sst [smem:[#allocation47_spill]] %s4687_s15  ;;  %p4897_p5 = pnand %p3760_p4, %p5956_p1 }
  0x2b   : > { %s6040_s18 = scalar_select %p4889_p3, 1, 0 }
  0x2c   : > { %s6042_s19 = scalar_select %p4897_p5, 1, 0 }
  0x2d   : > { %6041 = sst [smem:[#allocation48_spill]] %s6040_s18  ;;  %s4036_s13 = scalar_lea.hbm %s6044_s1, 2048 }
  0x2e   : > { %6043 = sst [smem:[#allocation49_spill]] %s6042_s19  ;;  %p4037_p6 = scmp.ne.s32.totalorder %s6044_s1, %s4036_s13 }
  0x2f   : > { %p4909_p7 = pneg %p4897_p5  ;;  %p4043_p10 = scmp.lt.u32.totalorder %s4036_s13, %s6044_s1 }
  0x31   : > { %s6045_s22 = scalar_select %p4909_p7, 1, 0 }
  0x32   : > { %p4039_p8 = pnand %p4909_p7, %p4037_p6 }
  0x33   : > { %6046 = sst [smem:[#allocation50_spill]] %s6045_s22 }
  0x34   : > { %p4040_p9 = pneg %p4039_p8 }
  0x36   : > { %p4045_p11 = pnand %p4043_p10, %p4040_p9 }
  0x38   : > { %4048 = shalt.err (!%p4045_p11)
}
  0x39   : > { %s4049_s14 = scalar_lea.vmem %s500_s3, 2048  ;;  %p4057_p2 = scmp.lt.s32.totalorder %s500_s3, %s500_s3 }
  0x3a   : > { %p4050_p12 = scmp.ne.s32.totalorder %s500_s3, %s4049_s14  ;;  %p4058_p4 = scmp.lt.s32.totalorder %s4049_s14, %s4049_s14 }
  0x3c   : > { %p4052_p13 = pnand %p4050_p12, %p4909_p7  ;;  %p4059_p1 = por %p4058_p4, %p4057_p2 }
  0x3e   : > { %p4053_p0 = pneg %p4052_p13 }
  0x40   : > { %p4060_p3 = pnand %p4059_p1, %p4053_p0 }
  0x42   : > { %4063 = shalt.err (!%p4060_p3)
}
  0x43   : > { %s5959_s12 = smov 128   ;;  %s5958_s13 = smov 8  }
  0x44   : > { %3766 = dma.hbm_to_vmem [thread:$0]  (!%p4897_p5), %s6044_s1, 2048, %s500_s3, [#allocation6], %s5959_s12, %s5959_s12, %s5958_s13  }
  0x45   : > { %s40_s18 = sadd.s32 1, %s4679_s20  ;;  %s155_s14 = sadd.s32 1, %s4667_s17 }
  0x46   : > { %p4929_p1 = scmp.ge.s32.totalorder %s40_s18, 2  ;;  %p162_p3 = scmp.ne.s32.totalorder %s4667_s17, %s4663_s0 }
  0x47   : > { %p5974_p6 = scmp.eq.s32.totalorder %s4687_s15, 0  ;;  %p168_p9 = scmp.ne.s32.totalorder %s4663_s0, %s4659_s30 }
  0x48   : > { %s6171_s18 = smov (%p4929_p1, %s40_s18), 0  ;;  %p6050_p11 = scmp.eq.s32.totalorder %s4884_s2, 0 }
  0x49   : > { %6048 = sst [smem:[#allocation51_spill]] %s6171_s18  ;;  %p4943_p8 = por %p5974_p6, %p162_p3 }
  0x4a   : > { %s4951_s3 = ssub.s32 %s4679_s20, %s6171_s18  ;;  %p4956_p12 = por %p6050_p11, %p168_p9 }
  0x4b   : > { %p153_p10 = scmp.eq.s32.totalorder %s4951_s3, 0  ;;  %p5973_p13 = scmp.lt.s32.totalorder %s4687_s15, 6 }
  0x4c   : > { %s6051_s23 = scalar_select %p4956_p12, 1, 0 }
  0x4d   : > { %s4962_s13 = scalar_select %p153_p10, %s4667_s17, %s155_s14  }
  0x4e   : > { %6052 = sst [smem:[#allocation52_spill]] %s6051_s23  ;;  %s552_s12 = sand.u32 1, %s4687_s15  }
  0x4f   : > { %6053 = sst [smem:[#allocation53_spill]] %s4962_s13  ;;  %s554_s1 = sand.u32 1, %s4667_s17  }
  0x50   : > { %s3140_s19 = sshll.u32 %s554_s1, 6  ;;  %s3254_s22 = sshll.u32 %s4679_s20, 10 }
  0x51   : > { %s6054_s5 = sld [smem:[#allocation63_spill]]  ;;  %s556_s18 = scalar_lea.vmem [#allocation15], %s3140_s19 }
  0x52   : > { %s563_s0 = sshll.u32 %s556_s18, 4  ;;  %p4978_p0 = pnand %p5973_p13, %p4943_p8  ;;  %s4972_s0 = int_to_ptr.vmem [resolvable:$true] %s563_s0 }
  0x53   : > { %s3144_s1 = sshll.u32 %s4679_s20, 6  ;;  %s577_s10 = scalar_lea.vmem [#allocation16], %s3140_s19 }
  0x54   : > { %s4983_s11 = sshll.u32 %s577_s10, 4  ;;  %p4066_p4 = pneg %p4978_p0  ;;  %s5017_s11 = int_to_ptr.vmem [resolvable:$true] %s4983_s11 }
  0x57   : > { %s4970_s30 = scalar_lea.hbm %s6054_s5, %s3254_s22  ;;  %s4985_s22 = scalar_lea.sflag [#allocation6], %s552_s12 }
  0x58   : > { %s4064_s13 = scalar_lea.hbm %s4970_s30, 1024  ;;  %s4069_s17 = scalar_lea.hbm %s6054_s5, 2048 }
  0x59   : > { %p4065_p2 = scmp.ne.s32.totalorder %s4970_s30, %s4064_s13  ;;  %p4070_p8 = scmp.lt.u32.totalorder %s4970_s30, %s6054_s5 }
  0x5a   : > { %p4071_p10 = scmp.lt.u32.totalorder %s4069_s17, %s4064_s13  ;;  %p4073_p13 = scmp.lt.u32.totalorder %s4064_s13, %s4970_s30 }
  0x5b   : > { %p4067_p3 = pnand %p4066_p4, %p4065_p2 }
  0x5c   : > { %p4072_p11 = por %p4071_p10, %p4070_p8 }
  0x5d   : > { %p4068_p9 = pneg %p4067_p3 }
  0x5e   : > { %p4074_p6 = por %p4073_p13, %p4072_p11 }
  0x60   : > { %p4075_p12 = pnand %p4074_p6, %p4068_p9 }
  0x62   : > { %4078 = shalt.err (!%p4075_p12)
}
  0x63   : > { %s4079_s19 = scalar_lea.vmem %s4972_s0, 1024  ;;  %s4692_s12 = smov [#allocation15]  }
  0x64   : > { %p4080_p2 = scmp.ne.s32.totalorder %s4972_s0, %s4079_s19  ;;  %s4084_s10 = sshll.u32 %s4692_s12, 4  ;;  %s4085_s10 = int_to_ptr.vmem [resolvable:$false] %s4084_s10 }
  0x65   : > { %s4086_s9 = scalar_lea.vmem %s4085_s10, 2048  ;;  %p4087_p7 = scmp.lt.s32.totalorder %s4972_s0, %s4085_s10 }
  0x66   : > { %p4082_p3 = pnand %p4080_p2, %p4066_p4  ;;  %p4088_p8 = scmp.lt.s32.totalorder %s4086_s9, %s4079_s19 }
  0x68   : > { %p4083_p5 = pneg %p4082_p3  ;;  %p4089_p10 = por %p4088_p8, %p4087_p7 }
  0x6a   : > { %p4090_p13 = pnand %p4089_p10, %p4083_p5 }
  0x6c   : > { %4093 = shalt.err (!%p4090_p13)
}
  0x6d   : > { %s5980_s17 = smov 64   ;;  %s5982_s13 = smov 4  }
  0x6e   : > { %3779 = dma.hbm_to_vmem [thread:$0]  (!%p4978_p0), %s4970_s30, 1024, %s4972_s0, %s4985_s22, %s5980_s17, %s5980_s17, %s5982_s13  }
  0x6f   : > { %s6056_s6 = sld [smem:[#allocation64_spill]] }
  0x75   : > { %s5024_s21 = scalar_lea.hbm %s6056_s6, %s3144_s1  ;;  %s4099_s30 = scalar_lea.hbm %s6056_s6, 2048 }
  0x76   : > { %s4094_s19 = scalar_lea.hbm %s5024_s21, 1024  ;;  %p4100_p12 = scmp.lt.u32.totalorder %s5024_s21, %s6056_s6 }
  0x77   : > { %p4095_p5 = scmp.ne.s32.totalorder %s5024_s21, %s4094_s19  ;;  %p4101_p9 = scmp.lt.u32.totalorder %s4099_s30, %s4094_s19 }
  0x78   : > { %p4103_p2 = scmp.lt.u32.totalorder %s4094_s19, %s5024_s21 }
  0x79   : > { %p4097_p7 = pnand %p4095_p5, %p4066_p4  ;;  %p4102_p11 = por %p4101_p9, %p4100_p12 }
  0x7b   : > { %p4098_p6 = pneg %p4097_p7  ;;  %p4104_p3 = por %p4103_p2, %p4102_p11 }
  0x7d   : > { %p4105_p8 = pnand %p4104_p3, %p4098_p6 }
  0x7f   : > { %4108 = shalt.err (!%p4105_p8)
}
  0x80   : > { %s4109_s1 = scalar_lea.vmem %s5017_s11, 1024  ;;  %s4695_s23 = smov [#allocation16]  }
  0x81   : > { %p4110_p10 = scmp.ne.s32.totalorder %s5017_s11, %s4109_s1  ;;  %s4114_s18 = sshll.u32 %s4695_s23, 4  ;;  %s4115_s18 = int_to_ptr.vmem [resolvable:$false] %s4114_s18 }
  0x82   : > { %s4116_s12 = scalar_lea.vmem %s4115_s18, 2048  ;;  %p4117_p7 = scmp.lt.s32.totalorder %s5017_s11, %s4115_s18 }
  0x83   : > { %p4112_p13 = pnand %p4110_p10, %p4066_p4  ;;  %p4118_p12 = scmp.lt.s32.totalorder %s4116_s12, %s4109_s1 }
  0x85   : > { %p4113_p5 = pneg %p4112_p13  ;;  %p4119_p9 = por %p4118_p12, %p4117_p7 }
  0x87   : > { %p4120_p11 = pnand %p4119_p9, %p4113_p5 }
  0x89   : > { %4123 = shalt.err (!%p4120_p11)
}
  0x8a   : > { %s6057_s19 = smov 128   ;;  %s43_s14 = sadd.s32 1, %s4683_s16 }
  0x8b   : > { %3782 = dma.hbm_to_vmem [thread:$0]  (!%p4978_p0), %s5024_s21, 1024, %s5017_s11, %s4985_s22, %s6057_s19, %s5980_s17, %s5982_s13  }
  0x8c   : > { %s209_s0 = sadd.s32 1, %s4655_s29  ;;  %s6173_s14 = smov (!%p4929_p1, %s43_s14), %s4683_s16 }
  0x8d   : > { %p216_p4 = scmp.ne.s32.totalorder %s4655_s29, %s4651_s28  ;;  %p222_p6 = scmp.ne.s32.totalorder %s4651_s28, %s4647_s27 }
  0x8e   : > { %p45_p2 = scmp.ge.s32.totalorder %s6173_s14, 3  ;;  %s595_s30 = sand.u32 1, %s4655_s29  }
  0x8f   : > { %p6058_p3 = scmp.eq.s32.totalorder %s4687_s15, 0  ;;  %p6060_p10 = scmp.eq.s32.totalorder %s4884_s2, 0 }
  0x90   : > { %s6175_s14 = smov (%p45_p2, %s6173_s14), 0  ;;  %s3145_s4 = sshll.u32 %s595_s30, 6 }
  0x91   : > { %p5065_p8 = por %p216_p4, %p6058_p3  ;;  %p5071_p13 = por %p222_p6, %p6060_p10 }
  0x92   : > { %6062 = sst [smem:[#allocation54_spill]] %s6175_s14  ;;  %s3146_s27 = sshll.u32 %s4679_s20, 4 }
  0x93   : > { %s6061_s9 = scalar_select %p5071_p13, 1, 0 }
  0x94   : > { %s5080_s11 = ssub.s32 %s4683_s16, %s6175_s14  ;;  %s3147_s1 = sshll.u32 %s4683_s16, 5 }
  0x95   : > { %s206_s21 = sor.u32 %s5080_s11, %s4951_s3  ;;  %s603_s23 = sadd.s32 %s3147_s1, %s3146_s27 }
  0x96   : > { %p207_p0 = scmp.eq.s32.totalorder %s206_s21, 0  ;;  %s597_s18 = scalar_lea.vmem [#allocation17], %s3145_s4 }
  0x97   : > { %s606_s12 = sshll.u32 %s597_s18, 4  ;;  %s3148_s13 = sshll.u32 %s603_s23, 6  ;;  %s5089_s12 = int_to_ptr.vmem [resolvable:$true] %s606_s12 }
  0x98   : > { %s5087_s17 = scalar_select %p207_p0, %s4655_s29, %s209_s0  }
  0x99   : > { %s6064_s7 = sld [smem:[#allocation65_spill]]  ;;  %p6065_p5 = scmp.lt.s32.totalorder %s4687_s15, 6 }
  0x9a   : > { %6063 = sst [smem:[#allocation55_spill]] %s5087_s17 }
  0x9b   : > { %p5100_p7 = pnand %p6065_p5, %p5065_p8 }
  0x9d   : > { %p4126_p9 = pneg %p5100_p7 }
  0x9f   : > { %s5094_s30 = scalar_lea.hbm %s6064_s7, %s3148_s13  ;;  %s4129_s13 = scalar_lea.hbm %s6064_s7, 6144 }
  0xa0   : > { %s4124_s0 = scalar_lea.hbm %s5094_s30, 1024  ;;  %p4130_p6 = scmp.lt.u32.totalorder %s5094_s30, %s6064_s7 }
  0xa1   : > { %p4125_p12 = scmp.ne.s32.totalorder %s5094_s30, %s4124_s0  ;;  %p4131_p2 = scmp.lt.u32.totalorder %s4129_s13, %s4124_s0 }
  0xa2   : > { %p4133_p8 = scmp.lt.u32.totalorder %s4124_s0, %s5094_s30 }
  0xa3   : > { %p4127_p11 = pnand %p4126_p9, %p4125_p12  ;;  %p4132_p3 = por %p4131_p2, %p4130_p6 }
  0xa5   : > { %p4128_p4 = pneg %p4127_p11  ;;  %p4134_p10 = por %p4133_p8, %p4132_p3 }
  0xa7   : > { %p4135_p0 = pnand %p4134_p10, %p4128_p4 }
  0xa9   : > { %4138 = shalt.err (!%p4135_p0)
}
  0xaa   : > { %s4139_s27 = scalar_lea.vmem %s5089_s12, 1024  ;;  %s4696_s21 = smov [#allocation17]  }
  0xab   : > { %p4140_p5 = scmp.ne.s32.totalorder %s5089_s12, %s4139_s27  ;;  %s4144_s1 = sshll.u32 %s4696_s21, 4  ;;  %s4145_s1 = int_to_ptr.vmem [resolvable:$false] %s4144_s1 }
  0xac   : > { %s4146_s23 = scalar_lea.vmem %s4145_s1, 2048  ;;  %p4147_p1 = scmp.lt.s32.totalorder %s5089_s12, %s4145_s1 }
  0xad   : > { %p4142_p12 = pnand %p4140_p5, %p4126_p9  ;;  %p4148_p6 = scmp.lt.s32.totalorder %s4146_s23, %s4139_s27 }
  0xaf   : > { %p4143_p11 = pneg %p4142_p12  ;;  %p4149_p2 = por %p4148_p6, %p4147_p1 }
  0xb1   : > { %p4150_p3 = pnand %p4149_p2, %p4143_p11 }
  0xb3   : > { %4153 = shalt.err (!%p4150_p3)
}
  0xb4   : > { %s6067_s18 = smov 4   ;;  %s6068_s0 = smov 64  }
  0xb5   : > { %3785 = dma.hbm_to_vmem [thread:$0]  (!%p5100_p7), %s5094_s30, 1024, %s5089_s12, %s4985_s22, %s6068_s0, %s6068_s0, %s6067_s18  }
  0xb6   : > { %s235_s3 = sadd.s32 1, %s4643_s26  ;;  %p6069_p1 = scmp.eq.s32.totalorder %s5080_s11, 0 }
  0xb7   : > { %p242_p9 = scmp.ne.s32.totalorder %s4643_s26, %s4639_s25  ;;  %p248_p4 = scmp.ne.s32.totalorder %s4639_s25, %s4635_s24 }
  0xb8   : > { %s5137_s5 = scalar_select %p6069_p1, %s4643_s26, %s235_s3  }
  0xb9   : > { %s5144_s6 = sand.u32 1, %s4643_s26   ;;  %s5984_s13 = sshll.u32 %s4683_s16, 10 }
  0xba   : > { %6070 = sst [smem:[#allocation56_spill]] %s5137_s5  ;;  %p6071_p8 = scmp.eq.s32.totalorder %s4687_s15, 0 }
  0xbb   : > { %p6072_p0 = scmp.eq.s32.totalorder %s4884_s2, 0  ;;  %s5985_s4 = sshll.u32 %s5144_s6, 6 }
  0xbc   : > { %p244_p10 = por %p242_p9, %p6071_p8  ;;  %s6074_s8 = sld [smem:[#allocation66_spill]] }
  0xbd   : > { %p5151_p5 = por %p248_p4, %p6072_p0  ;;  %p6075_p7 = scmp.lt.s32.totalorder %s4687_s15, 6 }
  0xbe   : > { %s620_s27 = scalar_lea.vmem [#allocation18], %s5985_s4 }
  0xbf   : > { %s6073_s10 = scalar_select %p5151_p5, 1, 0 }
  0xc0   : > { %p5165_p12 = pnand %p6075_p7, %p244_p10  ;;  %s627_s21 = sshll.u32 %s620_s27, 4  ;;  %s5171_s21 = int_to_ptr.vmem [resolvable:$true] %s627_s21 }
  0xc2   : > { %s5161_s30 = scalar_lea.hbm %s6074_s8, %s5984_s13  ;;  %p5177_p6 = pneg %p5165_p12 }
  0xc3   : > { %s6076_s24 = scalar_select %p5165_p12, 1, 0 }
  0xc4   : > { %s4154_s1 = scalar_lea.hbm %s5161_s30, 1024  ;;  %s4159_s11 = scalar_lea.hbm %s6074_s8, 3072 }
  0xc5   : > { %p4155_p11 = scmp.ne.s32.totalorder %s5161_s30, %s4154_s1  ;;  %p4160_p1 = scmp.lt.u32.totalorder %s5161_s30, %s6074_s8 }
  0xc6   : > { %p4161_p9 = scmp.lt.u32.totalorder %s4159_s11, %s4154_s1  ;;  %p4163_p8 = scmp.lt.u32.totalorder %s4154_s1, %s5161_s30 }
  0xc7   : > { %p4157_p2 = pnand %p5177_p6, %p4155_p11 }
  0xc8   : > { %p4162_p4 = por %p4161_p9, %p4160_p1 }
  0xc9   : > { %p4158_p3 = pneg %p4157_p2 }
  0xca   : > { %p4164_p10 = por %p4163_p8, %p4162_p4 }
  0xcc   : > { %p4165_p0 = pnand %p4164_p10, %p4158_p3 }
  0xce   : > { %4168 = shalt.err (!%p4165_p0)
}
  0xcf   : > { %s4169_s27 = scalar_lea.vmem %s5171_s21, 1024  ;;  %s4697_s3 = smov [#allocation18]  }
  0xd0   : > { %p4170_p7 = scmp.ne.s32.totalorder %s5171_s21, %s4169_s27  ;;  %s4174_s12 = sshll.u32 %s4697_s3, 4  ;;  %s4175_s12 = int_to_ptr.vmem [resolvable:$false] %s4174_s12 }
  0xd1   : > { %s4176_s13 = scalar_lea.vmem %s4175_s12, 2048  ;;  %p4177_p5 = scmp.lt.s32.totalorder %s5171_s21, %s4175_s12 }
  0xd2   : > { %p4172_p11 = pnand %p4170_p7, %p5177_p6  ;;  %p4178_p13 = scmp.lt.s32.totalorder %s4176_s13, %s4169_s27 }
  0xd4   : > { %p4173_p2 = pneg %p4172_p11  ;;  %p4179_p1 = por %p4178_p13, %p4177_p5 }
  0xd6   : > { %p4180_p9 = pnand %p4179_p1, %p4173_p2 }
  0xd8   : > { %4183 = shalt.err (!%p4180_p9)
}
  0xd9   : > { %3788 = dma.hbm_to_vmem [thread:$0]  (!%p5165_p12), %s5161_s30, 1024, %s5171_s21, %s4985_s22, %s6068_s0, %s6068_s0, %s6067_s18  }
  0xda   : > { %s3152_s4 = sshll.u32 %s4683_s16, 4  ;;  %s640_s1 = scalar_lea.vmem [#allocation19], %s5144_s6 }
  0xdb   : > { %s647_s11 = sshll.u32 %s640_s1, 4  ;;  %s6078_s12 = sld [smem:[#allocation67_spill]]  ;;  %s648_s11 = int_to_ptr.vmem [resolvable:$true] %s647_s11 }
  0xe1   : > { %s645_s13 = scalar_lea.hbm %s6078_s12, %s3152_s4  ;;  %s4189_s17 = scalar_lea.hbm %s6078_s12, 48 }
  0xe2   : > { %s4184_s7 = scalar_lea.hbm %s645_s13, 16  ;;  %p4190_p4 = scmp.lt.u32.totalorder %s645_s13, %s6078_s12 }
  0xe3   : > { %p4185_p13 = scmp.ne.s32.totalorder %s645_s13, %s4184_s7  ;;  %p4191_p8 = scmp.lt.u32.totalorder %s4189_s17, %s4184_s7 }
  0xe4   : > { %p4193_p0 = scmp.lt.u32.totalorder %s4184_s7, %s645_s13 }
  0xe5   : > { %p4187_p5 = pnand %p4185_p13, %p5177_p6  ;;  %p4192_p10 = por %p4191_p8, %p4190_p4 }
  0xe7   : > { %p4188_p3 = pneg %p4187_p5  ;;  %p4194_p7 = por %p4193_p0, %p4192_p10 }
  0xe9   : > { %p4195_p11 = pnand %p4194_p7, %p4188_p3 }
  0xeb   : > { %4198 = shalt.err (!%p4195_p11)
}
  0xec   : > { %s4199_s21 = scalar_lea.vmem %s648_s11, 16  ;;  %s4698_s1 = smov [#allocation19]  }
  0xed   : > { %p4200_p2 = scmp.ne.s32.totalorder %s648_s11, %s4199_s21  ;;  %s4204_s27 = sshll.u32 %s4698_s1, 4  ;;  %s4205_s27 = int_to_ptr.vmem [resolvable:$false] %s4204_s27 }
  0xee   : > { %s4206_s8 = scalar_lea.vmem %s4205_s27, 32  ;;  %p4207_p13 = scmp.lt.s32.totalorder %s648_s11, %s4205_s27 }
  0xef   : > { %p4202_p1 = pnand %p4200_p2, %p5177_p6  ;;  %p4208_p5 = scmp.lt.s32.totalorder %s4206_s8, %s4199_s21 }
  0xf1   : > { %p4203_p9 = pneg %p4202_p1  ;;  %p4209_p12 = por %p4208_p5, %p4207_p13 }
  0xf3   : > { %p4210_p4 = pnand %p4209_p12, %p4203_p9 }
  0xf5   : > { %4213 = shalt.err (!%p4210_p4)
}
  0xf6   : > { %p6079_p8 = scmp.ne.s32.totalorder %s6076_s24, 0  ;;  %s6080_s7 = sshll.u32 %s4683_s16, 10 }
  0xf7   : > { %s6081_s17 = sld [smem:[#allocation68_spill]]  ;;  %s6083_s1 = sshll.u32 %s5144_s6, 6 }
  0xf8   : > { %3791 = dma.hbm_to_vmem [thread:$0]  (!%p6079_p8), %s645_s13, 16, %s648_s11, %s4985_s22  }
  0xf9   : > { %s658_s21 = scalar_lea.vmem [#allocation20], %s6083_s1  ;;  %s6084_s5 = sld [smem:[#allocation69_spill]] }
  0xfa   : > { %s665_s27 = sshll.u32 %s658_s21, 4  ;;  %s5233_s27 = int_to_ptr.vmem [resolvable:$true] %s665_s27 }
  0xfd   : > { %s6082_s3 = smov %s6081_s17  ;;  %s5229_s30 = scalar_lea.hbm %s6081_s17, %s6080_s7 }
  0xfe   : > { %s4214_s13 = scalar_lea.hbm %s5229_s30, 1024  ;;  %s4219_s20 = scalar_lea.hbm %s6082_s3, 3072 }
  0xff   : > { %s5240_s11 = scalar_lea.hbm %s6084_s5, %s3152_s4  ;;  %p4215_p12 = scmp.ne.s32.totalorder %s5229_s30, %s4214_s13 }
 0x100   : > { %p4220_p0 = scmp.lt.u32.totalorder %s5229_s30, %s6082_s3  ;;  %p4221_p7 = scmp.lt.u32.totalorder %s4219_s20, %s4214_s13 }
 0x101   : > { %p4217_p3 = pnand %p4215_p12, %p5177_p6  ;;  %p4223_p2 = scmp.lt.u32.totalorder %s4214_s13, %s5229_s30 }
 0x102   : > { %p4222_p11 = por %p4221_p7, %p4220_p0 }
 0x103   : > { %p4218_p10 = pneg %p4217_p3 }
 0x104   : > { %p4224_p1 = por %p4223_p2, %p4222_p11 }
 0x106   : > { %p4225_p9 = pnand %p4224_p1, %p4218_p10 }
 0x108   : > { %4228 = shalt.err (!%p4225_p9)
}
 0x109   : > { %s4229_s4 = scalar_lea.vmem %s5233_s27, 1024  ;;  %s4699_s12 = smov [#allocation20]  }
 0x10a   : > { %p4230_p13 = scmp.ne.s32.totalorder %s5233_s27, %s4229_s4  ;;  %s4234_s21 = sshll.u32 %s4699_s12, 4  ;;  %s4235_s21 = int_to_ptr.vmem [resolvable:$false] %s4234_s21 }
 0x10b   : > { %s4236_s8 = scalar_lea.vmem %s4235_s21, 2048  ;;  %p4237_p12 = scmp.lt.s32.totalorder %s5233_s27, %s4235_s21 }
 0x10c   : > { %p4232_p5 = pnand %p4230_p13, %p5177_p6  ;;  %p4238_p3 = scmp.lt.s32.totalorder %s4236_s8, %s4229_s4 }
 0x10e   : > { %p4233_p4 = pneg %p4232_p5  ;;  %p4239_p0 = por %p4238_p3, %p4237_p12 }
 0x110   : > { %p4240_p7 = pnand %p4239_p0, %p4233_p4 }
 0x112   : > { %4243 = shalt.err (!%p4240_p7)
}
 0x113   : > { %3794 = dma.hbm_to_vmem [thread:$0]  (!%p6079_p8), %s5229_s30, 1024, %s5233_s27, %s4985_s22, %s6068_s0, %s6068_s0, %s6067_s18  }
 0x114   : > { %s678_s13 = scalar_lea.vmem [#allocation21], %s5144_s6  ;;  %s4244_s29 = scalar_lea.hbm %s5240_s11, 16 }
 0x115   : > { %s685_s7 = sshll.u32 %s678_s13, 4  ;;  %p4245_p10 = scmp.ne.s32.totalorder %s5240_s11, %s4244_s29  ;;  %s686_s7 = int_to_ptr.vmem [resolvable:$true] %s685_s7 }
 0x116   : > { %s4249_s1 = scalar_lea.hbm %s6084_s5, 48  ;;  %p4250_p1 = scmp.lt.u32.totalorder %s5240_s11, %s6084_s5 }
 0x117   : > { %p4247_p11 = pnand %p4245_p10, %p5177_p6  ;;  %p4251_p9 = scmp.lt.u32.totalorder %s4249_s1, %s4244_s29 }
 0x118   : > { %p4253_p5 = scmp.lt.u32.totalorder %s4244_s29, %s5240_s11 }
 0x119   : > { %p4248_p2 = pneg %p4247_p11  ;;  %p4252_p13 = por %p4251_p9, %p4250_p1 }
 0x11b   : > { %p4254_p4 = por %p4253_p5, %p4252_p13 }
 0x11d   : > { %p4255_p12 = pnand %p4254_p4, %p4248_p2 }
 0x11f   : > { %4258 = shalt.err (!%p4255_p12)
}
 0x120   : > { %s4259_s6 = scalar_lea.vmem %s686_s7, 16  ;;  %s4700_s30 = smov [#allocation21]  }
 0x121   : > { %p4260_p3 = scmp.ne.s32.totalorder %s686_s7, %s4259_s6  ;;  %s4264_s27 = sshll.u32 %s4700_s30, 4  ;;  %s4265_s27 = int_to_ptr.vmem [resolvable:$false] %s4264_s27 }
 0x122   : > { %s4266_s21 = scalar_lea.vmem %s4265_s27, 32  ;;  %p4267_p10 = scmp.lt.s32.totalorder %s686_s7, %s4265_s27 }
 0x123   : > { %p4262_p0 = pnand %p4260_p3, %p5177_p6  ;;  %p4268_p11 = scmp.lt.s32.totalorder %s4266_s21, %s4259_s6 }
 0x125   : > { %p4263_p7 = pneg %p4262_p0  ;;  %p4269_p8 = por %p4268_p11, %p4267_p10 }
 0x127   : > { %p4270_p1 = pnand %p4269_p8, %p4263_p7 }
 0x129   : > { %4273 = shalt.err (!%p4270_p1)
}
 0x12a   : > { %p6085_p9 = scmp.ne.s32.totalorder %s6076_s24, 0  ;;  %s6086_s8 = sld [smem:[#allocation38_spill]] }
 0x12b   : > { %s6087_s13 = sld [smem:[#allocation37_spill]]  ;;  %s6088_s23 = sld [smem:[#allocation36_spill]] }
 0x12c   : > { %3797 = dma.hbm_to_vmem [thread:$0]  (!%p6085_p9), %s5240_s11, 16, %s686_s7, %s4985_s22  }
 0x12d   : > { %p336_p6 = scmp.lt.s32.totalorder %s4683_s16, 1  ;;  %p338_p8 = scmp.lt.s32.totalorder %s6175_s14, 1 }
 0x12e   : > { %p6089_p13 = scmp.eq.s32.totalorder %s4687_s15, 0  ;;  %p6090_p3 = scmp.eq.s32.totalorder %s4884_s2, 0 }
 0x12f   : > { %s5292_s24 = scalar_select %p336_p6, %s4683_s16, 1 }
 0x130   : > { %s343_s29 = sadd.s32 1, %s6086_s8  ;;  %s5301_s1 = sand.u32 1, %s6086_s8  }
 0x131   : > { %p350_p2 = scmp.ne.s32.totalorder %s6086_s8, %s6087_s13  ;;  %p356_p4 = scmp.ne.s32.totalorder %s6087_s13, %s6088_s23 }
 0x132   : > { %s339_s20 = scalar_select %p338_p8, %s6175_s14, 1 }
 0x133   : > { %p352_p5 = por %p350_p2, %p6089_p13  ;;  %p5305_p0 = por %p356_p4, %p6090_p3 }
 0x134   : > { %s340_s17 = ssub.s32 %s5292_s24, %s339_s20  ;;  %s5995_s7 = sshll.u32 %s5301_s1, 6 }
 0x135   : > { %p341_p12 = scmp.eq.s32.totalorder %s340_s17, 0  ;;  %s5996_s4 = sshll.u32 %s5292_s24, 10 }
 0x136   : > { %s6091_s11 = scalar_select %p5305_p0, 1, 0 }
 0x137   : > { %s6177_s8 = smov (!%p341_p12, %s6086_s8), %s343_s29  ;;  %s6093_s30 = sld [smem:[#allocation70_spill]] }
 0x138   : > { %6092 = sst [smem:[#allocation57_spill]] %s6177_s8  ;;  %s696_s21 = scalar_lea.vmem [#allocation22], %s5995_s7 }
 0x139   : > { %s705_s13 = sshll.u32 %s696_s21, 4  ;;  %p6095_p7 = scmp.lt.s32.totalorder %s4687_s15, 6  ;;  %s5329_s13 = int_to_ptr.vmem [resolvable:$true] %s705_s13 }
 0x13a   : > { %s6003_s29 = sshll.u32 %s5292_s24, 4 }
 0x13b   : > { %p5325_p10 = pnand %p6095_p7, %p352_p5 }
 0x13d   : > { %s6094_s3 = smov %s6093_s30  ;;  %s5319_s27 = scalar_lea.hbm %s6093_s30, %s5996_s4 }
 0x13e   : > { %s6096_s23 = scalar_select %p5325_p10, 1, 0 }
 0x13f   : > { %s4274_s20 = scalar_lea.hbm %s5319_s27, 1024  ;;  %p5336_p1 = pneg %p5325_p10 }
 0x140   : > { %p4275_p11 = scmp.ne.s32.totalorder %s5319_s27, %s4274_s20  ;;  %s4279_s30 = scalar_lea.hbm %s6094_s3, 2048 }
 0x141   : > { %s6097_s17 = scalar_select %p5336_p1, 1, 0 }
 0x142   : > { %p4277_p9 = pnand %p5336_p1, %p4275_p11  ;;  %p4280_p8 = scmp.lt.u32.totalorder %s5319_s27, %s6094_s3 }
 0x143   : > { %p4281_p2 = scmp.lt.u32.totalorder %s4279_s30, %s4274_s20  ;;  %p4283_p5 = scmp.lt.u32.totalorder %s4274_s20, %s5319_s27 }
 0x144   : > { %p4278_p6 = pneg %p4277_p9 }
 0x145   : > { %p4282_p13 = por %p4281_p2, %p4280_p8 }
 0x147   : > { %p4284_p4 = por %p4283_p5, %p4282_p13 }
 0x149   : > { %p4285_p12 = pnand %p4284_p4, %p4278_p6 }
 0x14b   : > { %4288 = shalt.err (!%p4285_p12)
}
 0x14c   : > { %s4289_s4 = scalar_lea.vmem %s5329_s13, 1024  ;;  %s4701_s12 = smov [#allocation22]  }
 0x14d   : > { %p4290_p3 = scmp.ne.s32.totalorder %s5329_s13, %s4289_s4  ;;  %s4294_s6 = sshll.u32 %s4701_s12, 4  ;;  %s4295_s6 = int_to_ptr.vmem [resolvable:$false] %s4294_s6 }
 0x14e   : > { %s4296_s7 = scalar_lea.vmem %s4295_s6, 2048  ;;  %p4297_p9 = scmp.lt.s32.totalorder %s5329_s13, %s4295_s6 }
 0x14f   : > { %p4292_p7 = pnand %p4290_p3, %p5336_p1  ;;  %p4298_p0 = scmp.lt.s32.totalorder %s4296_s7, %s4289_s4 }
 0x151   : > { %p4293_p11 = pneg %p4292_p7  ;;  %p4299_p8 = por %p4298_p0, %p4297_p9 }
 0x153   : > { %p4300_p2 = pnand %p4299_p8, %p4293_p11 }
 0x155   : > { %4303 = shalt.err (!%p4300_p2)
}
 0x156   : > { %3800 = dma.hbm_to_vmem [thread:$0]  (!%p5325_p10), %s5319_s27, 1024, %s5329_s13, %s4985_s22, %s6068_s0, %s6068_s0, %s6067_s18  }
 0x157   : > { %s6098_s21 = sld [smem:[#allocation71_spill]]  ;;  %s718_s6 = scalar_lea.vmem [#allocation23], %s5301_s1 }
 0x158   : > { %s727_s7 = sshll.u32 %s718_s6, 4  ;;  %s728_s7 = int_to_ptr.vmem [resolvable:$true] %s727_s7 }
 0x15d   : > { %s6099_s12 = smov %s6098_s21  ;;  %s5368_s4 = scalar_lea.hbm %s6098_s21, %s6003_s29 }
 0x15e   : > { %s4304_s3 = scalar_lea.hbm %s5368_s4, 16  ;;  %s4309_s13 = scalar_lea.hbm %s6099_s12, 32 }
 0x15f   : > { %p4305_p0 = scmp.ne.s32.totalorder %s5368_s4, %s4304_s3  ;;  %p4310_p5 = scmp.lt.u32.totalorder %s5368_s4, %s6099_s12 }
 0x160   : > { %p4311_p4 = scmp.lt.u32.totalorder %s4309_s13, %s4304_s3  ;;  %p4313_p3 = scmp.lt.u32.totalorder %s4304_s3, %s5368_s4 }
 0x161   : > { %p4307_p6 = pnand %p4305_p0, %p5336_p1 }
 0x162   : > { %p4312_p12 = por %p4311_p4, %p4310_p5 }
 0x163   : > { %p4308_p13 = pneg %p4307_p6 }
 0x164   : > { %p4314_p7 = por %p4313_p3, %p4312_p12 }
 0x166   : > { %p4315_p11 = pnand %p4314_p7, %p4308_p13 }
 0x168   : > { %4318 = shalt.err (!%p4315_p11)
}
 0x169   : > { %s4319_s30 = scalar_lea.vmem %s728_s7, 16  ;;  %s4702_s21 = smov [#allocation23]  }
 0x16a   : > { %p4320_p9 = scmp.ne.s32.totalorder %s728_s7, %s4319_s30  ;;  %s4324_s6 = sshll.u32 %s4702_s21, 4  ;;  %s4325_s6 = int_to_ptr.vmem [resolvable:$false] %s4324_s6 }
 0x16b   : > { %s4326_s5 = scalar_lea.vmem %s4325_s6, 32  ;;  %p4327_p0 = scmp.lt.s32.totalorder %s728_s7, %s4325_s6 }
 0x16c   : > { %p4322_p8 = pnand %p4320_p9, %p5336_p1  ;;  %p4328_p6 = scmp.lt.s32.totalorder %s4326_s5, %s4319_s30 }
 0x16e   : > { %p4323_p2 = pneg %p4322_p8  ;;  %p4329_p10 = por %p4328_p6, %p4327_p0 }
 0x170   : > { %p4330_p4 = pnand %p4329_p10, %p4323_p2 }
 0x172   : > { %4333 = shalt.err (!%p4330_p4)
}
 0x173   : > { %p6100_p5 = scmp.ne.s32.totalorder %s6096_s23, 0  ;;  %s6101_s14 = sld [smem:[#allocation50_spill]] }
 0x174   : > { %s4703_s3 = smov [#allocation10]   ;;  %s6102_s13 = sshll.u32 %s5292_s24, 10 }
 0x175   : > { %3803 = dma.hbm_to_vmem [thread:$0]  (!%p6100_p5), %s5368_s4, 16, %s728_s7, %s4985_s22  }
 0x176   : > { %s512_s27 = sshll.u32 %s4703_s3, 4  ;;  %s6103_s29 = sld [smem:[#allocation72_spill]]  ;;  %s513_s27 = int_to_ptr.vmem [resolvable:$true] %s512_s27 }
 0x177   : > { %s6105_s5 = sld [smem:[#allocation60_spill]] }
 0x179   : > { %p6106_p13 = scmp.ne.s32.totalorder %s6101_s14, 0 }
 0x17c   : > { %s6104_s12 = smov %s6103_s29  ;;  %s5394_s16 = scalar_lea.hbm %s6103_s29, %s6102_s13 }
 0x17d   : > { %s4334_s26 = scalar_lea.hbm %s6105_s5, 2048 }
 0x17e   : > { %p4335_p10 = scmp.ne.s32.totalorder %s6105_s5, %s4334_s26  ;;  %p4341_p7 = scmp.lt.u32.totalorder %s4334_s26, %s6105_s5 }
 0x180   : > { %p4337_p12 = pnand %p4335_p10, %p6106_p13 }
 0x182   : > { %p4338_p3 = pneg %p4337_p12 }
 0x184   : > { %p4343_p11 = pnand %p4341_p7, %p4338_p3 }
 0x186   : > { %4346 = shalt.err (!%p4343_p11)
}
 0x187   : > { %s4347_s3 = scalar_lea.vmem %s513_s27, 2048  ;;  %p4355_p0 = scmp.lt.s32.totalorder %s513_s27, %s513_s27 }
 0x188   : > { %p4348_p9 = scmp.ne.s32.totalorder %s513_s27, %s4347_s3  ;;  %p4356_p6 = scmp.lt.s32.totalorder %s4347_s3, %s4347_s3 }
 0x18a   : > { %p4350_p8 = pnand %p4348_p9, %p6106_p13  ;;  %p4357_p4 = por %p4356_p6, %p4355_p0 }
 0x18c   : > { %p4351_p2 = pneg %p4350_p8 }
 0x18e   : > { %p4358_p5 = pnand %p4357_p4, %p4351_p2 }
 0x190   : > { %4361 = shalt.err (!%p4358_p5)
}
 0x191   : > { %s6107_s15 = sld [smem:[#allocation49_spill]]  ;;  %s6109_s8 = smov 8  }
 0x192   : > { %s6110_s13 = sshll.u32 %s5301_s1, 6  ;;  %s4362_s30 = scalar_lea.hbm %s5394_s16, 1024 }
 0x193   : > { %s738_s20 = scalar_lea.vmem [#allocation24], %s6110_s13  ;;  %p4363_p5 = scmp.ne.s32.totalorder %s5394_s16, %s4362_s30 }
 0x194   : > { %s747_s21 = sshll.u32 %s738_s20, 4  ;;  %s4367_s7 = scalar_lea.hbm %s6104_s12, 2048  ;;  %s5419_s21 = int_to_ptr.vmem [resolvable:$true] %s747_s21 }
 0x195   : > { %p4365_p12 = pnand %p4363_p5, %p5336_p1  ;;  %p4368_p7 = scmp.lt.u32.totalorder %s5394_s16, %s6104_s12 }
 0x196   : > { %p4369_p11 = scmp.lt.u32.totalorder %s4367_s7, %s4362_s30  ;;  %p4371_p8 = scmp.lt.u32.totalorder %s4362_s30, %s5394_s16 }
 0x197   : > { %p6108_p10 = scmp.ne.s32.totalorder %s6107_s15, 0  ;;  %p4366_p3 = pneg %p4365_p12 }
 0x198   : > { %p4370_p9 = por %p4369_p11, %p4368_p7 }
 0x199   : > { %3769 = dma.hbm_to_vmem [thread:$0]  (!%p6108_p10), %s6105_s5, 2048, %s513_s27, [#allocation11], %s6057_s19, %s6057_s19, %s6109_s8  }
 0x19a   : > { %p4372_p2 = por %p4371_p8, %p4370_p9 }
 0x19c   : > { %p4373_p0 = pnand %p4372_p2, %p4366_p3 }
 0x19e   : > { %4376 = shalt.err (!%p4373_p0)
}
 0x19f   : > { %s4377_s19 = scalar_lea.vmem %s5419_s21, 1024  ;;  %s4704_s27 = smov [#allocation24]  }
 0x1a0   : > { %p4378_p6 = scmp.ne.s32.totalorder %s5419_s21, %s4377_s19  ;;  %s4382_s8 = sshll.u32 %s4704_s27, 4  ;;  %s4383_s8 = int_to_ptr.vmem [resolvable:$false] %s4382_s8 }
 0x1a1   : > { %s4384_s26 = scalar_lea.vmem %s4383_s8, 2048  ;;  %p4385_p12 = scmp.lt.s32.totalorder %s5419_s21, %s4383_s8 }
 0x1a2   : > { %p4380_p4 = pnand %p4378_p6, %p5336_p1  ;;  %p4386_p10 = scmp.lt.s32.totalorder %s4384_s26, %s4377_s19 }
 0x1a4   : > { %p4381_p5 = pneg %p4380_p4  ;;  %p4387_p7 = por %p4386_p10, %p4385_p12 }
 0x1a6   : > { %p4388_p11 = pnand %p4387_p7, %p4381_p5 }
 0x1a8   : > { %4391 = shalt.err (!%p4388_p11)
}
 0x1a9   : > { %p6111_p3 = scmp.ne.s32.totalorder %s6096_s23, 0  ;;  %s6112_s30 = sld [smem:[#allocation58_spill]] }
 0x1ab   : > { %3806 = dma.hbm_to_vmem [thread:$0]  (!%p6111_p3), %s5394_s16, 1024, %s5419_s21, %s4985_s22, %s6068_s0, %s6068_s0, %s6067_s18  }
 0x1af   : > { %s6113_s6 = smov %s6112_s30  ;;  %s4392_s4 = scalar_lea.hbm %s6112_s30, 16 }
 0x1b0   : > { %p4393_p10 = scmp.ne.s32.totalorder %s6113_s6, %s4392_s4  ;;  %p4399_p2 = scmp.lt.u32.totalorder %s4392_s4, %s6113_s6 }
 0x1b2   : > { %p4395_p9 = pnand %p4393_p10, %p6106_p13 }
 0x1b4   : > { %p4396_p8 = pneg %p4395_p9 }
 0x1b6   : > { %p4401_p0 = pnand %p4399_p2, %p4396_p8 }
 0x1b8   : > { %4404 = shalt.err (!%p4401_p0)
}
 0x1b9   : > { %s4705_s27 = smov [#allocation5]   ;;  %p6114_p6 = scmp.ne.s32.totalorder %s6107_s15, 0 }
 0x1ba   : > { %s4706_s8 = smov [#allocation12]   ;;  %s4707_s13 = smov [#allocation13]  }
 0x1bb   : > { %3763 = dma.hbm_to_smem (!%p6114_p6), %s6113_s6, 16, %s4705_s27, [#allocation8]  }
 0x1bc   : > { %s525_s26 = sshll.u32 %s4706_s8, 4  ;;  %s538_s20 = sshll.u32 %s4707_s13, 4  ;;  %s526_s26 = int_to_ptr.vmem [resolvable:$true] %s525_s26  ;;  %s539_s20 = int_to_ptr.vmem [resolvable:$true] %s538_s20 }
 0x1bd   : > { %s6115_s3 = sld [smem:[#allocation61_spill]] }
 0x1c3   : > { %s4405_s29 = scalar_lea.hbm %s6115_s3, 1024 }
 0x1c4   : > { %p4406_p4 = scmp.ne.s32.totalorder %s6115_s3, %s4405_s29  ;;  %p4412_p7 = scmp.lt.u32.totalorder %s4405_s29, %s6115_s3 }
 0x1c6   : > { %p4408_p5 = pnand %p4406_p4, %p6106_p13 }
 0x1c8   : > { %p4409_p12 = pneg %p4408_p5 }
 0x1ca   : > { %p4414_p11 = pnand %p4412_p7, %p4409_p12 }
 0x1cc   : > { %4417 = shalt.err (!%p4414_p11)
}
 0x1cd   : > { %s4418_s27 = scalar_lea.vmem %s526_s26, 1024  ;;  %p4426_p2 = scmp.lt.s32.totalorder %s526_s26, %s526_s26 }
 0x1ce   : > { %p4419_p10 = scmp.ne.s32.totalorder %s526_s26, %s4418_s27  ;;  %p4427_p0 = scmp.lt.s32.totalorder %s4418_s27, %s4418_s27 }
 0x1d0   : > { %p4421_p9 = pnand %p4419_p10, %p6106_p13  ;;  %p4428_p3 = por %p4427_p0, %p4426_p2 }
 0x1d2   : > { %p4422_p8 = pneg %p4421_p9 }
 0x1d4   : > { %p4429_p1 = pnand %p4428_p3, %p4422_p8 }
 0x1d6   : > { %4432 = shalt.err (!%p4429_p1)
}
 0x1d7   : > { %3772 = dma.hbm_to_vmem [thread:$0]  (!%p6114_p6), %s6115_s3, 1024, %s526_s26, [#allocation11], %s6068_s0, %s6068_s0, %s6067_s18  }
 0x1d8   : > { %s6116_s30 = sld [smem:[#allocation62_spill]] }
 0x1de   : > { %s6117_s7 = smov %s6116_s30  ;;  %s4433_s29 = scalar_lea.hbm %s6116_s30, 1024 }
 0x1df   : > { %p4434_p3 = scmp.ne.s32.totalorder %s6117_s7, %s4433_s29  ;;  %p4440_p5 = scmp.lt.u32.totalorder %s4433_s29, %s6117_s7 }
 0x1e1   : > { %p4436_p1 = pnand %p4434_p3, %p6106_p13 }
 0x1e3   : > { %p4437_p4 = pneg %p4436_p1 }
 0x1e5   : > { %p4442_p12 = pnand %p4440_p5, %p4437_p4 }
 0x1e7   : > { %4445 = shalt.err (!%p4442_p12)
}
 0x1e8   : > { %s4446_s5 = scalar_lea.vmem %s539_s20, 1024  ;;  %p4454_p9 = scmp.lt.s32.totalorder %s539_s20, %s539_s20 }
 0x1e9   : > { %p4447_p7 = scmp.ne.s32.totalorder %s539_s20, %s4446_s5  ;;  %p4455_p8 = scmp.lt.s32.totalorder %s4446_s5, %s4446_s5 }
 0x1eb   : > { %p4449_p11 = pnand %p4447_p7, %p6106_p13  ;;  %p4456_p2 = por %p4455_p8, %p4454_p9 }
 0x1ed   : > { %p4450_p10 = pneg %p4449_p11 }
 0x1ef   : > { %p4457_p0 = pnand %p4456_p2, %p4450_p10 }
 0x1f1   : > { %4460 = shalt.err (!%p4457_p0)
}
 0x1f2   : > { %3775 = dma.hbm_to_vmem [thread:$0]  (!%p6114_p6), %s6117_s7, 1024, %s539_s20, [#allocation14], %s6068_s0, %s6068_s0, %s6067_s18  }
 0x1f3   : > { %s6118_s14 = sshll.u32 %s5292_s24, 4  ;;  %s6119_s30 = sld [smem:[#allocation73_spill]] }
 0x1f4   : > { %s760_s15 = scalar_lea.vmem [#allocation25], %s5301_s1  ;;  %p6121_p3 = scmp.ne.s32.totalorder %s6097_s17, 0 }
 0x1f5   : > { %s769_s19 = sshll.u32 %s760_s15, 4  ;;  %s770_s19 = int_to_ptr.vmem [resolvable:$true] %s769_s19 }
 0x1f9   : > { %s6120_s4 = smov %s6119_s30  ;;  %s5509_s29 = scalar_lea.hbm %s6119_s30, %s6118_s14 }
 0x1fa   : > { %s4461_s16 = scalar_lea.hbm %s5509_s29, 16  ;;  %s4466_s0 = scalar_lea.hbm %s6120_s4, 32 }
 0x1fb   : > { %p4462_p13 = scmp.ne.s32.totalorder %s5509_s29, %s4461_s16  ;;  %p4467_p6 = scmp.lt.u32.totalorder %s5509_s29, %s6120_s4 }
 0x1fc   : > { %p4468_p5 = scmp.lt.u32.totalorder %s4466_s0, %s4461_s16  ;;  %p4470_p7 = scmp.lt.u32.totalorder %s4461_s16, %s5509_s29 }
 0x1fd   : > { %p4464_p1 = pnand %p4462_p13, %p6121_p3 }
 0x1fe   : > { %p4469_p12 = por %p4468_p5, %p4467_p6 }
 0x1ff   : > { %p4465_p4 = pneg %p4464_p1 }
 0x200   : > { %p4471_p11 = por %p4470_p7, %p4469_p12 }
 0x202   : > { %p4472_p10 = pnand %p4471_p11, %p4465_p4 }
 0x204   : > { %4475 = shalt.err (!%p4472_p10)
}
 0x205   : > { %s4476_s1 = scalar_lea.vmem %s770_s19, 16  ;;  %s4708_s5 = smov [#allocation25]  }
 0x206   : > { %p4477_p9 = scmp.ne.s32.totalorder %s770_s19, %s4476_s1  ;;  %s4481_s26 = sshll.u32 %s4708_s5, 4  ;;  %s4482_s26 = int_to_ptr.vmem [resolvable:$false] %s4481_s26 }
 0x207   : > { %s4483_s21 = scalar_lea.vmem %s4482_s26, 32  ;;  %p4484_p0 = scmp.lt.s32.totalorder %s770_s19, %s4482_s26 }
 0x208   : > { %p4479_p8 = pnand %p4477_p9, %p6121_p3  ;;  %p4485_p13 = scmp.lt.s32.totalorder %s4483_s21, %s4476_s1 }
 0x20a   : > { %p4480_p2 = pneg %p4479_p8  ;;  %p4486_p1 = por %p4485_p13, %p4484_p0 }
 0x20c   : > { %p4487_p5 = pnand %p4486_p1, %p4480_p2 }
 0x20e   : > { %4490 = shalt.err (!%p4487_p5)
}
 0x20f   : > { %p6122_p6 = scmp.ne.s32.totalorder %s6096_s23, 0  ;;  %s6123_s14 = sld [smem:[#allocation48_spill]] }
 0x211   : > { %3809 = dma.hbm_to_vmem [thread:$0]  (!%p6122_p6), %s5509_s29, 16, %s770_s19, %s4985_s22  }
 0x215   : > { %p6124_p4 = scmp.ne.s32.totalorder %s6123_s14, 0 }
 0x216   : > { %p6125_p3 = scmp.eq.s32.totalorder (!%p6124_p4), %s4884_s2, 0 }
 0x217   : > { %778 = sbr.rel (%p6124_p4) target bundleno = 2633 (0xa49), region = 84 }
 0x21e   : > { %4586 = dma.done.wait (%p6125_p3), [#allocation8], 16   ;;  %p6126_p12 = pmov %p6125_p3 }
 0x21f   : > { %p6127_p7 = pmov %p6125_p3 }
 0x220   : > { %4588 = vsyncadd (%p6126_p12), [#allocation8], 4294967280 }
 0x221   : > { %4590 = dma.done.wait (%p6127_p7), [#allocation6], 2048   ;;  %p6128_p11 = pmov %p6125_p3 }
 0x222   : > { %p6129_p10 = pmov %p6125_p3 }
 0x223   : > { %4592 = vsyncadd (%p6128_p11), [#allocation6], 4294965248 }
 0x224   : > { %4594 = dma.done.wait (%p6129_p10), [#allocation11], 3072   ;;  %p6130_p9 = pmov %p6125_p3 }
 0x225   : > { %p6131_p8 = pmov %p6125_p3 }
 0x226   : > { %4596 = vsyncadd (%p6130_p9), [#allocation11], 4294964224 }
 0x227   : > { %4598 = dma.done.wait (%p6131_p8), [#allocation14], 1024   ;;  %p6132_p2 = pmov %p6125_p3 }
 0x228   : > { %s6133_s22 = sld [smem:[#allocation41_spill]]  ;;  %s6134_s23 = sld [smem:[#allocation52_spill]] }
 0x229   : > { %4600 = vsyncadd (%p6132_p2), [#allocation14], 4294966272  ;;  %s800_s17 = sand.u32 1, %s4884_s2  }
 0x22a   : > { %s801_s30 = scalar_lea.sflag [#allocation6], %s800_s17 }
 0x22e   : > { %s802_s8 = sand.u32 1, %s6133_s22   ;;  %p6135_p0 = scmp.ne.s32.totalorder %s6134_s23, 0 }
 0x22f   : > { %s3171_s13 = sshll.u32 %s802_s8, 6 }
 0x230   : > { %s5550_s29 = scalar_lea.vmem [#allocation15], %s3171_s13 }
 0x231   : > { %4602 = dma.done.wait (%p6135_p0), %s801_s30, 2048  }
 0x232   : > { %4604 = vsyncadd (%p6135_p0), %s801_s30, 4294965248  ;;  %s820_s15 = sand.u32 1, %s4651_s28   ;;  %s5557_s16 = scalar_lea.vmem [#allocation16], %s3171_s13 }
 0x233   : > { %s3173_s19 = sshll.u32 %s820_s15, 6  ;;  %p6136_p13 = scmp.ne.s32.totalorder %s6061_s9, 0 }
 0x234   : > { %s5559_s27 = scalar_lea.vmem [#allocation17], %s3173_s19 }
 0x235   : > { %4606 = dma.done.wait (%p6136_p13), %s801_s30, 1024  }
 0x236   : > { %4608 = vsyncadd (%p6136_p13), %s801_s30, 4294966272  ;;  %s5566_s18 = sand.u32 1, %s4639_s25   ;;  %p6137_p1 = scmp.ne.s32.totalorder %s6073_s10, 0 }
 0x237   : > { %s3174_s0 = sshll.u32 %s5566_s18, 6 }
 0x238   : > { %s5569_s24 = scalar_lea.vmem [#allocation18], %s3174_s0 }
 0x239   : > { %4610 = dma.done.wait (%p6137_p1), %s801_s30, 2080  }
 0x23a   : > { %4612 = vsyncadd (%p6137_p1), %s801_s30, 4294965216  ;;  %s6138_s20 = sld [smem:[#allocation37_spill]]  ;;  %s839_s5 = scalar_lea.vmem [#allocation19], %s5566_s18 }
 0x23b   : > { %s5580_s26 = scalar_lea.vmem [#allocation20], %s3174_s0  ;;  %s856_s21 = scalar_lea.vmem [#allocation21], %s5566_s18 }
 0x23c   : > { %p6139_p5 = scmp.ne.s32.totalorder %s6091_s11, 0 }
 0x240   : > { %s5576_s1 = sand.u32 1, %s6138_s20  }
 0x241   : > { %s3176_s9 = sshll.u32 %s5576_s1, 6 }
 0x242   : > { %s5583_s14 = scalar_lea.vmem [#allocation22], %s3176_s9 }
 0x243   : > { %4614 = dma.done.wait (%p6139_p5), %s801_s30, 2080  }
 0x244   : > { %4616 = vsyncadd (%p6139_p5), %s801_s30, 4294965216  ;;  %s873_s10 = scalar_lea.vmem [#allocation23], %s5576_s1  ;;  %s5590_s22 = scalar_lea.vmem [#allocation24], %s3176_s9 }
 0x245   : > { %s890_s23 = scalar_lea.vmem [#allocation25], %s5576_s1 }
 0x246   : > { %895 = sfence }
 0x247   : > { %s6140_s17 = sld [smem:[#allocation44_spill]]  ;;  %s6141_s8 = sld [smem:[#allocation43_spill]] }
 0x24d   : > { %p992_p6 = scmp.eq.s32.totalorder %s6140_s17, 0  ;;  %p993_p4 = scmp.eq.s32.totalorder %s6141_s8, 0 }
 0x24f   : > { %p994_p3 = pnand %p993_p4, %p992_p6 }
 0x250   : > { %v998_v0 = vld [vmem:[#allocation9] sm:$0xff] (!%p994_p3)  ;;  %v999_v1 = vld [vmem:[#allocation9 + $0x8] sm:$0xff] (!%p994_p3)  ;;  %v1000_v2 = vld [vmem:[#allocation9 + $0x10] sm:$0xff] (!%p994_p3) }
 0x251   : > { %997 = sbr.rel (%p994_p3) target bundleno = 609 (0x261), region = 152  ;;  %1014 = vst [vmem:[#allocation26] sm:$0xff] (!%p994_p3), %v998_v0  ;;  %1015 = vst [vmem:[#allocation26 + $0x8] sm:$0xff] (!%p994_p3), %v999_v1  ;;  %v1001_v3 = vld [vmem:[#allocation9 + $0x18] sm:$0xff] (!%p994_p3)  ;;  %v1002_v4 = vld [vmem:[#allocation9 + $0x20] sm:$0xff] (!%p994_p3) }
 0x252   : > { %1016 = vst [vmem:[#allocation26 + $0x10] sm:$0xff] (!%p994_p3), %v1000_v2  ;;  %v1003_v5 = vld [vmem:[#allocation9 + $0x28] sm:$0xff] (!%p994_p3)  ;;  %1017 = vst [vmem:[#allocation26 + $0x18] sm:$0xff] (!%p994_p3), %v1001_v3  ;;  %v1004_v6 = vld [vmem:[#allocation9 + $0x30] sm:$0xff] (!%p994_p3) }
 0x253   : > { %1018 = vst [vmem:[#allocation26 + $0x20] sm:$0xff] (!%p994_p3), %v1002_v4  ;;  %1019 = vst [vmem:[#allocation26 + $0x28] sm:$0xff] (!%p994_p3), %v1003_v5  ;;  %v1005_v7 = vld [vmem:[#allocation9 + $0x38] sm:$0xff] (!%p994_p3)  ;;  %v1006_v8 = vld [vmem:[#allocation9 + $0x40] sm:$0xff] (!%p994_p3) }
 0x254   : > { %1020 = vst [vmem:[#allocation26 + $0x30] sm:$0xff] (!%p994_p3), %v1004_v6  ;;  %1021 = vst [vmem:[#allocation26 + $0x38] sm:$0xff] (!%p994_p3), %v1005_v7  ;;  %v1007_v9 = vld [vmem:[#allocation9 + $0x48] sm:$0xff] (!%p994_p3)  ;;  %v1008_v10 = vld [vmem:[#allocation9 + $0x50] sm:$0xff] (!%p994_p3) }
 0x255   : > { %1022 = vst [vmem:[#allocation26 + $0x40] sm:$0xff] (!%p994_p3), %v1006_v8  ;;  %v1009_v11 = vld [vmem:[#allocation9 + $0x58] sm:$0xff] (!%p994_p3)  ;;  %1023 = vst [vmem:[#allocation26 + $0x48] sm:$0xff] (!%p994_p3), %v1007_v9  ;;  %v1010_v12 = vld [vmem:[#allocation9 + $0x60] sm:$0xff] (!%p994_p3) }
 0x256   : > { %1024 = vst [vmem:[#allocation26 + $0x50] sm:$0xff] (!%p994_p3), %v1008_v10  ;;  %1025 = vst [vmem:[#allocation26 + $0x58] sm:$0xff] (!%p994_p3), %v1009_v11  ;;  %v1011_v13 = vld [vmem:[#allocation9 + $0x68] sm:$0xff] (!%p994_p3)  ;;  %v1012_v14 = vld [vmem:[#allocation9 + $0x70] sm:$0xff] (!%p994_p3) }
 0x257   : > { %1026 = vst [vmem:[#allocation26 + $0x60] sm:$0xff] (!%p994_p3), %v1010_v12  ;;  %1027 = vst [vmem:[#allocation26 + $0x68] sm:$0xff] (!%p994_p3), %v1011_v13  ;;  %v1013_v15 = vld [vmem:[#allocation9 + $0x78] sm:$0xff] (!%p994_p3)  ;;  %v1030_v16 = vld [vmem:[#allocation10] sm:$0xff] (!%p994_p3) }
 0x258   : > { %1028 = vst [vmem:[#allocation26 + $0x70] sm:$0xff] %v1012_v14  ;;  %v1031_v17 = vld [vmem:[#allocation10 + $0x8] sm:$0xff]  ;;  %1029 = vst [vmem:[#allocation26 + $0x78] sm:$0xff] %v1013_v15  ;;  %v1032_v18 = vld [vmem:[#allocation10 + $0x10] sm:$0xff] }
 0x259   : > { %1046 = vst [vmem:[#allocation2] sm:$0xff] %v1030_v16  ;;  %1047 = vst [vmem:[#allocation2 + $0x8] sm:$0xff] %v1031_v17  ;;  %v1033_v19 = vld [vmem:[#allocation10 + $0x18] sm:$0xff]  ;;  %v1034_v20 = vld [vmem:[#allocation10 + $0x20] sm:$0xff] }
 0x25a   : > { %1048 = vst [vmem:[#allocation2 + $0x10] sm:$0xff] %v1032_v18  ;;  %1049 = vst [vmem:[#allocation2 + $0x18] sm:$0xff] %v1033_v19  ;;  %v1035_v21 = vld [vmem:[#allocation10 + $0x28] sm:$0xff]  ;;  %v1036_v22 = vld [vmem:[#allocation10 + $0x30] sm:$0xff] }
 0x25b   : > { %1050 = vst [vmem:[#allocation2 + $0x20] sm:$0xff] %v1034_v20  ;;  %v1037_v23 = vld [vmem:[#allocation10 + $0x38] sm:$0xff]  ;;  %1051 = vst [vmem:[#allocation2 + $0x28] sm:$0xff] %v1035_v21  ;;  %v1038_v24 = vld [vmem:[#allocation10 + $0x40] sm:$0xff] }
 0x25c   : > { %1052 = vst [vmem:[#allocation2 + $0x30] sm:$0xff] %v1036_v22  ;;  %1053 = vst [vmem:[#allocation2 + $0x38] sm:$0xff] %v1037_v23  ;;  %v1039_v25 = vld [vmem:[#allocation10 + $0x48] sm:$0xff]  ;;  %v1040_v26 = vld [vmem:[#allocation10 + $0x50] sm:$0xff] }
 0x25d   : > { %1054 = vst [vmem:[#allocation2 + $0x40] sm:$0xff] %v1038_v24  ;;  %1055 = vst [vmem:[#allocation2 + $0x48] sm:$0xff] %v1039_v25  ;;  %v1041_v27 = vld [vmem:[#allocation10 + $0x58] sm:$0xff]  ;;  %v1042_v28 = vld [vmem:[#allocation10 + $0x60] sm:$0xff] }
 0x25e   : > { %1056 = vst [vmem:[#allocation2 + $0x50] sm:$0xff] %v1040_v26  ;;  %v1043_v29 = vld [vmem:[#allocation10 + $0x68] sm:$0xff]  ;;  %1057 = vst [vmem:[#allocation2 + $0x58] sm:$0xff] %v1041_v27  ;;  %v1044_v30 = vld [vmem:[#allocation10 + $0x70] sm:$0xff] }
 0x25f   : > { %1058 = vst [vmem:[#allocation2 + $0x60] sm:$0xff] %v1042_v28  ;;  %1059 = vst [vmem:[#allocation2 + $0x68] sm:$0xff] %v1043_v29  ;;  %v1045_v31 = vld [vmem:[#allocation10 + $0x78] sm:$0xff] }
 0x260   : > { %1060 = vst [vmem:[#allocation2 + $0x70] sm:$0xff] %v1044_v30  ;;  %1061 = vst [vmem:[#allocation2 + $0x78] sm:$0xff] %v1045_v31 }
 0x261 PF: > { %s6142_s11 = sld [smem:[#allocation43_spill]] }
 0x267   : > { %p3178_p12 = scmp.ne.s32.totalorder %s6142_s11, 0 }
 0x268   : > { %v1097_v32 = vld [vmem:[#allocation2] sm:$0xff] (!%p3178_p12)  ;;  %v1098_v33 = vld [vmem:[#allocation2 + $0x8] sm:$0xff] (!%p3178_p12)  ;;  %v1099_v34 = vld [vmem:[#allocation2 + $0x10] sm:$0xff] (!%p3178_p12)  ;;  %v4709_v0 = vmov (!%p3178_p12), 0.0  }
 0x269   : > { %1064 = sbr.rel (%p3178_p12) target bundleno = 877 (0x36d), region = 156  ;;  %v1113_v35 = vpack.c.bf16 (!%p3178_p12), %v1098_v33, %v1097_v32  ;;  %v1100_v36 = vld [vmem:[#allocation2 + $0x18] sm:$0xff] (!%p3178_p12)  ;;  %v1101_v38 = vld [vmem:[#allocation2 + $0x20] sm:$0xff] (!%p3178_p12)  ;;  %v1102_v39 = vld [vmem:[#allocation2 + $0x28] sm:$0xff] (!%p3178_p12)  ;;  %1298 = vst [vmem:[#allocation4] sm:$0xff] (!%p3178_p12), %v4709_v0 }
 0x26a   : > { %v1114_v37 = vpack.c.bf16 (!%p3178_p12), %v1100_v36, %v1099_v34  ;;  %v1103_v40 = vld [vmem:[#allocation2 + $0x30] sm:$0xff] (!%p3178_p12)  ;;  %v1115_v41 = vpack.c.bf16 (!%p3178_p12), %v1102_v39, %v1101_v38  ;;  %v1104_v42 = vld [vmem:[#allocation2 + $0x38] sm:$0xff] (!%p3178_p12)  ;;  %v3972_v43 = vld [vmem:[#allocation12] sm:$0xff] (!%p3178_p12)   ;;  %1299 = vst [vmem:[#allocation4 + $0x8] sm:$0xff] (!%p3178_p12), %v4709_v0 }
 0x26b   : > { %3426 = vmatprep.subr.bf16.mxu0 (!%p3178_p12), %v1113_v35  ;;  %3682 = vmatprep.subr.bf16.mxu1 (!%p3178_p12), %v1113_v35  ;;  %v3973_v44 = vld [vmem:[#allocation12 + $0x20] sm:$0xff] (!%p3178_p12)   ;;  %v1116_v45 = vpack.c.bf16 (!%p3178_p12), %v1104_v42, %v1103_v40  ;;  %v1106_v47 = vld [vmem:[#allocation2 + $0x48] sm:$0xff] (!%p3178_p12)  ;;  %v1107_v49 = vld [vmem:[#allocation2 + $0x50] sm:$0xff] (!%p3178_p12)  ;;  %1300 = vst [vmem:[#allocation4 + $0x10] sm:$0xff] (!%p3178_p12), %v4709_v0 }
 0x26c   : > { %3427 = vmatpush3.bf16.msra.mxu0 (!%p3178_p12), %v1113_v35  ;;  %3690 = vmatpush3.bf16.msra.mxu1 (!%p3178_p12), %v1113_v35  ;;  %v1105_v46 = vld [vmem:[#allocation2 + $0x40] sm:$0xff] (!%p3178_p12)  ;;  %v1108_v50 = vld [vmem:[#allocation2 + $0x58] sm:$0xff] (!%p3178_p12)  ;;  %v1110_v53 = vld [vmem:[#allocation2 + $0x68] sm:$0xff] (!%p3178_p12)  ;;  %1301 = vst [vmem:[#allocation4 + $0x18] sm:$0xff] (!%p3178_p12), %v4709_v0 }
 0x26d   : > { %3428 = vmatprep.subr.bf16.mxu0 (!%p3178_p12), %v1114_v37  ;;  %3683 = vmatprep.subr.bf16.mxu1 (!%p3178_p12), %v1114_v37  ;;  %v1117_v48 = vpack.c.bf16 (!%p3178_p12), %v1106_v47, %v1105_v46  ;;  %v1118_v51 = vpack.c.bf16 (!%p3178_p12), %v1108_v50, %v1107_v49  ;;  %v1109_v52 = vld [vmem:[#allocation2 + $0x60] sm:$0xff] (!%p3178_p12)  ;;  %v1111_v55 = vld [vmem:[#allocation2 + $0x70] sm:$0xff] (!%p3178_p12)  ;;  %v1112_v56 = vld [vmem:[#allocation2 + $0x78] sm:$0xff] (!%p3178_p12)  ;;  %1302 = vst [vmem:[#allocation4 + $0x20] sm:$0xff] (!%p3178_p12), %v4709_v0 }
 0x26e   : > { %3442 = vmatprep.mubr.bf16.mxu0 (!%p3178_p12), %v3972_v43  ;;  %3450 = vmatprep.mubr.bf16.mxu1 (!%p3178_p12), %v3973_v44  ;;  %v1119_v54 = vpack.c.bf16 (!%p3178_p12), %v1110_v53, %v1109_v52  ;;  %v1120_v57 = vpack.c.bf16 (!%p3178_p12), %v1112_v56, %v1111_v55  ;;  %v3974_v58 = vld [vmem:[#allocation12 + $0x8] sm:$0xff] (!%p3178_p12)   ;;  %v3976_v60 = vld [vmem:[#allocation12 + $0x10] sm:$0xff] (!%p3178_p12)   ;;  %v3978_v62 = vld [vmem:[#allocation12 + $0x18] sm:$0xff] (!%p3178_p12)   ;;  %1303 = vst [vmem:[#allocation4 + $0x28] sm:$0xff] (!%p3178_p12), %v4709_v0 }
 0x26f   : > { %v3975_v59 = vld [vmem:[#allocation12 + $0x28] sm:$0xff] (!%p3178_p12)   ;;  %v3977_v61 = vld [vmem:[#allocation12 + $0x30] sm:$0xff] (!%p3178_p12)   ;;  %v3979_v63 = vld [vmem:[#allocation12 + $0x38] sm:$0xff] (!%p3178_p12)   ;;  %1304 = vst [vmem:[#allocation4 + $0x30] sm:$0xff] (!%p3178_p12), %v4709_v0 }
 0x270   : > { %3429 = vmatpush3.bf16.msra.mxu0 %v1114_v37  ;;  %3691 = vmatpush3.bf16.msra.mxu1 %v1114_v37  ;;  %1305 = vst [vmem:[#allocation4 + $0x38] sm:$0xff] %v4709_v0  ;;  %1306 = vst [vmem:[#allocation4 + $0x40] sm:$0xff] %v4709_v0  ;;  %v1067_v1 = vld [vmem:[#allocation26 + $0x10] sm:$0xff]  ;;  %v1065_v3 = vld [vmem:[#allocation26] sm:$0xff] }
 0x271   : > { %3430 = vmatprep.subr.bf16.mxu0 %v1115_v41  ;;  %3684 = vmatprep.subr.bf16.mxu1 %v1115_v41  ;;  %1307 = vst [vmem:[#allocation4 + $0x48] sm:$0xff] %v4709_v0  ;;  %1308 = vst [vmem:[#allocation4 + $0x50] sm:$0xff] %v4709_v0  ;;  %v1075_v2 = vld [vmem:[#allocation26 + $0x50] sm:$0xff]  ;;  %v1073_v4 = vld [vmem:[#allocation26 + $0x40] sm:$0xff] }
 0x272   : > { %1309 = vst [vmem:[#allocation4 + $0x58] sm:$0xff] %v4709_v0  ;;  %1310 = vst [vmem:[#allocation4 + $0x60] sm:$0xff] %v4709_v0  ;;  %v1068_v7 = vld [vmem:[#allocation26 + $0x18] sm:$0xff]  ;;  %v1066_v13 = vld [vmem:[#allocation26 + $0x8] sm:$0xff] }
 0x273   : > { %1311 = vst [vmem:[#allocation4 + $0x68] sm:$0xff] %v4709_v0  ;;  %1312 = vst [vmem:[#allocation4 + $0x70] sm:$0xff] %v4709_v0  ;;  %v1076_v8 = vld [vmem:[#allocation26 + $0x58] sm:$0xff]  ;;  %v1074_v14 = vld [vmem:[#allocation26 + $0x48] sm:$0xff] }
 0x274   : > { %3431 = vmatpush3.bf16.msra.mxu0 %v1115_v41  ;;  %3692 = vmatpush3.bf16.msra.mxu1 %v1115_v41  ;;  %1313 = vst [vmem:[#allocation4 + $0x78] sm:$0xff] %v4709_v0  ;;  %v1071_v25 = vld [vmem:[#allocation26 + $0x30] sm:$0xff]  ;;  %v1069_v27 = vld [vmem:[#allocation26 + $0x20] sm:$0xff]  ;;  %v1072_v31 = vld [vmem:[#allocation26 + $0x38] sm:$0xff] }
 0x275   : > { %3432 = vmatprep.subr.bf16.mxu0 %v1116_v45  ;;  %3685 = vmatprep.subr.bf16.mxu1 %v1116_v45  ;;  %v1079_v26 = vld [vmem:[#allocation26 + $0x70] sm:$0xff]  ;;  %v1077_v28 = vld [vmem:[#allocation26 + $0x60] sm:$0xff]  ;;  %v1080_v32 = vld [vmem:[#allocation26 + $0x78] sm:$0xff] }
 0x276   : > { %v1070_v37 = vld [vmem:[#allocation26 + $0x28] sm:$0xff] }
 0x277   : > { %v1078_v38 = vld [vmem:[#allocation26 + $0x68] sm:$0xff] }
 0x278   : > { %3433 = vmatpush3.bf16.msra.mxu0 %v1116_v45  ;;  %3693 = vmatpush3.bf16.msra.mxu1 %v1116_v45 }
 0x279   : > { %3434 = vmatprep.subr.bf16.mxu0 %v1117_v48  ;;  %3686 = vmatprep.subr.bf16.mxu1 %v1117_v48 }
 0x27c   : > { %3435 = vmatpush3.bf16.msra.mxu0 %v1117_v48  ;;  %3694 = vmatpush3.bf16.msra.mxu1 %v1117_v48 }
 0x27d   : > { %3436 = vmatprep.subr.bf16.mxu0 %v1118_v51  ;;  %3687 = vmatprep.subr.bf16.mxu1 %v1118_v51 }
 0x280   : > { %3437 = vmatpush3.bf16.msra.mxu0 %v1118_v51  ;;  %3695 = vmatpush3.bf16.msra.mxu1 %v1118_v51 }
 0x281   : > { %3438 = vmatprep.subr.bf16.mxu0 %v1119_v54  ;;  %3688 = vmatprep.subr.bf16.mxu1 %v1119_v54 }
 0x284   : > { %3439 = vmatpush3.bf16.msra.mxu0 %v1119_v54  ;;  %3696 = vmatpush3.bf16.msra.mxu1 %v1119_v54 }
 0x285   : > { %3440 = vmatprep.subr.bf16.mxu0 %v1120_v57  ;;  %3689 = vmatprep.subr.bf16.mxu1 %v1120_v57 }
 0x288   : > { %3441 = vmatpush3.bf16.msra.mxu0 %v1120_v57  ;;  %3697 = vmatpush3.bf16.msra.mxu1 %v1120_v57 }
 0x28b   : > { %3443 = vmatmul.mubr.bf16.vlgmr.msra.gmra.mrb[0].mxu0 %v3974_v58  ;;  %3451 = vmatmul.mubr.bf16.vlgmr.msra.gmra.mrb[0].mxu1 %v3975_v59 }
 0x28c   : > { %3446 = vmatprep.mubr.bf16.mxu0 %v3976_v60  ;;  %3454 = vmatprep.mubr.bf16.mxu1 %v3977_v61 }
 0x293   : > { %3447 = vmatmul.mubr.bf16.gmra.mrb[4].mxu0 %v3978_v62  ;;  %3455 = vmatmul.mubr.bf16.gmra.mrb[4].mxu1 %v3979_v63 }
 0x35e   : > { %v3444_v5 = vpop.f32.mrb[0].mxu0  ;;  %v3452_v6 = vpop.f32.mrb[0].mxu1 }
 0x35f   : > { %v1268_v9 = vadd.f32 %v3444_v5, %v1067_v1  ;;  %v1276_v10 = vadd.f32 %v3452_v6, %v1075_v2  ;;  %v1203_v11 = vpop.f32.mrb[1].mxu0  ;;  %v1235_v12 = vpop.f32.mrb[1].mxu1 }
 0x360   : > { %v1266_v15 = vadd.f32 %v1203_v11, %v1065_v3  ;;  %v1274_v16 = vadd.f32 %v1235_v12, %v1073_v4  ;;  %v3445_v17 = vpop.f32.mrb[2].mxu0  ;;  %v3453_v18 = vpop.f32.mrb[2].mxu1 }
 0x361   : > { %1284 = vst [vmem:[#allocation3 + $0x10] sm:$0xff] %v1268_v9  ;;  %1292 = vst [vmem:[#allocation3 + $0x50] sm:$0xff] %v1276_v10  ;;  %v1269_v19 = vadd.f32 %v3445_v17, %v1068_v7  ;;  %v1277_v20 = vadd.f32 %v3453_v18, %v1076_v8  ;;  %v1206_v21 = vpop.f32.mrb[3].mxu0  ;;  %v1238_v22 = vpop.f32.mrb[3].mxu1 }
 0x362   : > { %1282 = vst [vmem:[#allocation3] sm:$0xff] %v1266_v15  ;;  %1290 = vst [vmem:[#allocation3 + $0x40] sm:$0xff] %v1274_v16  ;;  %v1267_v23 = vadd.f32 %v1206_v21, %v1066_v13  ;;  %v1275_v24 = vadd.f32 %v1238_v22, %v1074_v14 }
 0x363   : > { %1285 = vst [vmem:[#allocation3 + $0x18] sm:$0xff] %v1269_v19  ;;  %1293 = vst [vmem:[#allocation3 + $0x58] sm:$0xff] %v1277_v20 }
 0x364   : > { %1283 = vst [vmem:[#allocation3 + $0x8] sm:$0xff] %v1267_v23  ;;  %1291 = vst [vmem:[#allocation3 + $0x48] sm:$0xff] %v1275_v24 }
 0x366   : > { %v3448_v29 = vpop.f32.mrb[4].mxu0  ;;  %v3456_v30 = vpop.f32.mrb[4].mxu1 }
 0x367   : > { %v1272_v33 = vadd.f32 %v3448_v29, %v1071_v25  ;;  %v1280_v34 = vadd.f32 %v3456_v30, %v1079_v26  ;;  %v1219_v35 = vpop.f32.mrb[5].mxu0  ;;  %v1251_v36 = vpop.f32.mrb[5].mxu1 }
 0x368   : > { %v1270_v39 = vadd.f32 %v1219_v35, %v1069_v27  ;;  %v1278_v40 = vadd.f32 %v1251_v36, %v1077_v28  ;;  %v3449_v41 = vpop.f32.mrb[6].mxu0  ;;  %v3457_v42 = vpop.f32.mrb[6].mxu1 }
 0x369   : > { %1288 = vst [vmem:[#allocation3 + $0x30] sm:$0xff] %v1272_v33  ;;  %1296 = vst [vmem:[#allocation3 + $0x70] sm:$0xff] %v1280_v34  ;;  %v1273_v43 = vadd.f32 %v3449_v41, %v1072_v31  ;;  %v1281_v44 = vadd.f32 %v3457_v42, %v1080_v32  ;;  %v1222_v45 = vpop.f32.mrb[7].mxu0  ;;  %v1254_v46 = vpop.f32.mrb[7].mxu1 }
 0x36a   : > { %1286 = vst [vmem:[#allocation3 + $0x20] sm:$0xff] %v1270_v39  ;;  %1294 = vst [vmem:[#allocation3 + $0x60] sm:$0xff] %v1278_v40  ;;  %v1271_v47 = vadd.f32 %v1222_v45, %v1070_v37  ;;  %v1279_v48 = vadd.f32 %v1254_v46, %v1078_v38 }
 0x36b   : > { %1289 = vst [vmem:[#allocation3 + $0x38] sm:$0xff] %v1273_v43  ;;  %1297 = vst [vmem:[#allocation3 + $0x78] sm:$0xff] %v1281_v44 }
 0x36c   : > { %1287 = vst [vmem:[#allocation3 + $0x28] sm:$0xff] %v1271_v47  ;;  %1295 = vst [vmem:[#allocation3 + $0x68] sm:$0xff] %v1279_v48 }
 0x36d PF: > { %v5596_v49 = vld [vmem:[#allocation3] sm:$0xff]  ;;  %v5598_v50 = vld [vmem:[#allocation3 + $0x8] sm:$0xff]  ;;  %v5600_v51 = vld [vmem:[#allocation3 + $0x10] sm:$0xff]  ;;  %s6143_s13 = sld [smem:[#allocation43_spill]] }
 0x36e   : > { %v5604_v52 = vpack.c.bf16 %v5598_v50, %v5596_v49  ;;  %v5606_v53 = vld [vmem:[#allocation3 + $0x18] sm:$0xff]  ;;  %v3980_v60 = vld [vmem:[%s5550_s29] sm:$0xff]   ;;  %v5636_v63 = vld [vmem:[#allocation3 + $0x48] sm:$0xff] }
 0x36f   : > { %v5610_v54 = vpack.c.bf16 %v5606_v53, %v5600_v51  ;;  %3474 = vmatprep.mubr.bf16.mxu0 %v3980_v60  ;;  %v5634_v62 = vld [vmem:[#allocation3 + $0x40] sm:$0xff]  ;;  %v5644_v1 = vld [vmem:[#allocation3 + $0x50] sm:$0xff]  ;;  %v5646_v2 = vld [vmem:[#allocation3 + $0x58] sm:$0xff] }
 0x370   : > { %3458 = vmatprep.subr.bf16.mxu0 %v5604_v52  ;;  %v5618_v57 = vld [vmem:[#allocation3 + $0x30] sm:$0xff]  ;;  %v5642_v0 = vpack.c.bf16 %v5636_v63, %v5634_v62  ;;  %v5656_v5 = vpack.c.bf16 %v5646_v2, %v5644_v1  ;;  %v3981_v10 = vld [vmem:[%s5550_s29 + $0x8] sm:$0xff]   ;;  %v3983_v12 = vld [vmem:[%s5550_s29 + $0x18] sm:$0xff]  }
 0x371   : > { %v5612_v55 = vld [vmem:[#allocation3 + $0x20] sm:$0xff]  ;;  %3459 = vmatpush3.bf16.msra.mxu0 %v5604_v52  ;;  %v5664_v7 = vld [vmem:[#allocation3 + $0x70] sm:$0xff]  ;;  %v3985_v14 = vld [vmem:[%s5550_s29 + $0x28] sm:$0xff]  }
 0x372   : > { %3460 = vmatprep.subr.bf16.mxu0 %v5610_v54  ;;  %v5625_v59 = vld [vmem:[#allocation3 + $0x38] sm:$0xff]  ;;  %v5649_v3 = vld [vmem:[#allocation3 + $0x60] sm:$0xff]  ;;  %v3982_v11 = vld [vmem:[%s5550_s29 + $0x10] sm:$0xff]  }
 0x373   : > { %v5614_v56 = vld [vmem:[#allocation3 + $0x28] sm:$0xff]  ;;  %v5632_v61 = vpack.c.bf16 %v5625_v59, %v5618_v57  ;;  %v5666_v8 = vld [vmem:[#allocation3 + $0x78] sm:$0xff]  ;;  %v3984_v13 = vld [vmem:[%s5550_s29 + $0x20] sm:$0xff]   ;;  %p3203_p7 = scmp.ne.s32.totalorder %s6143_s13, 1 }
 0x374   : > { %v5623_v58 = vpack.c.bf16 %v5614_v56, %v5612_v55  ;;  %v5651_v4 = vld [vmem:[#allocation3 + $0x68] sm:$0xff]  ;;  %v5672_v9 = vpack.c.bf16 %v5666_v8, %v5664_v7  ;;  %v3986_v15 = vld [vmem:[%s5550_s29 + $0x30] sm:$0xff]   ;;  %v3987_v16 = vld [vmem:[%s5550_s29 + $0x38] sm:$0xff]   ;;  %s6144_s30 = sld [smem:[#allocation44_spill]] (!%p3203_p7) }
 0x375   : > { %3461 = vmatpush3.bf16.msra.mxu0 %v5610_v54  ;;  %v5662_v6 = vpack.c.bf16 %v5651_v4, %v5649_v3  ;;  %v3988_v17 = vld [vmem:[%s5557_s16] sm:$0xff]   ;;  %v3291_v18 = vld [vmem:[%s5559_s27 + $0x8] sm:$0xff]   ;;  %v3293_v29 = vld [vmem:[%s5559_s27 + $0x18] sm:$0xff]  }
 0x376   : > { %3462 = vmatprep.subr.bf16.mxu0 %v5623_v58  ;;  %3506 = vmatprep.mubr.bf16.mxu1 %v3988_v17  ;;  %v3260_v19 = vld [vmem:[%s5559_s27] sm:$0xff]   ;;  %v3265_v20 = vunpack.c.l.bf16 %v3291_v18  ;;  %v3266_v22 = vunpack.c.h.bf16 %v3291_v18  ;;  %v3292_v32 = vld [vmem:[%s5559_s27 + $0x10] sm:$0xff]   ;;  %v3273_v36 = vunpack.c.l.bf16 %v3293_v29  ;;  %v3274_v41 = vunpack.c.h.bf16 %v3293_v29  ;;  %v3295_v60 = vld [vmem:[%s5559_s27 + $0x28] sm:$0xff]  }
 0x377   : > { %v3261_v21 = vunpack.c.l.bf16 %v3260_v19  ;;  %v3262_v24 = vunpack.c.h.bf16 %v3260_v19  ;;  %v3269_v39 = vunpack.c.l.bf16 %v3292_v32  ;;  %v3270_v44 = vunpack.c.h.bf16 %v3292_v32  ;;  %v3297_v29 = vld [vmem:[%s5559_s27 + $0x38] sm:$0xff]   ;;  %v3296_v32 = vld [vmem:[%s5559_s27 + $0x30] sm:$0xff]  }
 0x379   : > { %3463 = vmatpush3.bf16.msra.mxu0 %v5623_v58 }
 0x37a   : > { %3464 = vmatprep.subr.bf16.mxu0 %v5632_v61  ;;  %s1768_s29 = sld [smem:[#allocation5 + %s6144_s30]] (!%p3203_p7)  ;;  %p3222_p11 = scmp.ne.s32.totalorder (!%p3203_p7), %s6144_s30, 2 }
 0x37d   : > { %3465 = vmatpush3.bf16.msra.mxu0 %v5632_v61 }
 0x37e   : > { %3466 = vmatprep.subr.bf16.mxu0 %v5642_v0 }
 0x380   : > { %s1769_s15 = sadd.f32 (!%p3203_p7), 1.0, %s1768_s29 }
 0x381   : > { %3467 = vmatpush3.bf16.msra.mxu0 %v5642_v0 }
 0x382   : > { %3468 = vmatprep.subr.bf16.mxu0 %v5656_v5 }
 0x385   : > { %3469 = vmatpush3.bf16.msra.mxu0 %v5656_v5 }
 0x386   : > { %3470 = vmatprep.subr.bf16.mxu0 %v5662_v6 }
 0x389   : > { %3471 = vmatpush3.bf16.msra.mxu0 %v5662_v6 }
 0x38a   : > { %3472 = vmatprep.subr.bf16.mxu0 %v5672_v9 }
 0x38d   : > { %3473 = vmatpush3.bf16.msra.mxu0 %v5672_v9 }
 0x390   : > { %3475 = vmatmul.mubr.bf16.vlgmr.msra.gmra.mrb[0].mxu0 %v3981_v10 }
 0x391   : > { %3478 = vmatprep.mubr.bf16.mxu0 %v3982_v11 }
 0x398   : > { %3479 = vmatmul.mubr.bf16.gmra.mrb[4].mxu0 %v3983_v12  ;;  %v3294_v12 = vld [vmem:[%s5559_s27 + $0x20] sm:$0xff]  }
 0x399   : > { %3482 = vmatprep.mubr.bf16.mxu0 %v3984_v13  ;;  %v3277_v19 = vunpack.c.l.bf16 %v3294_v12 }
 0x3a0   : > { %3483 = vmatmul.mubr.bf16.gmra.mrb[8].mxu0 %v3985_v14 }
 0x3a1   : > { %3486 = vmatprep.mubr.bf16.mxu0 %v3986_v15 }
 0x3a8   : > { %3487 = vmatmul.mubr.bf16.gmra.mrb[12].mxu0 %v3987_v16  ;;  %v3281_v16 = vunpack.c.l.bf16 %v3295_v60 }
 0x463   : > { %v3476_v23 = vpop.f32.mrb[0].mxu0 }
 0x464   : > { %v1477_v25 = vadd.f32 %v3476_v23, %v3265_v20  ;;  %v1468_v26 = vpop.f32.mrb[1].mxu0 }
 0x465   : > { %v1469_v27 = vadd.f32 %v3261_v21, %v1468_v26  ;;  %v3477_v28 = vpop.f32.mrb[2].mxu0  ;;  %v3282_v21 = vunpack.c.h.bf16 %v3295_v60 }
 0x466   : > { %v1480_v30 = vadd.f32 %v3477_v28, %v3266_v22  ;;  %v1471_v31 = vpop.f32.mrb[3].mxu0  ;;  %v1533_v34 = vmax.f32 %v1477_v25, 0.0 }
 0x467   : > { %v1472_v33 = vadd.f32 %v3262_v24, %v1471_v31  ;;  %v1531_v37 = vmax.f32 %v1469_v27, 0.0  ;;  %v3278_v24 = vunpack.c.h.bf16 %v3294_v12 }
 0x468   : > { %v1534_v35 = vmax.f32 %v1480_v30, 0.0 }
 0x469   : > { %v1532_v38 = vmax.f32 %v1472_v33, 0.0 }
 0x46a   : > { %v1580_v40 = vpack.c.bf16 %v1534_v35, %v1533_v34 }
 0x46b   : > { %v3480_v42 = vpop.f32.mrb[4].mxu0  ;;  %v1579_v43 = vpack.c.bf16 %v1532_v38, %v1531_v37 }
 0x46c   : > { %v1493_v45 = vadd.f32 %v3480_v42, %v3273_v36  ;;  %v1484_v46 = vpop.f32.mrb[5].mxu0  ;;  %v3289_v36 = vunpack.c.l.bf16 %v3297_v29 }
 0x46d   : > { %v1485_v47 = vadd.f32 %v3269_v39, %v1484_v46  ;;  %v3481_v48 = vpop.f32.mrb[6].mxu0  ;;  %3490 = vmatprep.subr.bf16.mxu1 %v1579_v43  ;;  %v3285_v39 = vunpack.c.l.bf16 %v3296_v32 }
 0x46e   : > { %v1496_v10 = vadd.f32 %v3481_v48, %v3274_v41  ;;  %v1487_v11 = vpop.f32.mrb[7].mxu0  ;;  %3491 = vmatpush3.bf16.msra.mxu1 %v1579_v43  ;;  %v1537_v14 = vmax.f32 %v1493_v45, 0.0  ;;  %v3290_v41 = vunpack.c.h.bf16 %v3297_v29 }
 0x46f   : > { %v1488_v13 = vadd.f32 %v3270_v44, %v1487_v11  ;;  %3492 = vmatprep.subr.bf16.mxu1 %v1580_v40  ;;  %v1535_v17 = vmax.f32 %v1485_v47, 0.0  ;;  %v3286_v44 = vunpack.c.h.bf16 %v3296_v32 }
 0x470   : > { %v1538_v15 = vmax.f32 %v1496_v10, 0.0 }
 0x471   : > { %v1536_v18 = vmax.f32 %v1488_v13, 0.0 }
 0x472   : > { %v1582_v20 = vpack.c.bf16 %v1538_v15, %v1537_v14  ;;  %3493 = vmatpush3.bf16.msra.mxu1 %v1580_v40 }
 0x473   : > { %v1581_v22 = vpack.c.bf16 %v1536_v18, %v1535_v17  ;;  %v3484_v23 = vpop.f32.mrb[8].mxu0  ;;  %v3989_v18 = vld [vmem:[%s5557_s16 + $0x8] sm:$0xff]  }
 0x474   : > { %v1509_v25 = vadd.f32 %v3484_v23, %v3281_v16  ;;  %v1500_v26 = vpop.f32.mrb[9].mxu0  ;;  %v3994_v23 = vld [vmem:[%s5557_s16 + $0x30] sm:$0xff]  }
 0x475   : > { %v1501_v27 = vadd.f32 %v3277_v19, %v1500_v26  ;;  %v3485_v28 = vpop.f32.mrb[10].mxu0  ;;  %3494 = vmatprep.subr.bf16.mxu1 %v1581_v22  ;;  %v3990_v19 = vld [vmem:[%s5557_s16 + $0x10] sm:$0xff]   ;;  %v1547_v26 = vld [vmem:[#allocation4] sm:$0xff] }
 0x476   : > { %v1512_v30 = vadd.f32 %v3485_v28, %v3282_v21  ;;  %v1503_v31 = vpop.f32.mrb[11].mxu0  ;;  %3495 = vmatpush3.bf16.msra.mxu1 %v1581_v22  ;;  %v1541_v34 = vmax.f32 %v1509_v25, 0.0  ;;  %v3992_v21 = vld [vmem:[%s5557_s16 + $0x20] sm:$0xff]   ;;  %v3993_v22 = vld [vmem:[%s5557_s16 + $0x28] sm:$0xff]   ;;  %v1549_v25 = vld [vmem:[#allocation4 + $0x10] sm:$0xff] }
 0x477   : > { %v1504_v33 = vadd.f32 %v3278_v24, %v1503_v31  ;;  %3496 = vmatprep.subr.bf16.mxu1 %v1582_v20  ;;  %v1539_v37 = vmax.f32 %v1501_v27, 0.0  ;;  %v3995_v24 = vld [vmem:[%s5557_s16 + $0x38] sm:$0xff]   ;;  %v1548_v31 = vld [vmem:[#allocation4 + $0x8] sm:$0xff] }
 0x478   : > { %v1542_v35 = vmax.f32 %v1512_v30, 0.0  ;;  %v1550_v28 = vld [vmem:[#allocation4 + $0x18] sm:$0xff] }
 0x479   : > { %v1540_v38 = vmax.f32 %v1504_v33, 0.0 }
 0x47a   : > { %v1584_v40 = vpack.c.bf16 %v1542_v35, %v1541_v34  ;;  %3497 = vmatpush3.bf16.msra.mxu1 %v1582_v20  ;;  %v3991_v20 = vld [vmem:[%s5557_s16 + $0x18] sm:$0xff]  }
 0x47b   : > { %v1583_v42 = vpack.c.bf16 %v1540_v38, %v1539_v37  ;;  %v3488_v43 = vpop.f32.mrb[12].mxu0  ;;  %v1553_v37 = vld [vmem:[#allocation4 + $0x30] sm:$0xff]  ;;  %v1551_v38 = vld [vmem:[#allocation4 + $0x20] sm:$0xff] }
 0x47c   : > { %v1525_v45 = vadd.f32 %v3488_v43, %v3289_v36  ;;  %v1516_v46 = vpop.f32.mrb[13].mxu0  ;;  %v1552_v43 = vld [vmem:[#allocation4 + $0x28] sm:$0xff] }
 0x47d   : > { %v1517_v47 = vadd.f32 %v3285_v39, %v1516_v46  ;;  %v3489_v48 = vpop.f32.mrb[14].mxu0  ;;  %3498 = vmatprep.subr.bf16.mxu1 %v1583_v42 }
 0x47e   : > { %v1528_v60 = vadd.f32 %v3489_v48, %v3290_v41  ;;  %v1519_v10 = vpop.f32.mrb[15].mxu0  ;;  %3499 = vmatpush3.bf16.msra.mxu1 %v1583_v42  ;;  %v1545_v12 = vmax.f32 %v1525_v45, 0.0 }
 0x47f   : > { %v1520_v11 = vadd.f32 %v3286_v44, %v1519_v10  ;;  %3500 = vmatprep.subr.bf16.mxu1 %v1584_v40  ;;  %v1543_v14 = vmax.f32 %v1517_v47, 0.0  ;;  %v1555_v10 = vld [vmem:[#allocation4 + $0x40] sm:$0xff] }
 0x480   : > { %v1546_v13 = vmax.f32 %v1528_v60, 0.0  ;;  %v1557_v60 = vld [vmem:[#allocation4 + $0x50] sm:$0xff] }
 0x481   : > { %v1544_v15 = vmax.f32 %v1520_v11, 0.0 }
 0x482   : > { %v1586_v16 = vpack.c.bf16 %v1546_v13, %v1545_v12  ;;  %3501 = vmatpush3.bf16.msra.mxu1 %v1584_v40  ;;  %v1554_v40 = vld [vmem:[#allocation4 + $0x38] sm:$0xff] }
 0x483   : > { %v1585_v17 = vpack.c.bf16 %v1544_v15, %v1543_v14  ;;  %v1558_v12 = vld [vmem:[#allocation4 + $0x58] sm:$0xff]  ;;  %v1556_v15 = vld [vmem:[#allocation4 + $0x48] sm:$0xff] }
 0x485   : > { %3502 = vmatprep.subr.bf16.mxu1 %v1585_v17 }
 0x486   : > { %3503 = vmatpush3.bf16.msra.mxu1 %v1585_v17 }
 0x487   : > { %3504 = vmatprep.subr.bf16.mxu1 %v1586_v16 }
 0x48a   : > { %3505 = vmatpush3.bf16.msra.mxu1 %v1586_v16 }
 0x48d   : > { %3507 = vmatmul.mubr.bf16.vlgmr.msra.gmra.mrb[0].mxu1 %v3989_v18 }
 0x48e   : > { %3510 = vmatprep.mubr.bf16.mxu1 %v3990_v19 }
 0x495   : > { %3511 = vmatmul.mubr.bf16.gmra.mrb[4].mxu1 %v3991_v20 }
 0x496   : > { %3514 = vmatprep.mubr.bf16.mxu1 %v3992_v21  ;;  %v1561_v21 = vld [vmem:[#allocation4 + $0x70] sm:$0xff] }
 0x49d   : > { %3515 = vmatmul.mubr.bf16.gmra.mrb[8].mxu1 %v3993_v22  ;;  %v1559_v22 = vld [vmem:[#allocation4 + $0x60] sm:$0xff] }
 0x49e   : > { %3518 = vmatprep.mubr.bf16.mxu1 %v3994_v23 }
 0x4a5   : > { %3519 = vmatmul.mubr.bf16.gmra.mrb[12].mxu1 %v3995_v24  ;;  %v1562_v24 = vld [vmem:[#allocation4 + $0x78] sm:$0xff] }
 0x560   : > { %v3508_v27 = vpop.f32.mrb[0].mxu1 }
 0x561   : > { %v1734_v29 = vadd.f32 %v3508_v27, %v1549_v25  ;;  %v1669_v30 = vpop.f32.mrb[1].mxu1  ;;  %v1560_v27 = vld [vmem:[#allocation4 + $0x68] sm:$0xff] }
 0x562   : > { %v1732_v32 = vadd.f32 %v1669_v30, %v1547_v26  ;;  %v3509_v33 = vpop.f32.mrb[2].mxu1 }
 0x563   : > { %1750 = vst [vmem:[#allocation4 + $0x10] sm:$0xff] %v1734_v29  ;;  %v1735_v34 = vadd.f32 %v3509_v33, %v1550_v28  ;;  %v1672_v35 = vpop.f32.mrb[3].mxu1  ;;  %v3996_v33 = vld [vmem:[%s5569_s24] sm:$0xff] (!%p3203_p7)  }
 0x564   : > { %1748 = vst [vmem:[#allocation4] sm:$0xff] %v1732_v32  ;;  %v1733_v36 = vadd.f32 %v1672_v35, %v1548_v31  ;;  %3522 = vmatprep.subr.bf16.mxu0 (!%p3203_p7), %v3996_v33  ;;  %v3998_v35 = vld [vmem:[%s5569_s24 + $0x10] sm:$0xff] (!%p3203_p7)  }
 0x565   : > { %1751 = vst [vmem:[#allocation4 + $0x18] sm:$0xff] %v1735_v34  ;;  %v3997_v34 = vld [vmem:[%s5569_s24 + $0x8] sm:$0xff] (!%p3203_p7)   ;;  %3523 = vmatpush3.bf16.msra.mxu0 (!%p3203_p7), %v3996_v33 }
 0x566   : > { %1749 = vst [vmem:[#allocation4 + $0x8] sm:$0xff] %v1733_v36  ;;  %3524 = vmatprep.subr.bf16.mxu0 (!%p3203_p7), %v3997_v34  ;;  %v3999_v36 = vld [vmem:[%s5569_s24 + $0x18] sm:$0xff] (!%p3203_p7)  }
 0x568   : > { %v3512_v39 = vpop.f32.mrb[4].mxu1 }
 0x569   : > { %v1738_v41 = vadd.f32 %v3512_v39, %v1553_v37  ;;  %v1685_v42 = vpop.f32.mrb[5].mxu1  ;;  %3525 = vmatpush3.bf16.msra.mxu0 (!%p3203_p7), %v3997_v34  ;;  %v5706_v37 = vstv (!%p3203_p7), %s1769_s15 }
 0x56a   : > { %v1736_v44 = vadd.f32 %v1685_v42, %v1551_v38  ;;  %v3513_v45 = vpop.f32.mrb[6].mxu1  ;;  %3526 = vmatprep.subr.bf16.mxu0 (!%p3203_p7), %v3998_v35  ;;  %v1781_v34 = vmul.f32 (!%p3203_p7), %v5706_v37, %v5644_v1 }
 0x56b   : > { %1754 = vst [vmem:[#allocation4 + $0x30] sm:$0xff] %v1738_v41  ;;  %v1739_v46 = vadd.f32 %v3513_v45, %v1554_v40  ;;  %v1688_v47 = vpop.f32.mrb[7].mxu1  ;;  %v1787_v38 = vld [vmem:[#allocation4] sm:$0xff] (!%p3203_p7)  ;;  %v1771_v40 = vmul.f32 (!%p3203_p7), %v5706_v37, %v5596_v49  ;;  %v1772_v41 = vmul.f32 (!%p3203_p7), %v5706_v37, %v5598_v50  ;;  %v4006_v49 = vld [vmem:[%s5580_s26 + $0x10] sm:$0xff] (!%p3203_p7)  }
 0x56c   : > { %1752 = vst [vmem:[#allocation4 + $0x20] sm:$0xff] %v1736_v44  ;;  %v1737_v48 = vadd.f32 %v1688_v47, %v1552_v43  ;;  %v4000_v44 = vld [vmem:[%s5569_s24 + $0x20] sm:$0xff] (!%p3203_p7)   ;;  %v4005_v47 = vld [vmem:[%s5580_s26 + $0x8] sm:$0xff] (!%p3203_p7)  }
 0x56d   : > { %1755 = vst [vmem:[#allocation4 + $0x38] sm:$0xff] %v1739_v46  ;;  %v1788_v39 = vld [vmem:[#allocation4 + $0x8] sm:$0xff] (!%p3203_p7)  ;;  %3527 = vmatpush3.bf16.msra.mxu0 (!%p3203_p7), %v3998_v35  ;;  %v1803_v42 = vadd.f32 (!%p3203_p7), %v1787_v38, %v1771_v40  ;;  %v4002_v50 = vld [vmem:[%s5569_s24 + $0x30] sm:$0xff] (!%p3203_p7)   ;;  %v1783_v38 = vmul.f32 (!%p3203_p7), %v5706_v37, %v5649_v3  ;;  %v1786_v3 = vmul.f32 (!%p3203_p7), %v5706_v37, %v5666_v8 }
 0x56e   : > { %1753 = vst [vmem:[#allocation4 + $0x28] sm:$0xff] %v1737_v48  ;;  %v1804_v43 = vadd.f32 (!%p3203_p7), %v1788_v39, %v1772_v41  ;;  %3528 = vmatprep.subr.bf16.mxu0 (!%p3203_p7), %v3999_v36  ;;  %v4004_v46 = vld [vmem:[%s5580_s26] sm:$0xff] (!%p3203_p7)   ;;  %v1784_v39 = vmul.f32 (!%p3203_p7), %v5706_v37, %v5651_v4 }
 0x56f   : > { %v4001_v48 = vld [vmem:[%s5569_s24 + $0x28] sm:$0xff] (!%p3203_p7)   ;;  %3554 = vmatprep.subr.bf16.mxu1 (!%p3203_p7), %v4004_v46 }
 0x570   : > { %v3516_v11 = vpop.f32.mrb[8].mxu1  ;;  %v1819_v45 = vpack.c.bf16 (!%p3203_p7), %v1804_v43, %v1803_v42  ;;  %3555 = vmatpush3.bf16.msra.mxu1 (!%p3203_p7), %v4004_v46 }
 0x571   : > { %v1742_v13 = vadd.f32 %v3516_v11, %v1557_v60  ;;  %v1701_v14 = vpop.f32.mrb[9].mxu1  ;;  %3529 = vmatpush3.bf16.msra.mxu0 (!%p3203_p7), %v3999_v36  ;;  %3556 = vmatprep.subr.bf16.mxu1 (!%p3203_p7), %v4005_v47  ;;  %v1773_v60 = vmul.f32 (!%p3203_p7), %v5706_v37, %v5600_v51  ;;  %v1789_v11 = vld [vmem:[#allocation4 + $0x10] sm:$0xff] (!%p3203_p7) }
 0x572   : > { %v1740_v16 = vadd.f32 %v1701_v14, %v1555_v10  ;;  %v3517_v17 = vpop.f32.mrb[10].mxu1  ;;  %3538 = vmatprep.mubr.bf16.mxu0 (!%p3203_p7), %v1819_v45  ;;  %3530 = vmatprep.subr.bf16.mxu0 (!%p3203_p7), %v4000_v44  ;;  %v1774_v10 = vmul.f32 (!%p3203_p7), %v5706_v37, %v5606_v53  ;;  %v1776_v14 = vmul.f32 (!%p3203_p7), %v5706_v37, %v5614_v56 }
 0x573   : > { %1758 = vst [vmem:[#allocation4 + $0x50] sm:$0xff] %v1742_v13  ;;  %v1743_v18 = vadd.f32 %v3517_v17, %v1558_v12  ;;  %v1704_v19 = vpop.f32.mrb[11].mxu1  ;;  %v1790_v12 = vld [vmem:[#allocation4 + $0x18] sm:$0xff] (!%p3203_p7)  ;;  %v1775_v13 = vmul.f32 (!%p3203_p7), %v5706_v37, %v5612_v55  ;;  %v1791_v17 = vld [vmem:[#allocation4 + $0x20] sm:$0xff] (!%p3203_p7)  ;;  %v1777_v56 = vmul.f32 (!%p3203_p7), %v5706_v37, %v5618_v57  ;;  %v1785_v45 = vmul.f32 (!%p3203_p7), %v5706_v37, %v5664_v7 }
 0x574   : > { %1756 = vst [vmem:[#allocation4 + $0x40] sm:$0xff] %v1740_v16  ;;  %v1741_v20 = vadd.f32 %v1704_v19, %v1556_v15  ;;  %3557 = vmatpush3.bf16.msra.mxu1 (!%p3203_p7), %v4005_v47  ;;  %v4007_v15 = vld [vmem:[%s5580_s26 + $0x18] sm:$0xff] (!%p3203_p7)   ;;  %v1806_v19 = vadd.f32 (!%p3203_p7), %v1790_v12, %v1774_v10 }
 0x575   : > { %1759 = vst [vmem:[#allocation4 + $0x58] sm:$0xff] %v1743_v18  ;;  %3531 = vmatpush3.bf16.msra.mxu0 (!%p3203_p7), %v4000_v44  ;;  %3558 = vmatprep.subr.bf16.mxu1 (!%p3203_p7), %v4006_v49  ;;  %v4003_v16 = vld [vmem:[%s5569_s24 + $0x38] sm:$0xff] (!%p3203_p7)   ;;  %v1792_v51 = vld [vmem:[#allocation4 + $0x28] sm:$0xff] (!%p3203_p7)  ;;  %v1805_v18 = vadd.f32 (!%p3203_p7), %v1789_v11, %v1773_v60  ;;  %v1807_v53 = vadd.f32 (!%p3203_p7), %v1791_v17, %v1775_v13  ;;  %v3204_v7 = vld [vmem:[%s839_s5] ss:$0 sm:$0xff] (!%p3203_p7) }
 0x576   : > { %1757 = vst [vmem:[#allocation4 + $0x48] sm:$0xff] %v1741_v20  ;;  %3532 = vmatprep.subr.bf16.mxu0 (!%p3203_p7), %v4001_v48  ;;  %v1808_v20 = vadd.f32 (!%p3203_p7), %v1792_v51, %v1776_v14  ;;  %v4010_v60 = vld [vmem:[%s5580_s26 + $0x30] sm:$0xff] (!%p3203_p7)   ;;  %v4011_v10 = vld [vmem:[%s5580_s26 + $0x38] sm:$0xff] (!%p3203_p7)  }
 0x577   : > { %v1820_v55 = vpack.c.bf16 (!%p3203_p7), %v1806_v19, %v1805_v18 }
 0x578   : > { %v3520_v23 = vpop.f32.mrb[12].mxu1  ;;  %1767 = sbr.rel (%p3203_p7) target bundleno = 2601 (0xa29), region = 160  ;;  %3559 = vmatpush3.bf16.msra.mxu1 (!%p3203_p7), %v4006_v49 }
 0x579   : > { %v1746_v25 = vadd.f32 %v3520_v23, %v1561_v21  ;;  %v1717_v26 = vpop.f32.mrb[13].mxu1  ;;  %3533 = vmatpush3.bf16.msra.mxu0 (!%p3203_p7), %v4001_v48  ;;  %3560 = vmatprep.subr.bf16.mxu1 (!%p3203_p7), %v4007_v15  ;;  %v4008_v21 = vld [vmem:[%s5580_s26 + $0x20] sm:$0xff] (!%p3203_p7)   ;;  %v1821_v23 = vpack.c.bf16 (!%p3203_p7), %v1808_v20, %v1807_v53 }
 0x57a   : > { %v1744_v28 = vadd.f32 %v1717_v26, %v1559_v22  ;;  %v3521_v29 = vpop.f32.mrb[14].mxu1  ;;  %3534 = vmatprep.subr.bf16.mxu0 (!%p3203_p7), %v4002_v50  ;;  %v1778_v22 = vmul.f32 (!%p3203_p7), %v5706_v37, %v5625_v59  ;;  %v1779_v26 = vmul.f32 (!%p3203_p7), %v5706_v37, %v5634_v62  ;;  %v1782_v62 = vmul.f32 (!%p3203_p7), %v5706_v37, %v5646_v2  ;;  %v1797_v35 = vld [vmem:[#allocation4 + $0x50] sm:$0xff] (!%p3203_p7) }
 0x57b   : > { %1762 = vst [vmem:[#allocation4 + $0x70] sm:$0xff] %v1746_v25  ;;  %v1747_v30 = vadd.f32 %v3521_v29, %v1562_v24  ;;  %v1720_v31 = vpop.f32.mrb[15].mxu1  ;;  %v1793_v24 = vld [vmem:[#allocation4 + $0x30] sm:$0xff] (!%p3203_p7)  ;;  %v1794_v25 = vld [vmem:[#allocation4 + $0x38] sm:$0xff] (!%p3203_p7)  ;;  %v1795_v29 = vld [vmem:[#allocation4 + $0x40] sm:$0xff] (!%p3203_p7)  ;;  %v1813_v42 = vadd.f32 (!%p3203_p7), %v1797_v35, %v1781_v34 }
 0x57c   : > { %1760 = vst [vmem:[#allocation4 + $0x60] sm:$0xff] %v1744_v28  ;;  %v1745_v32 = vadd.f32 %v1720_v31, %v1560_v27  ;;  %3561 = vmatpush3.bf16.msra.mxu1 (!%p3203_p7), %v4007_v15  ;;  %v1780_v27 = vmul.f32 (!%p3203_p7), %v5706_v37, %v5636_v63  ;;  %v4009_v28 = vld [vmem:[%s5580_s26 + $0x28] sm:$0xff] (!%p3203_p7)   ;;  %v1809_v57 = vadd.f32 (!%p3203_p7), %v1793_v24, %v1777_v56  ;;  %v1798_v36 = vld [vmem:[#allocation4 + $0x58] sm:$0xff] (!%p3203_p7) }
 0x57d   : > { %1763 = vst [vmem:[#allocation4 + $0x78] sm:$0xff] %v1747_v30  ;;  %3535 = vmatpush3.bf16.msra.mxu0 (!%p3203_p7), %v4002_v50  ;;  %3562 = vmatprep.subr.bf16.mxu1 (!%p3203_p7), %v4008_v21  ;;  %v1796_v30 = vld [vmem:[#allocation4 + $0x48] sm:$0xff] (!%p3203_p7)  ;;  %v1810_v31 = vadd.f32 (!%p3203_p7), %v1794_v25, %v1778_v22  ;;  %v1811_v59 = vadd.f32 (!%p3203_p7), %v1795_v29, %v1779_v26 }
 0x57e   : > { %1761 = vst [vmem:[#allocation4 + $0x68] sm:$0xff] %v1745_v32  ;;  %3536 = vmatprep.subr.bf16.mxu0 (!%p3203_p7), %v4003_v16  ;;  %v1812_v32 = vadd.f32 (!%p3203_p7), %v1796_v30, %v1780_v27  ;;  %v1814_v43 = vadd.f32 (!%p3203_p7), %v1798_v36, %v1782_v62 }
 0x57f   : > { %v1822_v33 = vpack.c.bf16 %v1810_v31, %v1809_v57 }
 0x580   : > { %3563 = vmatpush3.bf16.msra.mxu1 %v4008_v21  ;;  %v1823_v63 = vpack.c.bf16 %v1812_v32, %v1811_v59  ;;  %v1824_v2 = vpack.c.bf16 %v1814_v43, %v1813_v42 }
 0x581   : > { %3537 = vmatpush3.bf16.msra.mxu0 %v4003_v16  ;;  %3564 = vmatprep.subr.bf16.mxu1 %v4009_v28 }
 0x582   : > { %v1801_v4 = vld [vmem:[#allocation4 + $0x70] sm:$0xff] }
 0x583   : > { %v1799_v40 = vld [vmem:[#allocation4 + $0x60] sm:$0xff]  ;;  %v1817_v48 = vadd.f32 %v1801_v4, %v1785_v45 }
 0x584   : > { %3539 = vmatmul.mubr.bf16.vlgmr.msra.gmra.mrb[0].mxu0 %v1820_v55  ;;  %3565 = vmatpush3.bf16.msra.mxu1 %v4009_v28  ;;  %v1815_v1 = vadd.f32 %v1799_v40, %v1783_v38  ;;  %v1802_v47 = vld [vmem:[#allocation4 + $0x78] sm:$0xff] }
 0x585   : > { %3542 = vmatprep.mubr.bf16.mxu0 %v1821_v23  ;;  %v1800_v41 = vld [vmem:[#allocation4 + $0x68] sm:$0xff]  ;;  %v1818_v49 = vadd.f32 %v1802_v47, %v1786_v3  ;;  %3566 = vmatprep.subr.bf16.mxu1 %v4010_v60 }
 0x586   : > { %v1816_v44 = vadd.f32 %v1800_v41, %v1784_v39 }
 0x587   : > { %v1826_v50 = vpack.c.bf16 %v1818_v49, %v1817_v48 }
 0x588   : > { %v1825_v46 = vpack.c.bf16 %v1816_v44, %v1815_v1  ;;  %3567 = vmatpush3.bf16.msra.mxu1 %v4010_v60 }
 0x589   : > { %3568 = vmatprep.subr.bf16.mxu1 %v4011_v10 }
 0x58c   : > { %3543 = vmatmul.mubr.bf16.gmra.mrb[4].mxu0 %v1822_v33  ;;  %3569 = vmatpush3.bf16.msra.mxu1 %v4011_v10 }
 0x58d   : > { %3546 = vmatprep.mubr.bf16.mxu0 %v1823_v63 }
 0x594   : > { %3547 = vmatmul.mubr.bf16.gmra.mrb[8].mxu0 %v1824_v2 }
 0x595   : > { %3550 = vmatprep.mubr.bf16.mxu0 %v1825_v46 }
 0x59c   : > { %3551 = vmatmul.mubr.bf16.gmra.mrb[12].mxu0 %v1826_v50 }
 0x657   : > { %v3540_v11 = vpop.f32.mrb[0].mxu0 }
 0x658   : > { %v1941_v8 = vadd.f32 %v3540_v11, %v3204_v7  ;;  %v1932_v37 = vpop.f32.mrb[1].mxu0 }
 0x659   : > { %v1933_v12 = vadd.f32 %v3204_v7, %v1932_v37  ;;  %v3541_v13 = vpop.f32.mrb[2].mxu0 }
 0x65a   : > { %v1944_v14 = vadd.f32 %v3541_v13, %v3204_v7  ;;  %v1935_v15 = vpop.f32.mrb[3].mxu0  ;;  %v1997_v17 = vmax.f32 %v1941_v8, 0.0  ;;  %v3213_v8 = vld [vmem:[%s856_s21] ss:$0 sm:$0xff] }
 0x65b   : > { %v1936_v16 = vadd.f32 %v3204_v7, %v1935_v15  ;;  %v1995_v18 = vmax.f32 %v1933_v12, 0.0 }
 0x65c   : > { %v1998_v51 = vmax.f32 %v1944_v14, 0.0 }
 0x65d   : > { %v1996_v19 = vmax.f32 %v1936_v16, 0.0 }
 0x65e   : > { %v2012_v53 = vpack.c.bf16 %v1998_v51, %v1997_v17 }
 0x65f   : > { %v3544_v20 = vpop.f32.mrb[4].mxu0  ;;  %v2011_v21 = vpack.c.bf16 %v1996_v19, %v1995_v18 }
 0x660   : > { %v1957_v55 = vadd.f32 %v3544_v20, %v3204_v7  ;;  %v1948_v56 = vpop.f32.mrb[5].mxu0 }
 0x661   : > { %v1949_v22 = vadd.f32 %v3204_v7, %v1948_v56  ;;  %v3545_v23 = vpop.f32.mrb[6].mxu0  ;;  %3570 = vmatprep.mubr.bf16.mxu1 %v2011_v21 }
 0x662   : > { %v1960_v24 = vadd.f32 %v3545_v23, %v3204_v7  ;;  %v1951_v25 = vpop.f32.mrb[7].mxu0  ;;  %3571 = vmatmul.mubr.bf16.vlgmr.msra.gmra.mrb[0].mxu1 %v2012_v53  ;;  %v2001_v27 = vmax.f32 %v1957_v55, 0.0 }
 0x663   : > { %v1952_v26 = vadd.f32 %v3204_v7, %v1951_v25  ;;  %v1999_v29 = vmax.f32 %v1949_v22, 0.0 }
 0x664   : > { %v2002_v28 = vmax.f32 %v1960_v24, 0.0 }
 0x665   : > { %v2000_v30 = vmax.f32 %v1952_v26, 0.0 }
 0x666   : > { %v2014_v57 = vpack.c.bf16 %v2002_v28, %v2001_v27 }
 0x667   : > { %v2013_v31 = vpack.c.bf16 %v2000_v30, %v1999_v29  ;;  %v3548_v59 = vpop.f32.mrb[8].mxu0 }
 0x668   : > { %v1973_v32 = vadd.f32 %v3548_v59, %v3204_v7  ;;  %v1964_v33 = vpop.f32.mrb[9].mxu0 }
 0x669   : > { %v1965_v34 = vadd.f32 %v3204_v7, %v1964_v33  ;;  %v3549_v62 = vpop.f32.mrb[10].mxu0  ;;  %3574 = vmatprep.mubr.bf16.mxu1 %v2013_v31 }
 0x66a   : > { %v1976_v63 = vadd.f32 %v3549_v62, %v3204_v7  ;;  %v1967_v35 = vpop.f32.mrb[11].mxu0  ;;  %3575 = vmatmul.mubr.bf16.gmra.mrb[4].mxu1 %v2014_v57  ;;  %v2005_v38 = vmax.f32 %v1973_v32, 0.0 }
 0x66b   : > { %v1968_v36 = vadd.f32 %v3204_v7, %v1967_v35  ;;  %v2003_v40 = vmax.f32 %v1965_v34, 0.0 }
 0x66c   : > { %v2006_v39 = vmax.f32 %v1976_v63, 0.0 }
 0x66d   : > { %v2004_v41 = vmax.f32 %v1968_v36, 0.0 }
 0x66e   : > { %v2016_v42 = vpack.c.bf16 %v2006_v39, %v2005_v38 }
 0x66f   : > { %v2015_v43 = vpack.c.bf16 %v2004_v41, %v2003_v40  ;;  %v3552_v1 = vpop.f32.mrb[12].mxu0 }
 0x670   : > { %v1989_v44 = vadd.f32 %v3552_v1, %v3204_v7  ;;  %v1980_v2 = vpop.f32.mrb[13].mxu0 }
 0x671   : > { %v1981_v45 = vadd.f32 %v3204_v7, %v1980_v2  ;;  %v3553_v3 = vpop.f32.mrb[14].mxu0  ;;  %3578 = vmatprep.mubr.bf16.mxu1 %v2015_v43 }
 0x672   : > { %v1992_v46 = vadd.f32 %v3553_v3, %v3204_v7  ;;  %v1983_v4 = vpop.f32.mrb[15].mxu0  ;;  %3579 = vmatmul.mubr.bf16.gmra.mrb[8].mxu1 %v2016_v42  ;;  %v2009_v48 = vmax.f32 %v1989_v44, 0.0 }
 0x673   : > { %v1984_v47 = vadd.f32 %v3204_v7, %v1983_v4  ;;  %v2007_v50 = vmax.f32 %v1981_v45, 0.0 }
 0x674   : > { %v2010_v49 = vmax.f32 %v1992_v46, 0.0 }
 0x675   : > { %v2008_v60 = vmax.f32 %v1984_v47, 0.0 }
 0x676   : > { %v2018_v10 = vpack.c.bf16 %v2010_v49, %v2009_v48 }
 0x677   : > { %v2017_v11 = vpack.c.bf16 %v2008_v60, %v2007_v50 }
 0x679   : > { %3582 = vmatprep.mubr.bf16.mxu1 %v2017_v11 }
 0x67a   : > { %3583 = vmatmul.mubr.bf16.gmra.mrb[12].mxu1 %v2018_v10 }
 0x735   : > { %v3572_v37 = vpop.f32.mrb[0].mxu1 }
 0x736   : > { %v5756_v12 = vadd.f32 %v3572_v37, %v3213_v8  ;;  %v2124_v13 = vpop.f32.mrb[1].mxu1 }
 0x737   : > { %v5758_v14 = vadd.f32 %v3213_v8, %v2124_v13  ;;  %v3573_v15 = vpop.f32.mrb[2].mxu1 }
 0x738   : > { %v5760_v16 = vadd.f32 %v3573_v15, %v3213_v8  ;;  %v2127_v7 = vpop.f32.mrb[3].mxu1  ;;  %2193 = vst [vmem:[#allocation26 + $0x10] sm:$0xff] (!%p3222_p11), %v5756_v12 }
 0x739   : > { %v2128_v17 = vadd.f32 %v3213_v8, %v2127_v7  ;;  %2191 = vst [vmem:[#allocation26] sm:$0xff] (!%p3222_p11), %v5758_v14 }
 0x73a   : > { %2194 = vst [vmem:[#allocation26 + $0x18] sm:$0xff] (!%p3222_p11), %v5760_v16 }
 0x73b   : > { %2192 = vst [vmem:[#allocation26 + $0x8] sm:$0xff] (!%p3222_p11), %v2128_v17 }
 0x73d   : > { %v3576_v51 = vpop.f32.mrb[4].mxu1 }
 0x73e   : > { %v5762_v18 = vadd.f32 %v3576_v51, %v3213_v8  ;;  %v2140_v19 = vpop.f32.mrb[5].mxu1 }
 0x73f   : > { %v5764_v53 = vadd.f32 %v3213_v8, %v2140_v19  ;;  %v3577_v20 = vpop.f32.mrb[6].mxu1 }
 0x740   : > { %v5766_v21 = vadd.f32 %v3577_v20, %v3213_v8  ;;  %v2143_v55 = vpop.f32.mrb[7].mxu1  ;;  %2197 = vst [vmem:[#allocation26 + $0x30] sm:$0xff] (!%p3222_p11), %v5762_v18 }
 0x741   : > { %v5768_v56 = vadd.f32 %v3213_v8, %v2143_v55  ;;  %2195 = vst [vmem:[#allocation26 + $0x20] sm:$0xff] (!%p3222_p11), %v5764_v53 }
 0x742   : > { %2198 = vst [vmem:[#allocation26 + $0x38] sm:$0xff] (!%p3222_p11), %v5766_v21 }
 0x743   : > { %2196 = vst [vmem:[#allocation26 + $0x28] sm:$0xff] (!%p3222_p11), %v5768_v56 }
 0x745   : > { %v3580_v22 = vpop.f32.mrb[8].mxu1 }
 0x746   : > { %v5770_v23 = vadd.f32 %v3580_v22, %v3213_v8  ;;  %v2156_v24 = vpop.f32.mrb[9].mxu1 }
 0x747   : > { %v2157_v25 = vadd.f32 %v3213_v8, %v2156_v24  ;;  %v3581_v26 = vpop.f32.mrb[10].mxu1 }
 0x748   : > { %v5772_v27 = vadd.f32 %v3581_v26, %v3213_v8  ;;  %v2159_v28 = vpop.f32.mrb[11].mxu1  ;;  %2201 = vst [vmem:[#allocation26 + $0x50] sm:$0xff] (!%p3222_p11), %v5770_v23 }
 0x749   : > { %v2160_v29 = vadd.f32 %v3213_v8, %v2159_v28  ;;  %2199 = vst [vmem:[#allocation26 + $0x40] sm:$0xff] (!%p3222_p11), %v2157_v25 }
 0x74a   : > { %2202 = vst [vmem:[#allocation26 + $0x58] sm:$0xff] (!%p3222_p11), %v5772_v27 }
 0x74b   : > { %2190 = sbr.rel (%p3222_p11) target bundleno = 1876 (0x754), region = 164  ;;  %2200 = vst [vmem:[#allocation26 + $0x48] sm:$0xff] (!%p3222_p11), %v2160_v29 }
 0x74d   : > { %v3584_v30 = vpop.f32.mrb[12].mxu1 }
 0x74e   : > { %v5774_v57 = vadd.f32 %v3584_v30, %v3213_v8  ;;  %v2172_v31 = vpop.f32.mrb[13].mxu1 }
 0x74f   : > { %v2173_v59 = vadd.f32 %v3213_v8, %v2172_v31  ;;  %v3585_v32 = vpop.f32.mrb[14].mxu1 }
 0x750   : > { %v2184_v33 = vadd.f32 %v3585_v32, %v3213_v8  ;;  %v2175_v34 = vpop.f32.mrb[15].mxu1  ;;  %2205 = vst [vmem:[#allocation26 + $0x70] sm:$0xff] (!%p3222_p11), %v5774_v57 }
 0x751   : > { %v2176_v62 = vadd.f32 %v3213_v8, %v2175_v34  ;;  %2203 = vst [vmem:[#allocation26 + $0x60] sm:$0xff] (!%p3222_p11), %v2173_v59 }
 0x752   : > { %2206 = vst [vmem:[#allocation26 + $0x78] sm:$0xff] %v2184_v33 }
 0x753   : > { %2204 = vst [vmem:[#allocation26 + $0x68] sm:$0xff] %v2176_v62 }
 0x754 PF: > { %s6145_s19 = sld [smem:[#allocation44_spill]] }
 0x75a   : > { %p3223_p10 = scmp.ge.s32.totalorder %s6145_s19, 2 }
 0x75b   : > { %v2211_v63 = vmax.f32 (!%p3223_p10), %v5758_v14, 0.0  ;;  %v2212_v35 = vmax.f32 (!%p3223_p10), %v2128_v17, 0.0  ;;  %v2213_v36 = vmax.f32 (!%p3223_p10), %v5756_v12, 0.0  ;;  %v2214_v38 = vmax.f32 (!%p3223_p10), %v5760_v16, 0.0  ;;  %3586 = vmatprep.subr.bf16.mxu0 (!%p3223_p10), %v5604_v52  ;;  %v4012_v45 = vld [vmem:[#allocation13] sm:$0xff] (!%p3223_p10)   ;;  %v4021_v48 = vld [vmem:[%s5583_s14 + $0x8] sm:$0xff] (!%p3223_p10)  }
 0x75c   : > { %2210 = sbr.rel (%p3223_p10) target bundleno = 2601 (0xa29), region = 168  ;;  %v2215_v39 = vmax.f32 (!%p3223_p10), %v5764_v53, 0.0  ;;  %v2216_v40 = vmax.f32 (!%p3223_p10), %v5768_v56, 0.0  ;;  %v2217_v41 = vmax.f32 (!%p3223_p10), %v5762_v18, 0.0  ;;  %v2218_v42 = vmax.f32 (!%p3223_p10), %v5766_v21, 0.0  ;;  %3587 = vmatpush3.bf16.msra.mxu0 (!%p3223_p10), %v5604_v52  ;;  %3602 = vmatprep.mubr.bf16.mxu0 (!%p3223_p10), %v4012_v45  ;;  %v4020_v52 = vld [vmem:[%s5583_s14] sm:$0xff] (!%p3223_p10)  }
 0x75d   : > { %v2219_v43 = vmax.f32 (!%p3223_p10), %v2157_v25, 0.0  ;;  %v2220_v1 = vmax.f32 (!%p3223_p10), %v2160_v29, 0.0  ;;  %v2221_v44 = vmax.f32 (!%p3223_p10), %v5770_v23, 0.0  ;;  %v2222_v2 = vmax.f32 (!%p3223_p10), %v5772_v27, 0.0  ;;  %2227 = vst [vmem:[#allocation26] sm:$0xff] (!%p3223_p10), %v2211_v63  ;;  %2228 = vst [vmem:[#allocation26 + $0x8] sm:$0xff] (!%p3223_p10), %v2212_v35  ;;  %3588 = vmatprep.subr.bf16.mxu0 (!%p3223_p10), %v5610_v54  ;;  %3618 = vmatprep.subr.bf16.mxu1 (!%p3223_p10), %v4020_v52 }
 0x75e   : > { %2229 = vst [vmem:[#allocation26 + $0x10] sm:$0xff] (!%p3223_p10), %v2213_v36  ;;  %2230 = vst [vmem:[#allocation26 + $0x18] sm:$0xff] (!%p3223_p10), %v2214_v38  ;;  %v2223_v3 = vmax.f32 (!%p3223_p10), %v2173_v59, 0.0  ;;  %v2224_v46 = vmax.f32 (!%p3223_p10), %v2176_v62, 0.0  ;;  %v2225_v4 = vmax.f32 (!%p3223_p10), %v5774_v57, 0.0  ;;  %v2226_v47 = vmax.f32 (!%p3223_p10), %v2184_v33, 0.0  ;;  %3619 = vmatpush3.bf16.msra.mxu1 (!%p3223_p10), %v4020_v52 }
 0x75f   : > { %2231 = vst [vmem:[#allocation26 + $0x20] sm:$0xff] (!%p3223_p10), %v2215_v39  ;;  %2232 = vst [vmem:[#allocation26 + $0x28] sm:$0xff] (!%p3223_p10), %v2216_v40  ;;  %3620 = vmatprep.subr.bf16.mxu1 (!%p3223_p10), %v4021_v48  ;;  %v4022_v49 = vld [vmem:[%s5583_s14 + $0x10] sm:$0xff] (!%p3223_p10)   ;;  %v4016_v60 = vld [vmem:[#allocation13 + $0x20] sm:$0xff] (!%p3223_p10)  }
 0x760   : > { %2233 = vst [vmem:[#allocation26 + $0x30] sm:$0xff] (!%p3223_p10), %v2217_v41  ;;  %2234 = vst [vmem:[#allocation26 + $0x38] sm:$0xff] (!%p3223_p10), %v2218_v42  ;;  %3589 = vmatpush3.bf16.msra.mxu0 (!%p3223_p10), %v5610_v54  ;;  %v4023_v54 = vld [vmem:[%s5583_s14 + $0x18] sm:$0xff] (!%p3223_p10)   ;;  %v4014_v50 = vld [vmem:[#allocation13 + $0x10] sm:$0xff] (!%p3223_p10)  }
 0x761   : > { %2235 = vst [vmem:[#allocation26 + $0x40] sm:$0xff] (!%p3223_p10), %v2219_v43  ;;  %2236 = vst [vmem:[#allocation26 + $0x48] sm:$0xff] (!%p3223_p10), %v2220_v1  ;;  %3590 = vmatprep.subr.bf16.mxu0 (!%p3223_p10), %v5623_v58  ;;  %v4018_v10 = vld [vmem:[#allocation13 + $0x30] sm:$0xff] (!%p3223_p10)   ;;  %v4027_v8 = vld [vmem:[%s5583_s14 + $0x38] sm:$0xff] (!%p3223_p10)  }
 0x762   : > { %2237 = vst [vmem:[#allocation26 + $0x50] sm:$0xff] (!%p3223_p10), %v2221_v44  ;;  %2238 = vst [vmem:[#allocation26 + $0x58] sm:$0xff] (!%p3223_p10), %v2222_v2  ;;  %3621 = vmatpush3.bf16.msra.mxu1 (!%p3223_p10), %v4021_v48  ;;  %v4026_v11 = vld [vmem:[%s5583_s14 + $0x30] sm:$0xff] (!%p3223_p10)   ;;  %v4028_v37 = vld [vmem:[%s5590_s22] sm:$0xff] (!%p3223_p10)  }
 0x763   : > { %2239 = vst [vmem:[#allocation26 + $0x60] sm:$0xff] %v2223_v3  ;;  %2240 = vst [vmem:[#allocation26 + $0x68] sm:$0xff] %v2224_v46  ;;  %3622 = vmatprep.subr.bf16.mxu1 %v4022_v49  ;;  %v4029_v12 = vld [vmem:[%s5590_s22 + $0x8] sm:$0xff]   ;;  %v4030_v13 = vld [vmem:[%s5590_s22 + $0x10] sm:$0xff]  }
 0x764   : > { %2241 = vst [vmem:[#allocation26 + $0x70] sm:$0xff] %v2225_v4  ;;  %2242 = vst [vmem:[#allocation26 + $0x78] sm:$0xff] %v2226_v47  ;;  %3591 = vmatpush3.bf16.msra.mxu0 %v5623_v58  ;;  %v4024_v58 = vld [vmem:[%s5583_s14 + $0x20] sm:$0xff]   ;;  %v5831_v16 = vld [vmem:[%s5590_s22 + $0x28] sm:$0xff]  }
 0x765   : > { %3592 = vmatprep.subr.bf16.mxu0 %v5632_v61  ;;  %v4031_v14 = vld [vmem:[%s5590_s22 + $0x18] sm:$0xff]   ;;  %v5827_v15 = vld [vmem:[%s5590_s22 + $0x20] sm:$0xff]   ;;  %v2261_v7 = vld [vmem:[#allocation2 + $0x10] sm:$0xff] }
 0x766   : > { %3623 = vmatpush3.bf16.msra.mxu1 %v4022_v49  ;;  %v2262_v51 = vld [vmem:[#allocation2 + $0x18] sm:$0xff]  ;;  %v2259_v19 = vld [vmem:[#allocation2] sm:$0xff]  ;;  %v2260_v53 = vld [vmem:[#allocation2 + $0x8] sm:$0xff] }
 0x767   : > { %3624 = vmatprep.subr.bf16.mxu1 %v4023_v54  ;;  %v2265_v26 = vld [vmem:[#allocation2 + $0x30] sm:$0xff]  ;;  %v2266_v28 = vld [vmem:[#allocation2 + $0x38] sm:$0xff]  ;;  %v2263_v30 = vld [vmem:[#allocation2 + $0x20] sm:$0xff] }
 0x768   : > { %3593 = vmatpush3.bf16.msra.mxu0 %v5632_v61  ;;  %v4025_v61 = vld [vmem:[%s5583_s14 + $0x28] sm:$0xff]   ;;  %v2270_v39 = vld [vmem:[#allocation2 + $0x58] sm:$0xff]  ;;  %v2267_v41 = vld [vmem:[#allocation2 + $0x40] sm:$0xff] }
 0x769   : > { %3594 = vmatprep.subr.bf16.mxu0 %v5642_v0  ;;  %v2264_v57 = vld [vmem:[#allocation2 + $0x28] sm:$0xff]  ;;  %v2269_v36 = vld [vmem:[#allocation2 + $0x50] sm:$0xff]  ;;  %v2274_v48 = vld [vmem:[#allocation2 + $0x78] sm:$0xff] }
 0x76a   : > { %3625 = vmatpush3.bf16.msra.mxu1 %v4023_v54  ;;  %v2268_v42 = vld [vmem:[#allocation2 + $0x48] sm:$0xff]  ;;  %v2273_v47 = vld [vmem:[#allocation2 + $0x70] sm:$0xff]  ;;  %v2271_v54 = vld [vmem:[#allocation2 + $0x60] sm:$0xff] }
 0x76b   : > { %3626 = vmatprep.subr.bf16.mxu1 %v4024_v58 }
 0x76c   : > { %3595 = vmatpush3.bf16.msra.mxu0 %v5642_v0  ;;  %v4013_v0 = vld [vmem:[#allocation13 + $0x8] sm:$0xff]  }
 0x76d   : > { %3596 = vmatprep.subr.bf16.mxu0 %v5656_v5 }
 0x76e   : > { %3627 = vmatpush3.bf16.msra.mxu1 %v4024_v58  ;;  %v2272_v58 = vld [vmem:[#allocation2 + $0x68] sm:$0xff] }
 0x76f   : > { %3628 = vmatprep.subr.bf16.mxu1 %v4025_v61 }
 0x770   : > { %3597 = vmatpush3.bf16.msra.mxu0 %v5656_v5  ;;  %v4015_v5 = vld [vmem:[#allocation13 + $0x18] sm:$0xff]  }
 0x771   : > { %3598 = vmatprep.subr.bf16.mxu0 %v5662_v6 }
 0x772   : > { %3629 = vmatpush3.bf16.msra.mxu1 %v4025_v61 }
 0x773   : > { %3630 = vmatprep.subr.bf16.mxu1 %v4026_v11 }
 0x774   : > { %3599 = vmatpush3.bf16.msra.mxu0 %v5662_v6  ;;  %v4017_v6 = vld [vmem:[#allocation13 + $0x28] sm:$0xff]  }
 0x775   : > { %3600 = vmatprep.subr.bf16.mxu0 %v5672_v9 }
 0x776   : > { %3631 = vmatpush3.bf16.msra.mxu1 %v4026_v11  ;;  %v4034_v11 = vld [vmem:[%s5590_s22 + $0x30] sm:$0xff]  }
 0x777   : > { %3632 = vmatprep.subr.bf16.mxu1 %v4027_v8 }
 0x778   : > { %3601 = vmatpush3.bf16.msra.mxu0 %v5672_v9  ;;  %v4019_v9 = vld [vmem:[#allocation13 + $0x38] sm:$0xff]  }
 0x779   : > { %3650 = vmatprep.subr.bf16.mxu0 %v4028_v37 }
 0x77a   : > { %3633 = vmatpush3.bf16.msra.mxu1 %v4027_v8  ;;  %v4035_v8 = vld [vmem:[%s5590_s22 + $0x38] sm:$0xff]  }
 0x77b   : > { %3603 = vmatmul.mubr.bf16.vlgmr.msra.gmra.mrb[0].mxu0 %v4013_v0  ;;  %3698 = vmatprep.subr.bf16.mxu1 %v4028_v37 }
 0x77c   : > { %3606 = vmatprep.mubr.bf16.mxu0 %v4014_v50  ;;  %3651 = vmatpush3.bf16.msra.mxu0 %v4028_v37 }
 0x77d   : > { %3652 = vmatprep.subr.bf16.mxu0 %v4029_v12 }
 0x780   : > { %3653 = vmatpush3.bf16.msra.mxu0 %v4029_v12 }
 0x781   : > { %3654 = vmatprep.subr.bf16.mxu0 %v4030_v13 }
 0x783   : > { %3607 = vmatmul.mubr.bf16.gmra.mrb[4].mxu0 %v4015_v5 }
 0x784   : > { %3610 = vmatprep.mubr.bf16.mxu0 %v4016_v60  ;;  %3655 = vmatpush3.bf16.msra.mxu0 %v4030_v13 }
 0x785   : > { %3656 = vmatprep.subr.bf16.mxu0 %v4031_v14 }
 0x788   : > { %3657 = vmatpush3.bf16.msra.mxu0 %v4031_v14 }
 0x789   : > { %3658 = vmatprep.subr.bf16.mxu0 %v5827_v15 }
 0x78b   : > { %3611 = vmatmul.mubr.bf16.gmra.mrb[8].mxu0 %v4017_v6 }
 0x78c   : > { %3614 = vmatprep.mubr.bf16.mxu0 %v4018_v10  ;;  %3659 = vmatpush3.bf16.msra.mxu0 %v5827_v15 }
 0x78d   : > { %3660 = vmatprep.subr.bf16.mxu0 %v5831_v16 }
 0x790   : > { %3661 = vmatpush3.bf16.msra.mxu0 %v5831_v16 }
 0x791   : > { %3662 = vmatprep.subr.bf16.mxu0 %v4034_v11 }
 0x793   : > { %3615 = vmatmul.mubr.bf16.gmra.mrb[12].mxu0 %v4019_v9 }
 0x794   : > { %3663 = vmatpush3.bf16.msra.mxu0 %v4034_v11 }
 0x795   : > { %3664 = vmatprep.subr.bf16.mxu0 %v4035_v8 }
 0x798   : > { %3665 = vmatpush3.bf16.msra.mxu0 %v4035_v8 }
 0x84e   : > { %v3604_v17 = vpop.f32.mrb[0].mxu0 }
 0x84f   : > { %v2357_v18 = vpop.f32.mrb[1].mxu0  ;;  %v2366_v21 = vadd.f32 %v3604_v17, %v2261_v7 }
 0x850   : > { %v3605_v20 = vpop.f32.mrb[2].mxu0  ;;  %v2358_v22 = vadd.f32 %v2357_v18, %v2259_v19 }
 0x851   : > { %v2369_v55 = vadd.f32 %v3605_v20, %v2262_v51  ;;  %v2360_v56 = vpop.f32.mrb[3].mxu0 }
 0x852   : > { %v2361_v23 = vadd.f32 %v2360_v56, %v2260_v53 }
 0x853   : > { %v2421_v24 = vpack.c.bf16 %v2369_v55, %v2366_v21 }
 0x854   : > { %v2420_v25 = vpack.c.bf16 %v2361_v23, %v2358_v22 }
 0x856   : > { %v3608_v27 = vpop.f32.mrb[4].mxu0  ;;  %3634 = vmatprep.mubr.bf16.mxu1 %v2420_v25 }
 0x857   : > { %v2373_v29 = vpop.f32.mrb[5].mxu0  ;;  %3635 = vmatmul.mubr.bf16.vlgmr.msra.gmra.mrb[0].mxu1 %v2421_v24  ;;  %v2382_v59 = vadd.f32 %v3608_v27, %v2265_v26 }
 0x858   : > { %v3609_v31 = vpop.f32.mrb[6].mxu0  ;;  %3706 = vmatpush3.bf16.msra.mxu1 %v4028_v37  ;;  %v2374_v34 = vadd.f32 %v2373_v29, %v2263_v30  ;;  %v3232_v37 = vld [vmem:[%s873_s10] ss:$0 sm:$0xff] }
 0x859   : > { %v2385_v32 = vadd.f32 %v3609_v31, %v2266_v28  ;;  %v2376_v33 = vpop.f32.mrb[7].mxu0  ;;  %3699 = vmatprep.subr.bf16.mxu1 %v4029_v12 }
 0x85a   : > { %v2377_v62 = vadd.f32 %v2376_v33, %v2264_v57 }
 0x85b   : > { %v2423_v63 = vpack.c.bf16 %v2385_v32, %v2382_v59 }
 0x85c   : > { %v2422_v35 = vpack.c.bf16 %v2377_v62, %v2374_v34  ;;  %3707 = vmatpush3.bf16.msra.mxu1 %v4029_v12 }
 0x85d   : > { %3700 = vmatprep.subr.bf16.mxu1 %v4030_v13 }
 0x85e   : > { %v3612_v38 = vpop.f32.mrb[8].mxu0  ;;  %3638 = vmatprep.mubr.bf16.mxu1 %v2422_v35 }
 0x85f   : > { %v2389_v40 = vpop.f32.mrb[9].mxu0  ;;  %3639 = vmatmul.mubr.bf16.gmra.mrb[4].mxu1 %v2423_v63  ;;  %v2398_v1 = vadd.f32 %v3612_v38, %v2269_v36 }
 0x860   : > { %v3613_v43 = vpop.f32.mrb[10].mxu0  ;;  %3708 = vmatpush3.bf16.msra.mxu1 %v4030_v13  ;;  %v2390_v45 = vadd.f32 %v2389_v40, %v2267_v41 }
 0x861   : > { %v2401_v44 = vadd.f32 %v3613_v43, %v2270_v39  ;;  %v2392_v2 = vpop.f32.mrb[11].mxu0  ;;  %3701 = vmatprep.subr.bf16.mxu1 %v4031_v14 }
 0x862   : > { %v2393_v3 = vadd.f32 %v2392_v2, %v2268_v42 }
 0x863   : > { %v2425_v46 = vpack.c.bf16 %v2401_v44, %v2398_v1 }
 0x864   : > { %v2424_v4 = vpack.c.bf16 %v2393_v3, %v2390_v45  ;;  %3709 = vmatpush3.bf16.msra.mxu1 %v4031_v14 }
 0x865   : > { %3702 = vmatprep.subr.bf16.mxu1 %v5827_v15 }
 0x866   : > { %v3616_v52 = vpop.f32.mrb[12].mxu0  ;;  %3642 = vmatprep.mubr.bf16.mxu1 %v2424_v4 }
 0x867   : > { %v2405_v49 = vpop.f32.mrb[13].mxu0  ;;  %3643 = vmatmul.mubr.bf16.gmra.mrb[8].mxu1 %v2425_v46  ;;  %v2414_v0 = vadd.f32 %v3616_v52, %v2273_v47 }
 0x868   : > { %v3617_v61 = vpop.f32.mrb[14].mxu0  ;;  %3710 = vmatpush3.bf16.msra.mxu1 %v5827_v15  ;;  %v2406_v60 = vadd.f32 %v2405_v49, %v2271_v54 }
 0x869   : > { %v2417_v50 = vadd.f32 %v3617_v61, %v2274_v48  ;;  %v2408_v5 = vpop.f32.mrb[15].mxu0  ;;  %3703 = vmatprep.subr.bf16.mxu1 %v5831_v16 }
 0x86a   : > { %v2409_v6 = vadd.f32 %v2408_v5, %v2272_v58  ;;  %v3241_v5 = vld [vmem:[%s890_s23] ss:$0 sm:$0xff] }
 0x86b   : > { %v2427_v10 = vpack.c.bf16 %v2417_v50, %v2414_v0 }
 0x86c   : > { %v2426_v9 = vpack.c.bf16 %v2409_v6, %v2406_v60  ;;  %3711 = vmatpush3.bf16.msra.mxu1 %v5831_v16 }
 0x86d   : > { %3704 = vmatprep.subr.bf16.mxu1 %v4034_v11 }
 0x86e   : > { %3646 = vmatprep.mubr.bf16.mxu1 %v2426_v9 }
 0x86f   : > { %3647 = vmatmul.mubr.bf16.gmra.mrb[12].mxu1 %v2427_v10 }
 0x870   : > { %3712 = vmatpush3.bf16.msra.mxu1 %v4034_v11 }
 0x871   : > { %3705 = vmatprep.subr.bf16.mxu1 %v4035_v8 }
 0x874   : > { %3713 = vmatpush3.bf16.msra.mxu1 %v4035_v8 }
 0x92a   : > { %v3636_v12 = vpop.f32.mrb[0].mxu1 }
 0x92b   : > { %v2542_v13 = vadd.f32 %v3636_v12, %v3232_v37  ;;  %v2533_v14 = vpop.f32.mrb[1].mxu1 }
 0x92c   : > { %v2534_v15 = vadd.f32 %v3232_v37, %v2533_v14  ;;  %v3637_v7 = vpop.f32.mrb[2].mxu1 }
 0x92d   : > { %v2545_v16 = vadd.f32 %v3637_v7, %v3232_v37  ;;  %v2536_v17 = vpop.f32.mrb[3].mxu1  ;;  %v2598_v18 = vmax.f32 %v2542_v13, 0.0 }
 0x92e   : > { %v2537_v51 = vadd.f32 %v3232_v37, %v2536_v17  ;;  %v2596_v53 = vmax.f32 %v2534_v15, 0.0 }
 0x92f   : > { %v2599_v19 = vmax.f32 %v2545_v16, 0.0 }
 0x930   : > { %v2597_v20 = vmax.f32 %v2537_v51, 0.0 }
 0x931   : > { %v2613_v21 = vpack.c.bf16 %v2599_v19, %v2598_v18 }
 0x932   : > { %v2612_v55 = vpack.c.bf16 %v2597_v20, %v2596_v53  ;;  %v3640_v56 = vpop.f32.mrb[4].mxu1 }
 0x933   : > { %v2558_v22 = vadd.f32 %v3640_v56, %v3232_v37  ;;  %v2549_v23 = vpop.f32.mrb[5].mxu1 }
 0x934   : > { %v2550_v24 = vadd.f32 %v3232_v37, %v2549_v23  ;;  %v3641_v25 = vpop.f32.mrb[6].mxu1  ;;  %3666 = vmatprep.mubr.bf16.mxu0 %v2612_v55 }
 0x935   : > { %v2561_v26 = vadd.f32 %v3641_v25, %v3232_v37  ;;  %v2552_v27 = vpop.f32.mrb[7].mxu1  ;;  %3667 = vmatmul.mubr.bf16.vlgmr.msra.gmra.mrb[16].mxu0 %v2613_v21  ;;  %v2602_v29 = vmax.f32 %v2558_v22, 0.0 }
 0x936   : > { %v2553_v28 = vadd.f32 %v3232_v37, %v2552_v27  ;;  %v2600_v57 = vmax.f32 %v2550_v24, 0.0 }
 0x937   : > { %v2603_v30 = vmax.f32 %v2561_v26, 0.0 }
 0x938   : > { %v2601_v31 = vmax.f32 %v2553_v28, 0.0 }
 0x939   : > { %v2615_v59 = vpack.c.bf16 %v2603_v30, %v2602_v29 }
 0x93a   : > { %v2614_v32 = vpack.c.bf16 %v2601_v31, %v2600_v57  ;;  %v3644_v33 = vpop.f32.mrb[8].mxu1 }
 0x93b   : > { %v2574_v34 = vadd.f32 %v3644_v33, %v3232_v37  ;;  %v2565_v62 = vpop.f32.mrb[9].mxu1 }
 0x93c   : > { %v2566_v63 = vadd.f32 %v3232_v37, %v2565_v62  ;;  %v3645_v35 = vpop.f32.mrb[10].mxu1  ;;  %3670 = vmatprep.mubr.bf16.mxu0 %v2614_v32 }
 0x93d   : > { %v2577_v36 = vadd.f32 %v3645_v35, %v3232_v37  ;;  %v2568_v38 = vpop.f32.mrb[11].mxu1  ;;  %3671 = vmatmul.mubr.bf16.gmra.mrb[20].mxu0 %v2615_v59  ;;  %v2606_v40 = vmax.f32 %v2574_v34, 0.0 }
 0x93e   : > { %v2569_v39 = vadd.f32 %v3232_v37, %v2568_v38  ;;  %v2604_v42 = vmax.f32 %v2566_v63, 0.0 }
 0x93f   : > { %v2607_v41 = vmax.f32 %v2577_v36, 0.0 }
 0x940   : > { %v2605_v43 = vmax.f32 %v2569_v39, 0.0 }
 0x941   : > { %v2617_v1 = vpack.c.bf16 %v2607_v41, %v2606_v40 }
 0x942   : > { %v2616_v44 = vpack.c.bf16 %v2605_v43, %v2604_v42  ;;  %v3648_v2 = vpop.f32.mrb[12].mxu1 }
 0x943   : > { %v2590_v45 = vadd.f32 %v3648_v2, %v3232_v37  ;;  %v2581_v3 = vpop.f32.mrb[13].mxu1 }
 0x944   : > { %v2582_v46 = vadd.f32 %v3232_v37, %v2581_v3  ;;  %v3649_v4 = vpop.f32.mrb[14].mxu1  ;;  %3674 = vmatprep.mubr.bf16.mxu1 %v2616_v44 }
 0x945   : > { %v2593_v47 = vadd.f32 %v3649_v4, %v3232_v37  ;;  %v2584_v52 = vpop.f32.mrb[15].mxu1  ;;  %3675 = vmatmul.mubr.bf16.vlgmr.msra.gmra.mrb[16].mxu1 %v2617_v1  ;;  %v2610_v49 = vmax.f32 %v2590_v45, 0.0 }
 0x946   : > { %v2585_v48 = vadd.f32 %v3232_v37, %v2584_v52  ;;  %v2608_v58 = vmax.f32 %v2582_v46, 0.0 }
 0x947   : > { %v2611_v54 = vmax.f32 %v2593_v47, 0.0 }
 0x948   : > { %v2609_v61 = vmax.f32 %v2585_v48, 0.0 }
 0x949   : > { %v2619_v0 = vpack.c.bf16 %v2611_v54, %v2610_v49 }
 0x94a   : > { %v2618_v50 = vpack.c.bf16 %v2609_v61, %v2608_v58 }
 0x94c   : > { %3678 = vmatprep.mubr.bf16.mxu1 %v2618_v50 }
 0x94d   : > { %3679 = vmatmul.mubr.bf16.gmra.mrb[20].mxu1 %v2619_v0 }
 0xa08   : > { %v3668_v60 = vpop.f32.mrb[16].mxu0 }
 0xa09   : > { %v2734_v6 = vadd.f32 %v3668_v60, %v3241_v5  ;;  %v2725_v10 = vpop.f32.mrb[17].mxu0 }
 0xa0a   : > { %v2726_v9 = vadd.f32 %v3241_v5, %v2725_v10  ;;  %v3669_v11 = vpop.f32.mrb[18].mxu0 }
 0xa0b   : > { %v2790_v8 = vmax.f32 %v2734_v6, 0.0  ;;  %v2737_v12 = vadd.f32 %v3669_v11, %v3241_v5  ;;  %v2728_v13 = vpop.f32.mrb[19].mxu0 }
 0xa0c   : > { %v2788_v14 = vmax.f32 %v2726_v9, 0.0  ;;  %v2729_v37 = vadd.f32 %v3241_v5, %v2728_v13 }
 0xa0d   : > { %2806 = vst [vmem:[#allocation2 + $0x10] sm:$0xff] %v2790_v8  ;;  %v2791_v15 = vmax.f32 %v2737_v12, 0.0 }
 0xa0e   : > { %2804 = vst [vmem:[#allocation2] sm:$0xff] %v2788_v14  ;;  %v2789_v7 = vmax.f32 %v2729_v37, 0.0 }
 0xa0f   : > { %2807 = vst [vmem:[#allocation2 + $0x18] sm:$0xff] %v2791_v15 }
 0xa10   : > { %2805 = vst [vmem:[#allocation2 + $0x8] sm:$0xff] %v2789_v7  ;;  %v3672_v16 = vpop.f32.mrb[20].mxu0 }
 0xa11   : > { %v2750_v17 = vadd.f32 %v3672_v16, %v3241_v5  ;;  %v2741_v51 = vpop.f32.mrb[21].mxu0 }
 0xa12   : > { %v2742_v18 = vadd.f32 %v3241_v5, %v2741_v51  ;;  %v3673_v19 = vpop.f32.mrb[22].mxu0 }
 0xa13   : > { %v2794_v53 = vmax.f32 %v2750_v17, 0.0  ;;  %v2753_v20 = vadd.f32 %v3673_v19, %v3241_v5  ;;  %v2744_v21 = vpop.f32.mrb[23].mxu0 }
 0xa14   : > { %v2792_v55 = vmax.f32 %v2742_v18, 0.0  ;;  %v2745_v56 = vadd.f32 %v3241_v5, %v2744_v21 }
 0xa15   : > { %2810 = vst [vmem:[#allocation2 + $0x30] sm:$0xff] %v2794_v53  ;;  %v2795_v22 = vmax.f32 %v2753_v20, 0.0 }
 0xa16   : > { %2808 = vst [vmem:[#allocation2 + $0x20] sm:$0xff] %v2792_v55  ;;  %v2793_v23 = vmax.f32 %v2745_v56, 0.0 }
 0xa17   : > { %2811 = vst [vmem:[#allocation2 + $0x38] sm:$0xff] %v2795_v22 }
 0xa18   : > { %2809 = vst [vmem:[#allocation2 + $0x28] sm:$0xff] %v2793_v23  ;;  %v3676_v24 = vpop.f32.mrb[16].mxu1 }
 0xa19   : > { %v2766_v25 = vadd.f32 %v3676_v24, %v3241_v5  ;;  %v2757_v26 = vpop.f32.mrb[17].mxu1 }
 0xa1a   : > { %v2758_v27 = vadd.f32 %v3241_v5, %v2757_v26  ;;  %v3677_v28 = vpop.f32.mrb[18].mxu1 }
 0xa1b   : > { %v2798_v29 = vmax.f32 %v2766_v25, 0.0  ;;  %v2769_v30 = vadd.f32 %v3677_v28, %v3241_v5  ;;  %v2760_v57 = vpop.f32.mrb[19].mxu1 }
 0xa1c   : > { %v2796_v31 = vmax.f32 %v2758_v27, 0.0  ;;  %v2761_v59 = vadd.f32 %v3241_v5, %v2760_v57 }
 0xa1d   : > { %2814 = vst [vmem:[#allocation2 + $0x50] sm:$0xff] %v2798_v29  ;;  %v2799_v32 = vmax.f32 %v2769_v30, 0.0 }
 0xa1e   : > { %2812 = vst [vmem:[#allocation2 + $0x40] sm:$0xff] %v2796_v31  ;;  %v2797_v33 = vmax.f32 %v2761_v59, 0.0 }
 0xa1f   : > { %2815 = vst [vmem:[#allocation2 + $0x58] sm:$0xff] %v2799_v32 }
 0xa20   : > { %2813 = vst [vmem:[#allocation2 + $0x48] sm:$0xff] %v2797_v33  ;;  %v3680_v34 = vpop.f32.mrb[20].mxu1 }
 0xa21   : > { %v2782_v62 = vadd.f32 %v3680_v34, %v3241_v5  ;;  %v2773_v63 = vpop.f32.mrb[21].mxu1 }
 0xa22   : > { %v2774_v35 = vadd.f32 %v3241_v5, %v2773_v63  ;;  %v3681_v36 = vpop.f32.mrb[22].mxu1 }
 0xa23   : > { %v2802_v38 = vmax.f32 %v2782_v62, 0.0  ;;  %v2785_v39 = vadd.f32 %v3681_v36, %v3241_v5  ;;  %v2776_v40 = vpop.f32.mrb[23].mxu1 }
 0xa24   : > { %v2800_v41 = vmax.f32 %v2774_v35, 0.0  ;;  %v2777_v42 = vadd.f32 %v3241_v5, %v2776_v40 }
 0xa25   : > { %2818 = vst [vmem:[#allocation2 + $0x70] sm:$0xff] %v2802_v38  ;;  %v2803_v43 = vmax.f32 %v2785_v39, 0.0 }
 0xa26   : > { %2816 = vst [vmem:[#allocation2 + $0x60] sm:$0xff] %v2800_v41  ;;  %v2801_v1 = vmax.f32 %v2777_v42, 0.0 }
 0xa27   : > { %2819 = vst [vmem:[#allocation2 + $0x78] sm:$0xff] %v2803_v43 }
 0xa28   : > { %2817 = vst [vmem:[#allocation2 + $0x68] sm:$0xff] %v2801_v1 }
 0xa29 PF: > { %p3821_p9 = scmp.eq.s32.totalorder %s4884_s2, 5  ;;  %s4710_s16 = smov [#allocation26]  }
 0xa2a   : > { %s2826_s27 = sshll.u32 %s4710_s16, 4  ;;  %s2827_s27 = int_to_ptr.vmem [resolvable:$true] %s2826_s27 }
 0xa2b   : > { %s4491_s18 = scalar_lea.vmem %s2827_s27, 2048  ;;  %p4498_p13 = scmp.lt.s32.totalorder %s2827_s27, %s2827_s27 }
 0xa2c   : > { %p4492_p8 = scmp.ne.s32.totalorder %s2827_s27, %s4491_s18  ;;  %p4499_p1 = scmp.lt.s32.totalorder %s4491_s18, %s4491_s18 }
 0xa2e   : > { %p4493_p2 = pnand %p4492_p8, %p3821_p9  ;;  %p4500_p5 = por %p4499_p1, %p4498_p13 }
 0xa30   : > { %p4494_p0 = pneg %p4493_p2 }
 0xa32   : > { %p4501_p6 = pnand %p4500_p5, %p4494_p0 }
 0xa34   : > { %4504 = shalt.err (!%p4501_p6)
}
 0xa35   : > { %s6146_s20 = sld [smem:[#allocation74_spill]] }
 0xa3b   : > { %s6147_s1 = smov %s6146_s20  ;;  %s4505_s9 = scalar_lea.hbm %s6146_s20, 2048 }
 0xa3c   : > { %p4506_p4 = scmp.ne.s32.totalorder %s6147_s1, %s4505_s9  ;;  %p4511_p7 = scmp.lt.u32.totalorder %s4505_s9, %s6147_s1 }
 0xa3e   : > { %p4507_p3 = pnand %p4506_p4, %p3821_p9 }
 0xa40   : > { %p4508_p12 = pneg %p4507_p3 }
 0xa42   : > { %p4513_p11 = pnand %p4511_p7, %p4508_p12 }
 0xa44   : > { %4516 = shalt.err (!%p4513_p11)
}
 0xa45   : > { %s4711_s10 = smov 128   ;;  %s4712_s22 = smov 8  }
 0xa46   : > { %3757 = dma.vmem_to_hbm [thread:$0]  (%p3821_p9), %s2827_s27, 2048, %s6147_s1, [#allocation7], %s4711_s10, %s4711_s10, %s4712_s22  }
 0xa47   : > { %4618 = dma.done.wait (%p3821_p9), [#allocation7], 2048  }
 0xa48   : > { %4620 = vsyncadd (%p3821_p9), [#allocation7], 4294965248 }
 0xa49 PF: > { %s6148_s8 = sld [smem:[#allocation47_spill]]  ;;  %s6151_s22 = sld [smem:[#allocation38_spill]] }
 0xa4a   : > { %s6150_s21 = sld [smem:[#allocation37_spill]]  ;;  %s6152_s23 = sld [smem:[#allocation57_spill]] }
 0xa4b   : > { %s6153_s13 = sld [smem:[#allocation39_spill]]  ;;  %s6154_s26 = sld [smem:[#allocation56_spill]] }
 0xa4c   : > { %s6155_s30 = sld [smem:[#allocation40_spill]]  ;;  %s6156_s29 = sld [smem:[#allocation55_spill]] }
 0xa4d   : > { %s6157_s19 = sld [smem:[#allocation41_spill]]  ;;  %s6158_s0 = sld [smem:[#allocation42_spill]] }
 0xa4e   : > { %s6159_s17 = sld [smem:[#allocation53_spill]]  ;;  %s6160_s18 = sld [smem:[#allocation45_spill]] }
 0xa4f   : > { %s31_s15 = sadd.s32 1, %s6148_s8   ;;  %s6161_s2 = sld [smem:[#allocation46_spill]] }
 0xa50   : > { %p5870_p10 = scmp.ge.s32.totalorder %s31_s15, 8   ;;  %s6162_s20 = sld [smem:[#allocation51_spill]] }
 0xa51   : > { %s6163_s16 = sld [smem:[#allocation54_spill]]  ;;  %s6164_s24 = smov %s4639_s25 }
 0xa52   : > { %s6165_s25 = smov %s6153_s13  ;;  %s6166_s27 = smov %s4651_s28 }
 0xa53   : > { %s6167_s28 = smov %s6155_s30  ;;  %s6168_s30 = smov %s6157_s19 }
 0xa54   :  { %30 = sbr.rel (!%p5870_p10) target bundleno = 31 (0x1f), region = 271 }
 0xa55   : > { %s6169_s19 = smov %s6161_s2 }
 0xa5b   :  { %2842 = vsyncpa [#allocation6], 1 }
 0xa5c   :  { %2844 = vsyncpa [#allocation6 + $0x1], 1 }
 0xa5d   :  { %2845 = vsyncpa [#allocation11], 1 }
 0xa5e   :  { %2846 = vsyncpa [#allocation14], 1 }
 0xa5f   :  { %2847 = vsyncpa [#allocation7], 1 }
 0xa60   :  { %2849 = vsyncpa [#allocation7 + $0x1], 1 }
 0xa61   :  { %2850 = vsyncpa [#allocation8], 1 }
 0xa62   :  { %2852 = vsyncpa [#allocation8 + $0x1], 1 }

</bundles_post_ra>
